<compile_context>
chip_gen: v6e
topology: v6e:2x2x1
jax: 0.10.0
libtpu: 0.0.40
codegen_flags: <defaults>
</compile_context>

<pallas_src>
import functools
import math

import jax
import jax.numpy as jnp
from jax.experimental import pallas as pl
from jax.experimental.pallas import tpu as pltpu

_VMEM = pl.BlockSpec(memory_space=pltpu.MemorySpace.VMEM)
_SMEM = pl.BlockSpec(memory_space=pltpu.MemorySpace.SMEM)

_TAPS2 = tuple((ki, kj) for ki in range(2) for kj in range(2))   # 2x2 conv taps
_TAPS4 = tuple((ki, kj) for ki in range(4) for kj in range(4))   # pool-folded 4x4 taps


# ------------------------------------------------------------------
# Fused forward kernel (whole model, all activations VMEM-resident)
# ------------------------------------------------------------------
def _fused_forward_kernel(slopes_ref, x_ref, w1_ref, b1_ref, w2_ref, b2_ref,
                          w3_ref, b3_ref, fc1w_ref, fc1b_ref, fc2w_ref, fc2b_ref,
                          fc3w_ref, fc3b_ref, o_ref, cols2_ref, cols3_ref, flat_ref):
    n = x_ref.shape[0]
    f32, bf16 = jnp.float32, jnp.bfloat16

    # ---- Conv2d(1,32,2) + folded BN + PReLU : pure VPU (C_in == 1) ------------
    x = x_ref[...]                                     # (n, 8, 8, 1) f32
    w1 = w1_ref[...]                                   # (4, 32)  f32, rows = taps
    h1 = None
    for t, (ki, kj) in enumerate(_TAPS2):
        term = x[:, ki:ki + 7, kj:kj + 7, :] * w1[t:t + 1, :]    # (n,7,7,32)
        h1 = term if h1 is None else h1 + term
    h1 = h1 + b1_ref[...]
    s1 = slopes_ref[0]
    h1 = jnp.where(h1 > 0.0, h1, s1 * h1)              # (n, 7, 7, 32) f32

    # ---- im2col for Conv2d(32,64,2): repack into a lane-dense (n*36, 128) slab -
    for n_ in range(n):
        for i2 in range(6):
            r0 = n_ * 36 + i2 * 6
            for t, (ki, kj) in enumerate(_TAPS2):
                cols2_ref[pl.ds(r0, 6), pl.ds(t * 32, 32)] = h1[n_, i2 + ki, kj:kj + 6, :]

    # ---- Conv2d(32,64,2) + folded BN + PReLU : one MXU matmul, K = 128 --------
    h2 = jnp.dot(cols2_ref[...].astype(bf16), w2_ref[...],
                 preferred_element_type=f32) + b2_ref[...]
    s2 = slopes_ref[1]
    h2 = jnp.where(h2 > 0.0, h2, s2 * h2)              # (n*36, 64) f32, rows = (n,i,j)

    # ---- AvgPool2d(2,1) folded into Conv2d(64,128,3) -> effective 4x4 conv:
    #      repack into (n*9, 1024), one MXU matmul, K = 1024 ---------------------
    for n_ in range(n):
        for i2 in range(3):
            r0 = n_ * 9 + i2 * 3
            for t, (ki, kj) in enumerate(_TAPS4):
                src = n_ * 36 + (i2 + ki) * 6 + kj
                cols3_ref[pl.ds(r0, 3), pl.ds(t * 64, 64)] = h2[src:src + 3, :]
    h3 = jnp.dot(cols3_ref[...].astype(bf16), w3_ref[...],
                 preferred_element_type=f32) + b3_ref[...]
    s3 = slopes_ref[2]
    h3 = jnp.where(h3 > 0.0, h3, s3 * h3)              # (n*9, 128) f32

    # ---- PyTorch NCHW .view(n,-1) flatten (channel/spatial permutation is baked
    #      into fc1's weight at init): lay the 9 spatial rows side by side --------
    for n_ in range(n):
        for s in range(9):
            flat_ref[pl.ds(n_, 1), pl.ds(s * 128, 128)] = h3[n_ * 9 + s:n_ * 9 + s + 1, :]

    # ---- fc head: Linear(1152,512)+SiLU -> Linear(512,256)+SiLU -> Linear(256,4)
    f1 = jnp.dot(flat_ref[...].astype(bf16), fc1w_ref[...],
                 preferred_element_type=f32) + fc1b_ref[...]
    f1 = f1 * jax.nn.sigmoid(f1)                       # SiLU (f32 epilogue)
    f2 = jnp.dot(f1.astype(bf16), fc2w_ref[...],
                 preferred_element_type=f32) + fc2b_ref[...]
    f2 = f2 * jax.nn.sigmoid(f2)                       # SiLU (f32 epilogue)
    o_ref[...] = jnp.dot(f2.astype(bf16), fc3w_ref[...],
                         preferred_element_type=f32) + fc3b_ref[...]


def forward(P, x_nchw):
    """ConvModel1 forward. x_nchw: (N, 1, 8, 8). Returns (N, 4) float32."""
    n = x_nchw.shape[0]
    # C == 1, so NCHW -> NHWC is a free reshape (identical memory order, no transpose).
    x = x_nchw.reshape(n, 8, 8, 1).astype(jnp.float32)
    return pl.pallas_call(
        _fused_forward_kernel,
        out_shape=jax.ShapeDtypeStruct((n, 4), jnp.float32),
        in_specs=[_SMEM] + [_VMEM] * 13,
        out_specs=_VMEM,
        scratch_shapes=[
            pltpu.VMEM((n * 36, 128), jnp.float32),    # conv2 im2col slab
            pltpu.VMEM((n * 9, 1024), jnp.float32),    # conv3(+pool) im2col slab
            pltpu.VMEM((n, 1152), jnp.float32),        # flattened fc1 input
        ],
        # TODO(synk): at serving batch sizes add a grid over N with
        #   dimension_semantics=("parallel",) (2 TensorCores on v7x) and re-derive
        #   the VMEM budget (64 MiB physical on v7x); at batch=2 a single grid-less
        #   invocation is optimal (total VMEM use ~1.9 MB).
    )(P['slopes'], x, P['w1'], P['b1'], P['w2'], P['b2'], P['w3'], P['b3'],
      P['fc1_w'], P['fc1_b'], P['fc2_w'], P['fc2_b'], P['fc3_w'], P['fc3_b'])


# ------------------------------------------------------------------
# Deterministic synthetic parameters (not a checkpoint), kernel layout
# ------------------------------------------------------------------
class KeyGen:
    def __init__(self, key):
        self.key = key

    def __call__(self):
        self.key, sub = jax.random.split(self.key)
        return sub


def _conv_bn_fold(kg, kh, kw, cin, cout):
    """Conv2d(+bias) followed by eval-mode BatchNorm, folded into (w, b)."""
    fan = kh * kw * cin
    w = jax.random.normal(kg(), (kh, kw, cin, cout), jnp.float32) / math.sqrt(fan)
    b = 0.01 * jax.random.normal(kg(), (cout,), jnp.float32)
    gamma = 1.0 + 0.1 * jax.random.normal(kg(), (cout,), jnp.float32)
    beta = 0.1 * jax.random.normal(kg(), (cout,), jnp.float32)
    mean = 0.1 * jax.random.normal(kg(), (cout,), jnp.float32)
    var = 1.0 + 0.1 * jnp.abs(jax.random.normal(kg(), (cout,), jnp.float32))
    scale = gamma / jnp.sqrt(var + 1e-5)
    return w * scale[None, None, None, :], scale * (b - mean) + beta


def _linear(kg, cin, cout):
    w = jax.random.normal(kg(), (cin, cout), jnp.float32) / math.sqrt(cin)
    b = 0.01 * jax.random.normal(kg(), (cout,), jnp.float32)
    return w, b


def init_params(key):
    """All weights pre-packed for the kernel: bf16 MXU operands, (1,N) f32 biases,
    folded BN / AvgPool / flatten permutation -- zero per-call cast or reshape."""
    kg = KeyGen(key)
    w1, b1 = _conv_bn_fold(kg, 2, 2, 1, 32)     # Conv2d(1,32,2)+BN
    w2, b2 = _conv_bn_fold(kg, 2, 2, 32, 64)    # Conv2d(32,64,2)+BN
    w3, b3 = _conv_bn_fold(kg, 3, 3, 64, 128)   # Conv2d(64,128,3)+BN

    # AvgPool2d(2, stride=1) is linear -> fold into conv3 as an exact 4x4 kernel.
    w3p = jnp.pad(w3, ((1, 1), (1, 1), (0, 0), (0, 0)))
    w3e = 0.25 * (w3p[0:4, 0:4] + w3p[1:5, 0:4] + w3p[0:4, 1:5] + w3p[1:5, 1:5])

    fc1_w, fc1_b = _linear(kg, 128 * 3 * 3, 512)
    fc2_w, fc2_b = _linear(kg, 512, 256)
    fc3_w, fc3_b = _linear(kg, 256, 4)
    # Kernel feeds fc1 features in (spatial-major, channel-minor) order g = s*128 + c;
    # PyTorch's NCHW flatten uses f = c*9 + s.  Permute fc1 rows once at init.
    fc1_perm = fc1_w.reshape(128, 9, 512).transpose(1, 0, 2).reshape(1152, 512)

    return {
        'slopes': jnp.full((3,), 0.25, jnp.float32),       # nn.PReLU() default init
        'w1': w1.reshape(4, 32).astype(jnp.float32),       # rows = taps (VPU path)
        'b1': b1.reshape(1, 32).astype(jnp.float32),
        'w2': w2.reshape(128, 64).astype(jnp.bfloat16),    # rows = (tap, cin)
        'b2': b2.reshape(1, 64).astype(jnp.float32),
        'w3': w3e.reshape(1024, 128).astype(jnp.bfloat16),
        'b3': b3.reshape(1, 128).astype(jnp.float32),
        'fc1_w': fc1_perm.astype(jnp.bfloat16),
        'fc1_b': fc1_b.reshape(1, 512).astype(jnp.float32),
        'fc2_w': fc2_w.astype(jnp.bfloat16),
        'fc2_b': fc2_b.reshape(1, 256).astype(jnp.float32),
        'fc3_w': fc3_w.astype(jnp.bfloat16),
        'fc3_b': fc3_b.reshape(1, 4).astype(jnp.float32),
    }


# ------------------------------------------------------------------
if __name__ == "__main__":
    key = jax.random.PRNGKey(0)
    kp, kx = jax.random.split(key)
    params = init_params(kp)

    # fc expects 1152 = 128*3*3 features -> 8x8 single-channel input.
    x = jax.random.normal(kx, (2, 1, 8, 8), jnp.float32)

    fwd = jax.jit(forward)
    out = fwd(params, x)
    jax.block_until_ready(out)

    assert out.shape == (2, 4), out.shape
    assert bool(jnp.all(jnp.isfinite(out)))
    print("KERNEL_OK")
</pallas_src>

<mosaic_0001>
module attributes {stable_mosaic.version = 11 : i64} {
  func.func @_fused_forward_kernel(%arg0: memref<3xf32, #tpu.memory_space<smem>>, %arg1: memref<2x8x8x1xf32, #tpu.memory_space<vmem>>, %arg2: memref<4x32xf32, #tpu.memory_space<vmem>>, %arg3: memref<1x32xf32, #tpu.memory_space<vmem>>, %arg4: memref<128x64xbf16, #tpu.memory_space<vmem>>, %arg5: memref<1x64xf32, #tpu.memory_space<vmem>>, %arg6: memref<1024x128xbf16, #tpu.memory_space<vmem>>, %arg7: memref<1x128xf32, #tpu.memory_space<vmem>>, %arg8: memref<1152x512xbf16, #tpu.memory_space<vmem>>, %arg9: memref<1x512xf32, #tpu.memory_space<vmem>>, %arg10: memref<512x256xbf16, #tpu.memory_space<vmem>>, %arg11: memref<1x256xf32, #tpu.memory_space<vmem>>, %arg12: memref<256x4xbf16, #tpu.memory_space<vmem>>, %arg13: memref<1x4xf32, #tpu.memory_space<vmem>>, %arg14: memref<2x4xf32, #tpu.memory_space<vmem>>, %arg15: memref<72x128xf32, #tpu.memory_space<vmem>>, %arg16: memref<18x1024xf32, #tpu.memory_space<vmem>>, %arg17: memref<2x1152xf32, #tpu.memory_space<vmem>>) attributes {dimension_semantics = [], scalar_prefetch = 0 : i64, scratch_operands = 3 : i64, tpu.core_type = #tpu.core_type<tc>} {
    %c0 = arith.constant 0 : index
    %c0_0 = arith.constant 0 : index
    %c0_1 = arith.constant 0 : index
    %c0_2 = arith.constant 0 : index
    %0 = vector.load %arg1[%c0, %c0_0, %c0_1, %c0_2] : memref<2x8x8x1xf32, #tpu.memory_space<vmem>>, vector<2x8x8x1xf32>
    %c0_3 = arith.constant 0 : index
    %c0_4 = arith.constant 0 : index
    %1 = vector.load %arg2[%c0_3, %c0_4] : memref<4x32xf32, #tpu.memory_space<vmem>>, vector<4x32xf32>
    %2 = vector.extract_strided_slice %0 {offsets = [0, 0, 0, 0], sizes = [2, 7, 7, 1], strides = [1, 1, 1, 1]} : vector<2x8x8x1xf32> to vector<2x7x7x1xf32>
    %3 = vector.extract_strided_slice %1 {offsets = [0, 0], sizes = [1, 32], strides = [1, 1]} : vector<4x32xf32> to vector<1x32xf32>
    %4 = vector.shape_cast %3 : vector<1x32xf32> to vector<1x1x1x32xf32>
    %5 = vector.broadcast %2 : vector<2x7x7x1xf32> to vector<2x7x7x32xf32>
    %6 = vector.broadcast %4 : vector<1x1x1x32xf32> to vector<2x7x7x32xf32>
    %7 = arith.mulf %5, %6 : vector<2x7x7x32xf32>
    %8 = vector.extract_strided_slice %0 {offsets = [0, 0, 1, 0], sizes = [2, 7, 7, 1], strides = [1, 1, 1, 1]} : vector<2x8x8x1xf32> to vector<2x7x7x1xf32>
    %9 = vector.extract_strided_slice %1 {offsets = [1, 0], sizes = [1, 32], strides = [1, 1]} : vector<4x32xf32> to vector<1x32xf32>
    %10 = vector.shape_cast %9 : vector<1x32xf32> to vector<1x1x1x32xf32>
    %11 = vector.broadcast %8 : vector<2x7x7x1xf32> to vector<2x7x7x32xf32>
    %12 = vector.broadcast %10 : vector<1x1x1x32xf32> to vector<2x7x7x32xf32>
    %13 = arith.mulf %11, %12 : vector<2x7x7x32xf32>
    %14 = arith.addf %7, %13 : vector<2x7x7x32xf32>
    %15 = vector.extract_strided_slice %0 {offsets = [0, 1, 0, 0], sizes = [2, 7, 7, 1], strides = [1, 1, 1, 1]} : vector<2x8x8x1xf32> to vector<2x7x7x1xf32>
    %16 = vector.extract_strided_slice %1 {offsets = [2, 0], sizes = [1, 32], strides = [1, 1]} : vector<4x32xf32> to vector<1x32xf32>
    %17 = vector.shape_cast %16 : vector<1x32xf32> to vector<1x1x1x32xf32>
    %18 = vector.broadcast %15 : vector<2x7x7x1xf32> to vector<2x7x7x32xf32>
    %19 = vector.broadcast %17 : vector<1x1x1x32xf32> to vector<2x7x7x32xf32>
    %20 = arith.mulf %18, %19 : vector<2x7x7x32xf32>
    %21 = arith.addf %14, %20 : vector<2x7x7x32xf32>
    %22 = vector.extract_strided_slice %0 {offsets = [0, 1, 1, 0], sizes = [2, 7, 7, 1], strides = [1, 1, 1, 1]} : vector<2x8x8x1xf32> to vector<2x7x7x1xf32>
    %23 = vector.extract_strided_slice %1 {offsets = [3, 0], sizes = [1, 32], strides = [1, 1]} : vector<4x32xf32> to vector<1x32xf32>
    %24 = vector.shape_cast %23 : vector<1x32xf32> to vector<1x1x1x32xf32>
    %25 = vector.broadcast %22 : vector<2x7x7x1xf32> to vector<2x7x7x32xf32>
    %26 = vector.broadcast %24 : vector<1x1x1x32xf32> to vector<2x7x7x32xf32>
    %27 = arith.mulf %25, %26 : vector<2x7x7x32xf32>
    %28 = arith.addf %21, %27 : vector<2x7x7x32xf32>
    %c0_5 = arith.constant 0 : index
    %c0_6 = arith.constant 0 : index
    %29 = vector.load %arg3[%c0_5, %c0_6] : memref<1x32xf32, #tpu.memory_space<vmem>>, vector<1x32xf32>
    %30 = vector.shape_cast %29 : vector<1x32xf32> to vector<1x1x1x32xf32>
    %31 = vector.broadcast %30 : vector<1x1x1x32xf32> to vector<2x7x7x32xf32>
    %32 = arith.addf %28, %31 : vector<2x7x7x32xf32>
    %c0_7 = arith.constant 0 : index
    %33 = memref.load %arg0[%c0_7] : memref<3xf32, #tpu.memory_space<smem>>
    %cst = arith.constant 0.000000e+00 : f32
    %34 = vector.broadcast %cst : f32 to vector<2x7x7x32xf32>
    %35 = arith.cmpf ogt, %32, %34 : vector<2x7x7x32xf32>
    %36 = vector.broadcast %33 : f32 to vector<2x7x7x32xf32>
    %37 = arith.mulf %36, %32 : vector<2x7x7x32xf32>
    %38 = arith.select %35, %32, %37 : vector<2x7x7x32xi1>, vector<2x7x7x32xf32>
    %39 = vector.extract_strided_slice %38 {offsets = [0, 0, 0, 0], sizes = [1, 1, 6, 32], strides = [1, 1, 1, 1]} : vector<2x7x7x32xf32> to vector<1x1x6x32xf32>
    %40 = vector.shape_cast %39 : vector<1x1x6x32xf32> to vector<6x32xf32>
    %c0_8 = arith.constant 0 : index
    %c0_9 = arith.constant 0 : index
    %41 = vector.load %arg15[%c0_8, %c0_9] : memref<72x128xf32, #tpu.memory_space<vmem>>, vector<6x32xf32>
    tpu.vector_store %arg15[%c0_8, %c0_9], %40 {strides = array<i32>} : memref<72x128xf32, #tpu.memory_space<vmem>>, vector<6x32xf32>,
    %42 = vector.extract_strided_slice %38 {offsets = [0, 0, 1, 0], sizes = [1, 1, 6, 32], strides = [1, 1, 1, 1]} : vector<2x7x7x32xf32> to vector<1x1x6x32xf32>
    %43 = vector.shape_cast %42 : vector<1x1x6x32xf32> to vector<6x32xf32>
    %c0_10 = arith.constant 0 : index
    %c32 = arith.constant 32 : index
    %44 = vector.load %arg15[%c0_10, %c32] : memref<72x128xf32, #tpu.memory_space<vmem>>, vector<6x32xf32>
    tpu.vector_store %arg15[%c0_10, %c32], %43 {strides = array<i32>} : memref<72x128xf32, #tpu.memory_space<vmem>>, vector<6x32xf32>,
    %45 = vector.extract_strided_slice %38 {offsets = [0, 1, 0, 0], sizes = [1, 1, 6, 32], strides = [1, 1, 1, 1]} : vector<2x7x7x32xf32> to vector<1x1x6x32xf32>
    %46 = vector.shape_cast %45 : vector<1x1x6x32xf32> to vector<6x32xf32>
    %c0_11 = arith.constant 0 : index
    %c64 = arith.constant 64 : index
    %47 = vector.load %arg15[%c0_11, %c64] : memref<72x128xf32, #tpu.memory_space<vmem>>, vector<6x32xf32>
    tpu.vector_store %arg15[%c0_11, %c64], %46 {strides = array<i32>} : memref<72x128xf32, #tpu.memory_space<vmem>>, vector<6x32xf32>,
    %48 = vector.extract_strided_slice %38 {offsets = [0, 1, 1, 0], sizes = [1, 1, 6, 32], strides = [1, 1, 1, 1]} : vector<2x7x7x32xf32> to vector<1x1x6x32xf32>
    %49 = vector.shape_cast %48 : vector<1x1x6x32xf32> to vector<6x32xf32>
    %c0_12 = arith.constant 0 : index
    %c96 = arith.constant 96 : index
    %50 = vector.load %arg15[%c0_12, %c96] : memref<72x128xf32, #tpu.memory_space<vmem>>, vector<6x32xf32>
    tpu.vector_store %arg15[%c0_12, %c96], %49 {strides = array<i32>} : memref<72x128xf32, #tpu.memory_space<vmem>>, vector<6x32xf32>,
    %51 = vector.extract_strided_slice %38 {offsets = [0, 1, 0, 0], sizes = [1, 1, 6, 32], strides = [1, 1, 1, 1]} : vector<2x7x7x32xf32> to vector<1x1x6x32xf32>
    %52 = vector.shape_cast %51 : vector<1x1x6x32xf32> to vector<6x32xf32>
    %c6 = arith.constant 6 : index
    %c0_13 = arith.constant 0 : index
    %53 = vector.load %arg15[%c6, %c0_13] : memref<72x128xf32, #tpu.memory_space<vmem>>, vector<6x32xf32>
    tpu.vector_store %arg15[%c6, %c0_13], %52 {strides = array<i32>} : memref<72x128xf32, #tpu.memory_space<vmem>>, vector<6x32xf32>,
    %54 = vector.extract_strided_slice %38 {offsets = [0, 1, 1, 0], sizes = [1, 1, 6, 32], strides = [1, 1, 1, 1]} : vector<2x7x7x32xf32> to vector<1x1x6x32xf32>
    %55 = vector.shape_cast %54 : vector<1x1x6x32xf32> to vector<6x32xf32>
    %c6_14 = arith.constant 6 : index
    %c32_15 = arith.constant 32 : index
    %56 = vector.load %arg15[%c6_14, %c32_15] : memref<72x128xf32, #tpu.memory_space<vmem>>, vector<6x32xf32>
    tpu.vector_store %arg15[%c6_14, %c32_15], %55 {strides = array<i32>} : memref<72x128xf32, #tpu.memory_space<vmem>>, vector<6x32xf32>,
    %57 = vector.extract_strided_slice %38 {offsets = [0, 2, 0, 0], sizes = [1, 1, 6, 32], strides = [1, 1, 1, 1]} : vector<2x7x7x32xf32> to vector<1x1x6x32xf32>
    %58 = vector.shape_cast %57 : vector<1x1x6x32xf32> to vector<6x32xf32>
    %c6_16 = arith.constant 6 : index
    %c64_17 = arith.constant 64 : index
    %59 = vector.load %arg15[%c6_16, %c64_17] : memref<72x128xf32, #tpu.memory_space<vmem>>, vector<6x32xf32>
    tpu.vector_store %arg15[%c6_16, %c64_17], %58 {strides = array<i32>} : memref<72x128xf32, #tpu.memory_space<vmem>>, vector<6x32xf32>,
    %60 = vector.extract_strided_slice %38 {offsets = [0, 2, 1, 0], sizes = [1, 1, 6, 32], strides = [1, 1, 1, 1]} : vector<2x7x7x32xf32> to vector<1x1x6x32xf32>
    %61 = vector.shape_cast %60 : vector<1x1x6x32xf32> to vector<6x32xf32>
    %c6_18 = arith.constant 6 : index
    %c96_19 = arith.constant 96 : index
    %62 = vector.load %arg15[%c6_18, %c96_19] : memref<72x128xf32, #tpu.memory_space<vmem>>, vector<6x32xf32>
    tpu.vector_store %arg15[%c6_18, %c96_19], %61 {strides = array<i32>} : memref<72x128xf32, #tpu.memory_space<vmem>>, vector<6x32xf32>,
    %63 = vector.extract_strided_slice %38 {offsets = [0, 2, 0, 0], sizes = [1, 1, 6, 32], strides = [1, 1, 1, 1]} : vector<2x7x7x32xf32> to vector<1x1x6x32xf32>
    %64 = vector.shape_cast %63 : vector<1x1x6x32xf32> to vector<6x32xf32>
    %c12 = arith.constant 12 : index
    %c0_20 = arith.constant 0 : index
    %65 = vector.load %arg15[%c12, %c0_20] : memref<72x128xf32, #tpu.memory_space<vmem>>, vector<6x32xf32>
    tpu.vector_store %arg15[%c12, %c0_20], %64 {strides = array<i32>} : memref<72x128xf32, #tpu.memory_space<vmem>>, vector<6x32xf32>,
    %66 = vector.extract_strided_slice %38 {offsets = [0, 2, 1, 0], sizes = [1, 1, 6, 32], strides = [1, 1, 1, 1]} : vector<2x7x7x32xf32> to vector<1x1x6x32xf32>
    %67 = vector.shape_cast %66 : vector<1x1x6x32xf32> to vector<6x32xf32>
    %c12_21 = arith.constant 12 : index
    %c32_22 = arith.constant 32 : index
    %68 = vector.load %arg15[%c12_21, %c32_22] : memref<72x128xf32, #tpu.memory_space<vmem>>, vector<6x32xf32>
    tpu.vector_store %arg15[%c12_21, %c32_22], %67 {strides = array<i32>} : memref<72x128xf32, #tpu.memory_space<vmem>>, vector<6x32xf32>,
    %69 = vector.extract_strided_slice %38 {offsets = [0, 3, 0, 0], sizes = [1, 1, 6, 32], strides = [1, 1, 1, 1]} : vector<2x7x7x32xf32> to vector<1x1x6x32xf32>
    %70 = vector.shape_cast %69 : vector<1x1x6x32xf32> to vector<6x32xf32>
    %c12_23 = arith.constant 12 : index
    %c64_24 = arith.constant 64 : index
    %71 = vector.load %arg15[%c12_23, %c64_24] : memref<72x128xf32, #tpu.memory_space<vmem>>, vector<6x32xf32>
    tpu.vector_store %arg15[%c12_23, %c64_24], %70 {strides = array<i32>} : memref<72x128xf32, #tpu.memory_space<vmem>>, vector<6x32xf32>,
    %72 = vector.extract_strided_slice %38 {offsets = [0, 3, 1, 0], sizes = [1, 1, 6, 32], strides = [1, 1, 1, 1]} : vector<2x7x7x32xf32> to vector<1x1x6x32xf32>
    %73 = vector.shape_cast %72 : vector<1x1x6x32xf32> to vector<6x32xf32>
    %c12_25 = arith.constant 12 : index
    %c96_26 = arith.constant 96 : index
    %74 = vector.load %arg15[%c12_25, %c96_26] : memref<72x128xf32, #tpu.memory_space<vmem>>, vector<6x32xf32>
    tpu.vector_store %arg15[%c12_25, %c96_26], %73 {strides = array<i32>} : memref<72x128xf32, #tpu.memory_space<vmem>>, vector<6x32xf32>,
    %75 = vector.extract_strided_slice %38 {offsets = [0, 3, 0, 0], sizes = [1, 1, 6, 32], strides = [1, 1, 1, 1]} : vector<2x7x7x32xf32> to vector<1x1x6x32xf32>
    %76 = vector.shape_cast %75 : vector<1x1x6x32xf32> to vector<6x32xf32>
    %c18 = arith.constant 18 : index
    %c0_27 = arith.constant 0 : index
    %77 = vector.load %arg15[%c18, %c0_27] : memref<72x128xf32, #tpu.memory_space<vmem>>, vector<6x32xf32>
    tpu.vector_store %arg15[%c18, %c0_27], %76 {strides = array<i32>} : memref<72x128xf32, #tpu.memory_space<vmem>>, vector<6x32xf32>,
    %78 = vector.extract_strided_slice %38 {offsets = [0, 3, 1, 0], sizes = [1, 1, 6, 32], strides = [1, 1, 1, 1]} : vector<2x7x7x32xf32> to vector<1x1x6x32xf32>
    %79 = vector.shape_cast %78 : vector<1x1x6x32xf32> to vector<6x32xf32>
    %c18_28 = arith.constant 18 : index
    %c32_29 = arith.constant 32 : index
    %80 = vector.load %arg15[%c18_28, %c32_29] : memref<72x128xf32, #tpu.memory_space<vmem>>, vector<6x32xf32>
    tpu.vector_store %arg15[%c18_28, %c32_29], %79 {strides = array<i32>} : memref<72x128xf32, #tpu.memory_space<vmem>>, vector<6x32xf32>,
    %81 = vector.extract_strided_slice %38 {offsets = [0, 4, 0, 0], sizes = [1, 1, 6, 32], strides = [1, 1, 1, 1]} : vector<2x7x7x32xf32> to vector<1x1x6x32xf32>
    %82 = vector.shape_cast %81 : vector<1x1x6x32xf32> to vector<6x32xf32>
    %c18_30 = arith.constant 18 : index
    %c64_31 = arith.constant 64 : index
    %83 = vector.load %arg15[%c18_30, %c64_31] : memref<72x128xf32, #tpu.memory_space<vmem>>, vector<6x32xf32>
    tpu.vector_store %arg15[%c18_30, %c64_31], %82 {strides = array<i32>} : memref<72x128xf32, #tpu.memory_space<vmem>>, vector<6x32xf32>,
    %84 = vector.extract_strided_slice %38 {offsets = [0, 4, 1, 0], sizes = [1, 1, 6, 32], strides = [1, 1, 1, 1]} : vector<2x7x7x32xf32> to vector<1x1x6x32xf32>
    %85 = vector.shape_cast %84 : vector<1x1x6x32xf32> to vector<6x32xf32>
    %c18_32 = arith.constant 18 : index
    %c96_33 = arith.constant 96 : index
    %86 = vector.load %arg15[%c18_32, %c96_33] : memref<72x128xf32, #tpu.memory_space<vmem>>, vector<6x32xf32>
    tpu.vector_store %arg15[%c18_32, %c96_33], %85 {strides = array<i32>} : memref<72x128xf32, #tpu.memory_space<vmem>>, vector<6x32xf32>,
    %87 = vector.extract_strided_slice %38 {offsets = [0, 4, 0, 0], sizes = [1, 1, 6, 32], strides = [1, 1, 1, 1]} : vector<2x7x7x32xf32> to vector<1x1x6x32xf32>
    %88 = vector.shape_cast %87 : vector<1x1x6x32xf32> to vector<6x32xf32>
    %c24 = arith.constant 24 : index
    %c0_34 = arith.constant 0 : index
    %89 = vector.load %arg15[%c24, %c0_34] : memref<72x128xf32, #tpu.memory_space<vmem>>, vector<6x32xf32>
    tpu.vector_store %arg15[%c24, %c0_34], %88 {strides = array<i32>} : memref<72x128xf32, #tpu.memory_space<vmem>>, vector<6x32xf32>,
    %90 = vector.extract_strided_slice %38 {offsets = [0, 4, 1, 0], sizes = [1, 1, 6, 32], strides = [1, 1, 1, 1]} : vector<2x7x7x32xf32> to vector<1x1x6x32xf32>
    %91 = vector.shape_cast %90 : vector<1x1x6x32xf32> to vector<6x32xf32>
    %c24_35 = arith.constant 24 : index
    %c32_36 = arith.constant 32 : index
    %92 = vector.load %arg15[%c24_35, %c32_36] : memref<72x128xf32, #tpu.memory_space<vmem>>, vector<6x32xf32>
    tpu.vector_store %arg15[%c24_35, %c32_36], %91 {strides = array<i32>} : memref<72x128xf32, #tpu.memory_space<vmem>>, vector<6x32xf32>,
    %93 = vector.extract_strided_slice %38 {offsets = [0, 5, 0, 0], sizes = [1, 1, 6, 32], strides = [1, 1, 1, 1]} : vector<2x7x7x32xf32> to vector<1x1x6x32xf32>
    %94 = vector.shape_cast %93 : vector<1x1x6x32xf32> to vector<6x32xf32>
    %c24_37 = arith.constant 24 : index
    %c64_38 = arith.constant 64 : index
    %95 = vector.load %arg15[%c24_37, %c64_38] : memref<72x128xf32, #tpu.memory_space<vmem>>, vector<6x32xf32>
    tpu.vector_store %arg15[%c24_37, %c64_38], %94 {strides = array<i32>} : memref<72x128xf32, #tpu.memory_space<vmem>>, vector<6x32xf32>,
    %96 = vector.extract_strided_slice %38 {offsets = [0, 5, 1, 0], sizes = [1, 1, 6, 32], strides = [1, 1, 1, 1]} : vector<2x7x7x32xf32> to vector<1x1x6x32xf32>
    %97 = vector.shape_cast %96 : vector<1x1x6x32xf32> to vector<6x32xf32>
    %c24_39 = arith.constant 24 : index
    %c96_40 = arith.constant 96 : index
    %98 = vector.load %arg15[%c24_39, %c96_40] : memref<72x128xf32, #tpu.memory_space<vmem>>, vector<6x32xf32>
    tpu.vector_store %arg15[%c24_39, %c96_40], %97 {strides = array<i32>} : memref<72x128xf32, #tpu.memory_space<vmem>>, vector<6x32xf32>,
    %99 = vector.extract_strided_slice %38 {offsets = [0, 5, 0, 0], sizes = [1, 1, 6, 32], strides = [1, 1, 1, 1]} : vector<2x7x7x32xf32> to vector<1x1x6x32xf32>
    %100 = vector.shape_cast %99 : vector<1x1x6x32xf32> to vector<6x32xf32>
    %c30 = arith.constant 30 : index
    %c0_41 = arith.constant 0 : index
    %101 = vector.load %arg15[%c30, %c0_41] : memref<72x128xf32, #tpu.memory_space<vmem>>, vector<6x32xf32>
    tpu.vector_store %arg15[%c30, %c0_41], %100 {strides = array<i32>} : memref<72x128xf32, #tpu.memory_space<vmem>>, vector<6x32xf32>,
    %102 = vector.extract_strided_slice %38 {offsets = [0, 5, 1, 0], sizes = [1, 1, 6, 32], strides = [1, 1, 1, 1]} : vector<2x7x7x32xf32> to vector<1x1x6x32xf32>
    %103 = vector.shape_cast %102 : vector<1x1x6x32xf32> to vector<6x32xf32>
    %c30_42 = arith.constant 30 : index
    %c32_43 = arith.constant 32 : index
    %104 = vector.load %arg15[%c30_42, %c32_43] : memref<72x128xf32, #tpu.memory_space<vmem>>, vector<6x32xf32>
    tpu.vector_store %arg15[%c30_42, %c32_43], %103 {strides = array<i32>} : memref<72x128xf32, #tpu.memory_space<vmem>>, vector<6x32xf32>,
    %105 = vector.extract_strided_slice %38 {offsets = [0, 6, 0, 0], sizes = [1, 1, 6, 32], strides = [1, 1, 1, 1]} : vector<2x7x7x32xf32> to vector<1x1x6x32xf32>
    %106 = vector.shape_cast %105 : vector<1x1x6x32xf32> to vector<6x32xf32>
    %c30_44 = arith.constant 30 : index
    %c64_45 = arith.constant 64 : index
    %107 = vector.load %arg15[%c30_44, %c64_45] : memref<72x128xf32, #tpu.memory_space<vmem>>, vector<6x32xf32>
    tpu.vector_store %arg15[%c30_44, %c64_45], %106 {strides = array<i32>} : memref<72x128xf32, #tpu.memory_space<vmem>>, vector<6x32xf32>,
    %108 = vector.extract_strided_slice %38 {offsets = [0, 6, 1, 0], sizes = [1, 1, 6, 32], strides = [1, 1, 1, 1]} : vector<2x7x7x32xf32> to vector<1x1x6x32xf32>
    %109 = vector.shape_cast %108 : vector<1x1x6x32xf32> to vector<6x32xf32>
    %c30_46 = arith.constant 30 : index
    %c96_47 = arith.constant 96 : index
    %110 = vector.load %arg15[%c30_46, %c96_47] : memref<72x128xf32, #tpu.memory_space<vmem>>, vector<6x32xf32>
    tpu.vector_store %arg15[%c30_46, %c96_47], %109 {strides = array<i32>} : memref<72x128xf32, #tpu.memory_space<vmem>>, vector<6x32xf32>,
    %111 = vector.extract_strided_slice %38 {offsets = [1, 0, 0, 0], sizes = [1, 1, 6, 32], strides = [1, 1, 1, 1]} : vector<2x7x7x32xf32> to vector<1x1x6x32xf32>
    %112 = vector.shape_cast %111 : vector<1x1x6x32xf32> to vector<6x32xf32>
    %c36 = arith.constant 36 : index
    %c0_48 = arith.constant 0 : index
    %113 = vector.load %arg15[%c36, %c0_48] : memref<72x128xf32, #tpu.memory_space<vmem>>, vector<6x32xf32>
    tpu.vector_store %arg15[%c36, %c0_48], %112 {strides = array<i32>} : memref<72x128xf32, #tpu.memory_space<vmem>>, vector<6x32xf32>,
    %114 = vector.extract_strided_slice %38 {offsets = [1, 0, 1, 0], sizes = [1, 1, 6, 32], strides = [1, 1, 1, 1]} : vector<2x7x7x32xf32> to vector<1x1x6x32xf32>
    %115 = vector.shape_cast %114 : vector<1x1x6x32xf32> to vector<6x32xf32>
    %c36_49 = arith.constant 36 : index
    %c32_50 = arith.constant 32 : index
    %116 = vector.load %arg15[%c36_49, %c32_50] : memref<72x128xf32, #tpu.memory_space<vmem>>, vector<6x32xf32>
    tpu.vector_store %arg15[%c36_49, %c32_50], %115 {strides = array<i32>} : memref<72x128xf32, #tpu.memory_space<vmem>>, vector<6x32xf32>,
    %117 = vector.extract_strided_slice %38 {offsets = [1, 1, 0, 0], sizes = [1, 1, 6, 32], strides = [1, 1, 1, 1]} : vector<2x7x7x32xf32> to vector<1x1x6x32xf32>
    %118 = vector.shape_cast %117 : vector<1x1x6x32xf32> to vector<6x32xf32>
    %c36_51 = arith.constant 36 : index
    %c64_52 = arith.constant 64 : index
    %119 = vector.load %arg15[%c36_51, %c64_52] : memref<72x128xf32, #tpu.memory_space<vmem>>, vector<6x32xf32>
    tpu.vector_store %arg15[%c36_51, %c64_52], %118 {strides = array<i32>} : memref<72x128xf32, #tpu.memory_space<vmem>>, vector<6x32xf32>,
    %120 = vector.extract_strided_slice %38 {offsets = [1, 1, 1, 0], sizes = [1, 1, 6, 32], strides = [1, 1, 1, 1]} : vector<2x7x7x32xf32> to vector<1x1x6x32xf32>
    %121 = vector.shape_cast %120 : vector<1x1x6x32xf32> to vector<6x32xf32>
    %c36_53 = arith.constant 36 : index
    %c96_54 = arith.constant 96 : index
    %122 = vector.load %arg15[%c36_53, %c96_54] : memref<72x128xf32, #tpu.memory_space<vmem>>, vector<6x32xf32>
    tpu.vector_store %arg15[%c36_53, %c96_54], %121 {strides = array<i32>} : memref<72x128xf32, #tpu.memory_space<vmem>>, vector<6x32xf32>,
    %123 = vector.extract_strided_slice %38 {offsets = [1, 1, 0, 0], sizes = [1, 1, 6, 32], strides = [1, 1, 1, 1]} : vector<2x7x7x32xf32> to vector<1x1x6x32xf32>
    %124 = vector.shape_cast %123 : vector<1x1x6x32xf32> to vector<6x32xf32>
    %c42 = arith.constant 42 : index
    %c0_55 = arith.constant 0 : index
    %125 = vector.load %arg15[%c42, %c0_55] : memref<72x128xf32, #tpu.memory_space<vmem>>, vector<6x32xf32>
    tpu.vector_store %arg15[%c42, %c0_55], %124 {strides = array<i32>} : memref<72x128xf32, #tpu.memory_space<vmem>>, vector<6x32xf32>,
    %126 = vector.extract_strided_slice %38 {offsets = [1, 1, 1, 0], sizes = [1, 1, 6, 32], strides = [1, 1, 1, 1]} : vector<2x7x7x32xf32> to vector<1x1x6x32xf32>
    %127 = vector.shape_cast %126 : vector<1x1x6x32xf32> to vector<6x32xf32>
    %c42_56 = arith.constant 42 : index
    %c32_57 = arith.constant 32 : index
    %128 = vector.load %arg15[%c42_56, %c32_57] : memref<72x128xf32, #tpu.memory_space<vmem>>, vector<6x32xf32>
    tpu.vector_store %arg15[%c42_56, %c32_57], %127 {strides = array<i32>} : memref<72x128xf32, #tpu.memory_space<vmem>>, vector<6x32xf32>,
    %129 = vector.extract_strided_slice %38 {offsets = [1, 2, 0, 0], sizes = [1, 1, 6, 32], strides = [1, 1, 1, 1]} : vector<2x7x7x32xf32> to vector<1x1x6x32xf32>
    %130 = vector.shape_cast %129 : vector<1x1x6x32xf32> to vector<6x32xf32>
    %c42_58 = arith.constant 42 : index
    %c64_59 = arith.constant 64 : index
    %131 = vector.load %arg15[%c42_58, %c64_59] : memref<72x128xf32, #tpu.memory_space<vmem>>, vector<6x32xf32>
    tpu.vector_store %arg15[%c42_58, %c64_59], %130 {strides = array<i32>} : memref<72x128xf32, #tpu.memory_space<vmem>>, vector<6x32xf32>,
    %132 = vector.extract_strided_slice %38 {offsets = [1, 2, 1, 0], sizes = [1, 1, 6, 32], strides = [1, 1, 1, 1]} : vector<2x7x7x32xf32> to vector<1x1x6x32xf32>
    %133 = vector.shape_cast %132 : vector<1x1x6x32xf32> to vector<6x32xf32>
    %c42_60 = arith.constant 42 : index
    %c96_61 = arith.constant 96 : index
    %134 = vector.load %arg15[%c42_60, %c96_61] : memref<72x128xf32, #tpu.memory_space<vmem>>, vector<6x32xf32>
    tpu.vector_store %arg15[%c42_60, %c96_61], %133 {strides = array<i32>} : memref<72x128xf32, #tpu.memory_space<vmem>>, vector<6x32xf32>,
    %135 = vector.extract_strided_slice %38 {offsets = [1, 2, 0, 0], sizes = [1, 1, 6, 32], strides = [1, 1, 1, 1]} : vector<2x7x7x32xf32> to vector<1x1x6x32xf32>
    %136 = vector.shape_cast %135 : vector<1x1x6x32xf32> to vector<6x32xf32>
    %c48 = arith.constant 48 : index
    %c0_62 = arith.constant 0 : index
    %137 = vector.load %arg15[%c48, %c0_62] : memref<72x128xf32, #tpu.memory_space<vmem>>, vector<6x32xf32>
    tpu.vector_store %arg15[%c48, %c0_62], %136 {strides = array<i32>} : memref<72x128xf32, #tpu.memory_space<vmem>>, vector<6x32xf32>,
    %138 = vector.extract_strided_slice %38 {offsets = [1, 2, 1, 0], sizes = [1, 1, 6, 32], strides = [1, 1, 1, 1]} : vector<2x7x7x32xf32> to vector<1x1x6x32xf32>
    %139 = vector.shape_cast %138 : vector<1x1x6x32xf32> to vector<6x32xf32>
    %c48_63 = arith.constant 48 : index
    %c32_64 = arith.constant 32 : index
    %140 = vector.load %arg15[%c48_63, %c32_64] : memref<72x128xf32, #tpu.memory_space<vmem>>, vector<6x32xf32>
    tpu.vector_store %arg15[%c48_63, %c32_64], %139 {strides = array<i32>} : memref<72x128xf32, #tpu.memory_space<vmem>>, vector<6x32xf32>,
    %141 = vector.extract_strided_slice %38 {offsets = [1, 3, 0, 0], sizes = [1, 1, 6, 32], strides = [1, 1, 1, 1]} : vector<2x7x7x32xf32> to vector<1x1x6x32xf32>
    %142 = vector.shape_cast %141 : vector<1x1x6x32xf32> to vector<6x32xf32>
    %c48_65 = arith.constant 48 : index
    %c64_66 = arith.constant 64 : index
    %143 = vector.load %arg15[%c48_65, %c64_66] : memref<72x128xf32, #tpu.memory_space<vmem>>, vector<6x32xf32>
    tpu.vector_store %arg15[%c48_65, %c64_66], %142 {strides = array<i32>} : memref<72x128xf32, #tpu.memory_space<vmem>>, vector<6x32xf32>,
    %144 = vector.extract_strided_slice %38 {offsets = [1, 3, 1, 0], sizes = [1, 1, 6, 32], strides = [1, 1, 1, 1]} : vector<2x7x7x32xf32> to vector<1x1x6x32xf32>
    %145 = vector.shape_cast %144 : vector<1x1x6x32xf32> to vector<6x32xf32>
    %c48_67 = arith.constant 48 : index
    %c96_68 = arith.constant 96 : index
    %146 = vector.load %arg15[%c48_67, %c96_68] : memref<72x128xf32, #tpu.memory_space<vmem>>, vector<6x32xf32>
    tpu.vector_store %arg15[%c48_67, %c96_68], %145 {strides = array<i32>} : memref<72x128xf32, #tpu.memory_space<vmem>>, vector<6x32xf32>,
    %147 = vector.extract_strided_slice %38 {offsets = [1, 3, 0, 0], sizes = [1, 1, 6, 32], strides = [1, 1, 1, 1]} : vector<2x7x7x32xf32> to vector<1x1x6x32xf32>
    %148 = vector.shape_cast %147 : vector<1x1x6x32xf32> to vector<6x32xf32>
    %c54 = arith.constant 54 : index
    %c0_69 = arith.constant 0 : index
    %149 = vector.load %arg15[%c54, %c0_69] : memref<72x128xf32, #tpu.memory_space<vmem>>, vector<6x32xf32>
    tpu.vector_store %arg15[%c54, %c0_69], %148 {strides = array<i32>} : memref<72x128xf32, #tpu.memory_space<vmem>>, vector<6x32xf32>,
    %150 = vector.extract_strided_slice %38 {offsets = [1, 3, 1, 0], sizes = [1, 1, 6, 32], strides = [1, 1, 1, 1]} : vector<2x7x7x32xf32> to vector<1x1x6x32xf32>
    %151 = vector.shape_cast %150 : vector<1x1x6x32xf32> to vector<6x32xf32>
    %c54_70 = arith.constant 54 : index
    %c32_71 = arith.constant 32 : index
    %152 = vector.load %arg15[%c54_70, %c32_71] : memref<72x128xf32, #tpu.memory_space<vmem>>, vector<6x32xf32>
    tpu.vector_store %arg15[%c54_70, %c32_71], %151 {strides = array<i32>} : memref<72x128xf32, #tpu.memory_space<vmem>>, vector<6x32xf32>,
    %153 = vector.extract_strided_slice %38 {offsets = [1, 4, 0, 0], sizes = [1, 1, 6, 32], strides = [1, 1, 1, 1]} : vector<2x7x7x32xf32> to vector<1x1x6x32xf32>
    %154 = vector.shape_cast %153 : vector<1x1x6x32xf32> to vector<6x32xf32>
    %c54_72 = arith.constant 54 : index
    %c64_73 = arith.constant 64 : index
    %155 = vector.load %arg15[%c54_72, %c64_73] : memref<72x128xf32, #tpu.memory_space<vmem>>, vector<6x32xf32>
    tpu.vector_store %arg15[%c54_72, %c64_73], %154 {strides = array<i32>} : memref<72x128xf32, #tpu.memory_space<vmem>>, vector<6x32xf32>,
    %156 = vector.extract_strided_slice %38 {offsets = [1, 4, 1, 0], sizes = [1, 1, 6, 32], strides = [1, 1, 1, 1]} : vector<2x7x7x32xf32> to vector<1x1x6x32xf32>
    %157 = vector.shape_cast %156 : vector<1x1x6x32xf32> to vector<6x32xf32>
    %c54_74 = arith.constant 54 : index
    %c96_75 = arith.constant 96 : index
    %158 = vector.load %arg15[%c54_74, %c96_75] : memref<72x128xf32, #tpu.memory_space<vmem>>, vector<6x32xf32>
    tpu.vector_store %arg15[%c54_74, %c96_75], %157 {strides = array<i32>} : memref<72x128xf32, #tpu.memory_space<vmem>>, vector<6x32xf32>,
    %159 = vector.extract_strided_slice %38 {offsets = [1, 4, 0, 0], sizes = [1, 1, 6, 32], strides = [1, 1, 1, 1]} : vector<2x7x7x32xf32> to vector<1x1x6x32xf32>
    %160 = vector.shape_cast %159 : vector<1x1x6x32xf32> to vector<6x32xf32>
    %c60 = arith.constant 60 : index
    %c0_76 = arith.constant 0 : index
    %161 = vector.load %arg15[%c60, %c0_76] : memref<72x128xf32, #tpu.memory_space<vmem>>, vector<6x32xf32>
    tpu.vector_store %arg15[%c60, %c0_76], %160 {strides = array<i32>} : memref<72x128xf32, #tpu.memory_space<vmem>>, vector<6x32xf32>,
    %162 = vector.extract_strided_slice %38 {offsets = [1, 4, 1, 0], sizes = [1, 1, 6, 32], strides = [1, 1, 1, 1]} : vector<2x7x7x32xf32> to vector<1x1x6x32xf32>
    %163 = vector.shape_cast %162 : vector<1x1x6x32xf32> to vector<6x32xf32>
    %c60_77 = arith.constant 60 : index
    %c32_78 = arith.constant 32 : index
    %164 = vector.load %arg15[%c60_77, %c32_78] : memref<72x128xf32, #tpu.memory_space<vmem>>, vector<6x32xf32>
    tpu.vector_store %arg15[%c60_77, %c32_78], %163 {strides = array<i32>} : memref<72x128xf32, #tpu.memory_space<vmem>>, vector<6x32xf32>,
    %165 = vector.extract_strided_slice %38 {offsets = [1, 5, 0, 0], sizes = [1, 1, 6, 32], strides = [1, 1, 1, 1]} : vector<2x7x7x32xf32> to vector<1x1x6x32xf32>
    %166 = vector.shape_cast %165 : vector<1x1x6x32xf32> to vector<6x32xf32>
    %c60_79 = arith.constant 60 : index
    %c64_80 = arith.constant 64 : index
    %167 = vector.load %arg15[%c60_79, %c64_80] : memref<72x128xf32, #tpu.memory_space<vmem>>, vector<6x32xf32>
    tpu.vector_store %arg15[%c60_79, %c64_80], %166 {strides = array<i32>} : memref<72x128xf32, #tpu.memory_space<vmem>>, vector<6x32xf32>,
    %168 = vector.extract_strided_slice %38 {offsets = [1, 5, 1, 0], sizes = [1, 1, 6, 32], strides = [1, 1, 1, 1]} : vector<2x7x7x32xf32> to vector<1x1x6x32xf32>
    %169 = vector.shape_cast %168 : vector<1x1x6x32xf32> to vector<6x32xf32>
    %c60_81 = arith.constant 60 : index
    %c96_82 = arith.constant 96 : index
    %170 = vector.load %arg15[%c60_81, %c96_82] : memref<72x128xf32, #tpu.memory_space<vmem>>, vector<6x32xf32>
    tpu.vector_store %arg15[%c60_81, %c96_82], %169 {strides = array<i32>} : memref<72x128xf32, #tpu.memory_space<vmem>>, vector<6x32xf32>,
    %171 = vector.extract_strided_slice %38 {offsets = [1, 5, 0, 0], sizes = [1, 1, 6, 32], strides = [1, 1, 1, 1]} : vector<2x7x7x32xf32> to vector<1x1x6x32xf32>
    %172 = vector.shape_cast %171 : vector<1x1x6x32xf32> to vector<6x32xf32>
    %c66 = arith.constant 66 : index
    %c0_83 = arith.constant 0 : index
    %173 = vector.load %arg15[%c66, %c0_83] : memref<72x128xf32, #tpu.memory_space<vmem>>, vector<6x32xf32>
    tpu.vector_store %arg15[%c66, %c0_83], %172 {strides = array<i32>} : memref<72x128xf32, #tpu.memory_space<vmem>>, vector<6x32xf32>,
    %174 = vector.extract_strided_slice %38 {offsets = [1, 5, 1, 0], sizes = [1, 1, 6, 32], strides = [1, 1, 1, 1]} : vector<2x7x7x32xf32> to vector<1x1x6x32xf32>
    %175 = vector.shape_cast %174 : vector<1x1x6x32xf32> to vector<6x32xf32>
    %c66_84 = arith.constant 66 : index
    %c32_85 = arith.constant 32 : index
    %176 = vector.load %arg15[%c66_84, %c32_85] : memref<72x128xf32, #tpu.memory_space<vmem>>, vector<6x32xf32>
    tpu.vector_store %arg15[%c66_84, %c32_85], %175 {strides = array<i32>} : memref<72x128xf32, #tpu.memory_space<vmem>>, vector<6x32xf32>,
    %177 = vector.extract_strided_slice %38 {offsets = [1, 6, 0, 0], sizes = [1, 1, 6, 32], strides = [1, 1, 1, 1]} : vector<2x7x7x32xf32> to vector<1x1x6x32xf32>
    %178 = vector.shape_cast %177 : vector<1x1x6x32xf32> to vector<6x32xf32>
    %c66_86 = arith.constant 66 : index
    %c64_87 = arith.constant 64 : index
    %179 = vector.load %arg15[%c66_86, %c64_87] : memref<72x128xf32, #tpu.memory_space<vmem>>, vector<6x32xf32>
    tpu.vector_store %arg15[%c66_86, %c64_87], %178 {strides = array<i32>} : memref<72x128xf32, #tpu.memory_space<vmem>>, vector<6x32xf32>,
    %180 = vector.extract_strided_slice %38 {offsets = [1, 6, 1, 0], sizes = [1, 1, 6, 32], strides = [1, 1, 1, 1]} : vector<2x7x7x32xf32> to vector<1x1x6x32xf32>
    %181 = vector.shape_cast %180 : vector<1x1x6x32xf32> to vector<6x32xf32>
    %c66_88 = arith.constant 66 : index
    %c96_89 = arith.constant 96 : index
    %182 = vector.load %arg15[%c66_88, %c96_89] : memref<72x128xf32, #tpu.memory_space<vmem>>, vector<6x32xf32>
    tpu.vector_store %arg15[%c66_88, %c96_89], %181 {strides = array<i32>} : memref<72x128xf32, #tpu.memory_space<vmem>>, vector<6x32xf32>,
    %c0_90 = arith.constant 0 : index
    %c0_91 = arith.constant 0 : index
    %183 = vector.load %arg15[%c0_90, %c0_91] : memref<72x128xf32, #tpu.memory_space<vmem>>, vector<72x128xf32>
    %184 = arith.truncf %183 : vector<72x128xf32> to vector<72x128xbf16>
    %c0_92 = arith.constant 0 : index
    %c0_93 = arith.constant 0 : index
    %185 = vector.load %arg4[%c0_92, %c0_93] : memref<128x64xbf16, #tpu.memory_space<vmem>>, vector<128x64xbf16>
    %cst_94 = arith.constant dense<0.000000e+00> : vector<72x64xf32>
    %186 = tpu.matmul %184, %185, %cst_94 {dimension_numbers = #tpu.dot_dimension_numbers<[1], [0], [0], [1], [0, 0, 1, 1], [], []>} : vector<72x128xbf16>, vector<128x64xbf16>, vector<72x64xf32> -> vector<72x64xf32>
    %c0_95 = arith.constant 0 : index
    %c0_96 = arith.constant 0 : index
    %187 = vector.load %arg5[%c0_95, %c0_96] : memref<1x64xf32, #tpu.memory_space<vmem>>, vector<1x64xf32>
    %188 = vector.broadcast %187 : vector<1x64xf32> to vector<72x64xf32>
    %189 = arith.addf %186, %188 : vector<72x64xf32>
    %c1 = arith.constant 1 : index
    %190 = memref.load %arg0[%c1] : memref<3xf32, #tpu.memory_space<smem>>
    %cst_97 = arith.constant 0.000000e+00 : f32
    %191 = vector.broadcast %cst_97 : f32 to vector<72x64xf32>
    %192 = arith.cmpf ogt, %189, %191 : vector<72x64xf32>
    %193 = vector.broadcast %190 : f32 to vector<72x64xf32>
    %194 = arith.mulf %193, %189 : vector<72x64xf32>
    %195 = arith.select %192, %189, %194 : vector<72x64xi1>, vector<72x64xf32>
    %196 = vector.extract_strided_slice %195 {offsets = [0, 0], sizes = [3, 64], strides = [1, 1]} : vector<72x64xf32> to vector<3x64xf32>
    %c0_98 = arith.constant 0 : index
    %c0_99 = arith.constant 0 : index
    %197 = vector.load %arg16[%c0_98, %c0_99] : memref<18x1024xf32, #tpu.memory_space<vmem>>, vector<3x64xf32>
    tpu.vector_store %arg16[%c0_98, %c0_99], %196 {strides = array<i32>} : memref<18x1024xf32, #tpu.memory_space<vmem>>, vector<3x64xf32>,
    %198 = vector.extract_strided_slice %195 {offsets = [1, 0], sizes = [3, 64], strides = [1, 1]} : vector<72x64xf32> to vector<3x64xf32>
    %c0_100 = arith.constant 0 : index
    %c64_101 = arith.constant 64 : index
    %199 = vector.load %arg16[%c0_100, %c64_101] : memref<18x1024xf32, #tpu.memory_space<vmem>>, vector<3x64xf32>
    tpu.vector_store %arg16[%c0_100, %c64_101], %198 {strides = array<i32>} : memref<18x1024xf32, #tpu.memory_space<vmem>>, vector<3x64xf32>,
    %200 = vector.extract_strided_slice %195 {offsets = [2, 0], sizes = [3, 64], strides = [1, 1]} : vector<72x64xf32> to vector<3x64xf32>
    %c0_102 = arith.constant 0 : index
    %c128 = arith.constant 128 : index
    %201 = vector.load %arg16[%c0_102, %c128] : memref<18x1024xf32, #tpu.memory_space<vmem>>, vector<3x64xf32>
    tpu.vector_store %arg16[%c0_102, %c128], %200 {strides = array<i32>} : memref<18x1024xf32, #tpu.memory_space<vmem>>, vector<3x64xf32>,
    %202 = vector.extract_strided_slice %195 {offsets = [3, 0], sizes = [3, 64], strides = [1, 1]} : vector<72x64xf32> to vector<3x64xf32>
    %c0_103 = arith.constant 0 : index
    %c192 = arith.constant 192 : index
    %203 = vector.load %arg16[%c0_103, %c192] : memref<18x1024xf32, #tpu.memory_space<vmem>>, vector<3x64xf32>
    tpu.vector_store %arg16[%c0_103, %c192], %202 {strides = array<i32>} : memref<18x1024xf32, #tpu.memory_space<vmem>>, vector<3x64xf32>,
    %204 = vector.extract_strided_slice %195 {offsets = [6, 0], sizes = [3, 64], strides = [1, 1]} : vector<72x64xf32> to vector<3x64xf32>
    %c0_104 = arith.constant 0 : index
    %c256 = arith.constant 256 : index
    %205 = vector.load %arg16[%c0_104, %c256] : memref<18x1024xf32, #tpu.memory_space<vmem>>, vector<3x64xf32>
    tpu.vector_store %arg16[%c0_104, %c256], %204 {strides = array<i32>} : memref<18x1024xf32, #tpu.memory_space<vmem>>, vector<3x64xf32>,
    %206 = vector.extract_strided_slice %195 {offsets = [7, 0], sizes = [3, 64], strides = [1, 1]} : vector<72x64xf32> to vector<3x64xf32>
    %c0_105 = arith.constant 0 : index
    %c320 = arith.constant 320 : index
    %207 = vector.load %arg16[%c0_105, %c320] : memref<18x1024xf32, #tpu.memory_space<vmem>>, vector<3x64xf32>
    tpu.vector_store %arg16[%c0_105, %c320], %206 {strides = array<i32>} : memref<18x1024xf32, #tpu.memory_space<vmem>>, vector<3x64xf32>,
    %208 = vector.extract_strided_slice %195 {offsets = [8, 0], sizes = [3, 64], strides = [1, 1]} : vector<72x64xf32> to vector<3x64xf32>
    %c0_106 = arith.constant 0 : index
    %c384 = arith.constant 384 : index
    %209 = vector.load %arg16[%c0_106, %c384] : memref<18x1024xf32, #tpu.memory_space<vmem>>, vector<3x64xf32>
    tpu.vector_store %arg16[%c0_106, %c384], %208 {strides = array<i32>} : memref<18x1024xf32, #tpu.memory_space<vmem>>, vector<3x64xf32>,
    %210 = vector.extract_strided_slice %195 {offsets = [9, 0], sizes = [3, 64], strides = [1, 1]} : vector<72x64xf32> to vector<3x64xf32>
    %c0_107 = arith.constant 0 : index
    %c448 = arith.constant 448 : index
    %211 = vector.load %arg16[%c0_107, %c448] : memref<18x1024xf32, #tpu.memory_space<vmem>>, vector<3x64xf32>
    tpu.vector_store %arg16[%c0_107, %c448], %210 {strides = array<i32>} : memref<18x1024xf32, #tpu.memory_space<vmem>>, vector<3x64xf32>,
    %212 = vector.extract_strided_slice %195 {offsets = [12, 0], sizes = [3, 64], strides = [1, 1]} : vector<72x64xf32> to vector<3x64xf32>
    %c0_108 = arith.constant 0 : index
    %c512 = arith.constant 512 : index
    %213 = vector.load %arg16[%c0_108, %c512] : memref<18x1024xf32, #tpu.memory_space<vmem>>, vector<3x64xf32>
    tpu.vector_store %arg16[%c0_108, %c512], %212 {strides = array<i32>} : memref<18x1024xf32, #tpu.memory_space<vmem>>, vector<3x64xf32>,
    %214 = vector.extract_strided_slice %195 {offsets = [13, 0], sizes = [3, 64], strides = [1, 1]} : vector<72x64xf32> to vector<3x64xf32>
    %c0_109 = arith.constant 0 : index
    %c576 = arith.constant 576 : index
    %215 = vector.load %arg16[%c0_109, %c576] : memref<18x1024xf32, #tpu.memory_space<vmem>>, vector<3x64xf32>
    tpu.vector_store %arg16[%c0_109, %c576], %214 {strides = array<i32>} : memref<18x1024xf32, #tpu.memory_space<vmem>>, vector<3x64xf32>,
    %216 = vector.extract_strided_slice %195 {offsets = [14, 0], sizes = [3, 64], strides = [1, 1]} : vector<72x64xf32> to vector<3x64xf32>
    %c0_110 = arith.constant 0 : index
    %c640 = arith.constant 640 : index
    %217 = vector.load %arg16[%c0_110, %c640] : memref<18x1024xf32, #tpu.memory_space<vmem>>, vector<3x64xf32>
    tpu.vector_store %arg16[%c0_110, %c640], %216 {strides = array<i32>} : memref<18x1024xf32, #tpu.memory_space<vmem>>, vector<3x64xf32>,
    %218 = vector.extract_strided_slice %195 {offsets = [15, 0], sizes = [3, 64], strides = [1, 1]} : vector<72x64xf32> to vector<3x64xf32>
    %c0_111 = arith.constant 0 : index
    %c704 = arith.constant 704 : index
    %219 = vector.load %arg16[%c0_111, %c704] : memref<18x1024xf32, #tpu.memory_space<vmem>>, vector<3x64xf32>
    tpu.vector_store %arg16[%c0_111, %c704], %218 {strides = array<i32>} : memref<18x1024xf32, #tpu.memory_space<vmem>>, vector<3x64xf32>,
    %220 = vector.extract_strided_slice %195 {offsets = [18, 0], sizes = [3, 64], strides = [1, 1]} : vector<72x64xf32> to vector<3x64xf32>
    %c0_112 = arith.constant 0 : index
    %c768 = arith.constant 768 : index
    %221 = vector.load %arg16[%c0_112, %c768] : memref<18x1024xf32, #tpu.memory_space<vmem>>, vector<3x64xf32>
    tpu.vector_store %arg16[%c0_112, %c768], %220 {strides = array<i32>} : memref<18x1024xf32, #tpu.memory_space<vmem>>, vector<3x64xf32>,
    %222 = vector.extract_strided_slice %195 {offsets = [19, 0], sizes = [3, 64], strides = [1, 1]} : vector<72x64xf32> to vector<3x64xf32>
    %c0_113 = arith.constant 0 : index
    %c832 = arith.constant 832 : index
    %223 = vector.load %arg16[%c0_113, %c832] : memref<18x1024xf32, #tpu.memory_space<vmem>>, vector<3x64xf32>
    tpu.vector_store %arg16[%c0_113, %c832], %222 {strides = array<i32>} : memref<18x1024xf32, #tpu.memory_space<vmem>>, vector<3x64xf32>,
    %224 = vector.extract_strided_slice %195 {offsets = [20, 0], sizes = [3, 64], strides = [1, 1]} : vector<72x64xf32> to vector<3x64xf32>
    %c0_114 = arith.constant 0 : index
    %c896 = arith.constant 896 : index
    %225 = vector.load %arg16[%c0_114, %c896] : memref<18x1024xf32, #tpu.memory_space<vmem>>, vector<3x64xf32>
    tpu.vector_store %arg16[%c0_114, %c896], %224 {strides = array<i32>} : memref<18x1024xf32, #tpu.memory_space<vmem>>, vector<3x64xf32>,
    %226 = vector.extract_strided_slice %195 {offsets = [21, 0], sizes = [3, 64], strides = [1, 1]} : vector<72x64xf32> to vector<3x64xf32>
    %c0_115 = arith.constant 0 : index
    %c960 = arith.constant 960 : index
    %227 = vector.load %arg16[%c0_115, %c960] : memref<18x1024xf32, #tpu.memory_space<vmem>>, vector<3x64xf32>
    tpu.vector_store %arg16[%c0_115, %c960], %226 {strides = array<i32>} : memref<18x1024xf32, #tpu.memory_space<vmem>>, vector<3x64xf32>,
    %228 = vector.extract_strided_slice %195 {offsets = [6, 0], sizes = [3, 64], strides = [1, 1]} : vector<72x64xf32> to vector<3x64xf32>
    %c3 = arith.constant 3 : index
    %c0_116 = arith.constant 0 : index
    %229 = vector.load %arg16[%c3, %c0_116] : memref<18x1024xf32, #tpu.memory_space<vmem>>, vector<3x64xf32>
    tpu.vector_store %arg16[%c3, %c0_116], %228 {strides = array<i32>} : memref<18x1024xf32, #tpu.memory_space<vmem>>, vector<3x64xf32>,
    %230 = vector.extract_strided_slice %195 {offsets = [7, 0], sizes = [3, 64], strides = [1, 1]} : vector<72x64xf32> to vector<3x64xf32>
    %c3_117 = arith.constant 3 : index
    %c64_118 = arith.constant 64 : index
    %231 = vector.load %arg16[%c3_117, %c64_118] : memref<18x1024xf32, #tpu.memory_space<vmem>>, vector<3x64xf32>
    tpu.vector_store %arg16[%c3_117, %c64_118], %230 {strides = array<i32>} : memref<18x1024xf32, #tpu.memory_space<vmem>>, vector<3x64xf32>,
    %232 = vector.extract_strided_slice %195 {offsets = [8, 0], sizes = [3, 64], strides = [1, 1]} : vector<72x64xf32> to vector<3x64xf32>
    %c3_119 = arith.constant 3 : index
    %c128_120 = arith.constant 128 : index
    %233 = vector.load %arg16[%c3_119, %c128_120] : memref<18x1024xf32, #tpu.memory_space<vmem>>, vector<3x64xf32>
    tpu.vector_store %arg16[%c3_119, %c128_120], %232 {strides = array<i32>} : memref<18x1024xf32, #tpu.memory_space<vmem>>, vector<3x64xf32>,
    %234 = vector.extract_strided_slice %195 {offsets = [9, 0], sizes = [3, 64], strides = [1, 1]} : vector<72x64xf32> to vector<3x64xf32>
    %c3_121 = arith.constant 3 : index
    %c192_122 = arith.constant 192 : index
    %235 = vector.load %arg16[%c3_121, %c192_122] : memref<18x1024xf32, #tpu.memory_space<vmem>>, vector<3x64xf32>
    tpu.vector_store %arg16[%c3_121, %c192_122], %234 {strides = array<i32>} : memref<18x1024xf32, #tpu.memory_space<vmem>>, vector<3x64xf32>,
    %236 = vector.extract_strided_slice %195 {offsets = [12, 0], sizes = [3, 64], strides = [1, 1]} : vector<72x64xf32> to vector<3x64xf32>
    %c3_123 = arith.constant 3 : index
    %c256_124 = arith.constant 256 : index
    %237 = vector.load %arg16[%c3_123, %c256_124] : memref<18x1024xf32, #tpu.memory_space<vmem>>, vector<3x64xf32>
    tpu.vector_store %arg16[%c3_123, %c256_124], %236 {strides = array<i32>} : memref<18x1024xf32, #tpu.memory_space<vmem>>, vector<3x64xf32>,
    %238 = vector.extract_strided_slice %195 {offsets = [13, 0], sizes = [3, 64], strides = [1, 1]} : vector<72x64xf32> to vector<3x64xf32>
    %c3_125 = arith.constant 3 : index
    %c320_126 = arith.constant 320 : index
    %239 = vector.load %arg16[%c3_125, %c320_126] : memref<18x1024xf32, #tpu.memory_space<vmem>>, vector<3x64xf32>
    tpu.vector_store %arg16[%c3_125, %c320_126], %238 {strides = array<i32>} : memref<18x1024xf32, #tpu.memory_space<vmem>>, vector<3x64xf32>,
    %240 = vector.extract_strided_slice %195 {offsets = [14, 0], sizes = [3, 64], strides = [1, 1]} : vector<72x64xf32> to vector<3x64xf32>
    %c3_127 = arith.constant 3 : index
    %c384_128 = arith.constant 384 : index
    %241 = vector.load %arg16[%c3_127, %c384_128] : memref<18x1024xf32, #tpu.memory_space<vmem>>, vector<3x64xf32>
    tpu.vector_store %arg16[%c3_127, %c384_128], %240 {strides = array<i32>} : memref<18x1024xf32, #tpu.memory_space<vmem>>, vector<3x64xf32>,
    %242 = vector.extract_strided_slice %195 {offsets = [15, 0], sizes = [3, 64], strides = [1, 1]} : vector<72x64xf32> to vector<3x64xf32>
    %c3_129 = arith.constant 3 : index
    %c448_130 = arith.constant 448 : index
    %243 = vector.load %arg16[%c3_129, %c448_130] : memref<18x1024xf32, #tpu.memory_space<vmem>>, vector<3x64xf32>
    tpu.vector_store %arg16[%c3_129, %c448_130], %242 {strides = array<i32>} : memref<18x1024xf32, #tpu.memory_space<vmem>>, vector<3x64xf32>,
    %244 = vector.extract_strided_slice %195 {offsets = [18, 0], sizes = [3, 64], strides = [1, 1]} : vector<72x64xf32> to vector<3x64xf32>
    %c3_131 = arith.constant 3 : index
    %c512_132 = arith.constant 512 : index
    %245 = vector.load %arg16[%c3_131, %c512_132] : memref<18x1024xf32, #tpu.memory_space<vmem>>, vector<3x64xf32>
    tpu.vector_store %arg16[%c3_131, %c512_132], %244 {strides = array<i32>} : memref<18x1024xf32, #tpu.memory_space<vmem>>, vector<3x64xf32>,
    %246 = vector.extract_strided_slice %195 {offsets = [19, 0], sizes = [3, 64], strides = [1, 1]} : vector<72x64xf32> to vector<3x64xf32>
    %c3_133 = arith.constant 3 : index
    %c576_134 = arith.constant 576 : index
    %247 = vector.load %arg16[%c3_133, %c576_134] : memref<18x1024xf32, #tpu.memory_space<vmem>>, vector<3x64xf32>
    tpu.vector_store %arg16[%c3_133, %c576_134], %246 {strides = array<i32>} : memref<18x1024xf32, #tpu.memory_space<vmem>>, vector<3x64xf32>,
    %248 = vector.extract_strided_slice %195 {offsets = [20, 0], sizes = [3, 64], strides = [1, 1]} : vector<72x64xf32> to vector<3x64xf32>
    %c3_135 = arith.constant 3 : index
    %c640_136 = arith.constant 640 : index
    %249 = vector.load %arg16[%c3_135, %c640_136] : memref<18x1024xf32, #tpu.memory_space<vmem>>, vector<3x64xf32>
    tpu.vector_store %arg16[%c3_135, %c640_136], %248 {strides = array<i32>} : memref<18x1024xf32, #tpu.memory_space<vmem>>, vector<3x64xf32>,
    %250 = vector.extract_strided_slice %195 {offsets = [21, 0], sizes = [3, 64], strides = [1, 1]} : vector<72x64xf32> to vector<3x64xf32>
    %c3_137 = arith.constant 3 : index
    %c704_138 = arith.constant 704 : index
    %251 = vector.load %arg16[%c3_137, %c704_138] : memref<18x1024xf32, #tpu.memory_space<vmem>>, vector<3x64xf32>
    tpu.vector_store %arg16[%c3_137, %c704_138], %250 {strides = array<i32>} : memref<18x1024xf32, #tpu.memory_space<vmem>>, vector<3x64xf32>,
    %252 = vector.extract_strided_slice %195 {offsets = [24, 0], sizes = [3, 64], strides = [1, 1]} : vector<72x64xf32> to vector<3x64xf32>
    %c3_139 = arith.constant 3 : index
    %c768_140 = arith.constant 768 : index
    %253 = vector.load %arg16[%c3_139, %c768_140] : memref<18x1024xf32, #tpu.memory_space<vmem>>, vector<3x64xf32>
    tpu.vector_store %arg16[%c3_139, %c768_140], %252 {strides = array<i32>} : memref<18x1024xf32, #tpu.memory_space<vmem>>, vector<3x64xf32>,
    %254 = vector.extract_strided_slice %195 {offsets = [25, 0], sizes = [3, 64], strides = [1, 1]} : vector<72x64xf32> to vector<3x64xf32>
    %c3_141 = arith.constant 3 : index
    %c832_142 = arith.constant 832 : index
    %255 = vector.load %arg16[%c3_141, %c832_142] : memref<18x1024xf32, #tpu.memory_space<vmem>>, vector<3x64xf32>
    tpu.vector_store %arg16[%c3_141, %c832_142], %254 {strides = array<i32>} : memref<18x1024xf32, #tpu.memory_space<vmem>>, vector<3x64xf32>,
    %256 = vector.extract_strided_slice %195 {offsets = [26, 0], sizes = [3, 64], strides = [1, 1]} : vector<72x64xf32> to vector<3x64xf32>
    %c3_143 = arith.constant 3 : index
    %c896_144 = arith.constant 896 : index
    %257 = vector.load %arg16[%c3_143, %c896_144] : memref<18x1024xf32, #tpu.memory_space<vmem>>, vector<3x64xf32>
    tpu.vector_store %arg16[%c3_143, %c896_144], %256 {strides = array<i32>} : memref<18x1024xf32, #tpu.memory_space<vmem>>, vector<3x64xf32>,
    %258 = vector.extract_strided_slice %195 {offsets = [27, 0], sizes = [3, 64], strides = [1, 1]} : vector<72x64xf32> to vector<3x64xf32>
    %c3_145 = arith.constant 3 : index
    %c960_146 = arith.constant 960 : index
    %259 = vector.load %arg16[%c3_145, %c960_146] : memref<18x1024xf32, #tpu.memory_space<vmem>>, vector<3x64xf32>
    tpu.vector_store %arg16[%c3_145, %c960_146], %258 {strides = array<i32>} : memref<18x1024xf32, #tpu.memory_space<vmem>>, vector<3x64xf32>,
    %260 = vector.extract_strided_slice %195 {offsets = [12, 0], sizes = [3, 64], strides = [1, 1]} : vector<72x64xf32> to vector<3x64xf32>
    %c6_147 = arith.constant 6 : index
    %c0_148 = arith.constant 0 : index
    %261 = vector.load %arg16[%c6_147, %c0_148] : memref<18x1024xf32, #tpu.memory_space<vmem>>, vector<3x64xf32>
    tpu.vector_store %arg16[%c6_147, %c0_148], %260 {strides = array<i32>} : memref<18x1024xf32, #tpu.memory_space<vmem>>, vector<3x64xf32>,
    %262 = vector.extract_strided_slice %195 {offsets = [13, 0], sizes = [3, 64], strides = [1, 1]} : vector<72x64xf32> to vector<3x64xf32>
    %c6_149 = arith.constant 6 : index
    %c64_150 = arith.constant 64 : index
    %263 = vector.load %arg16[%c6_149, %c64_150] : memref<18x1024xf32, #tpu.memory_space<vmem>>, vector<3x64xf32>
    tpu.vector_store %arg16[%c6_149, %c64_150], %262 {strides = array<i32>} : memref<18x1024xf32, #tpu.memory_space<vmem>>, vector<3x64xf32>,
    %264 = vector.extract_strided_slice %195 {offsets = [14, 0], sizes = [3, 64], strides = [1, 1]} : vector<72x64xf32> to vector<3x64xf32>
    %c6_151 = arith.constant 6 : index
    %c128_152 = arith.constant 128 : index
    %265 = vector.load %arg16[%c6_151, %c128_152] : memref<18x1024xf32, #tpu.memory_space<vmem>>, vector<3x64xf32>
    tpu.vector_store %arg16[%c6_151, %c128_152], %264 {strides = array<i32>} : memref<18x1024xf32, #tpu.memory_space<vmem>>, vector<3x64xf32>,
    %266 = vector.extract_strided_slice %195 {offsets = [15, 0], sizes = [3, 64], strides = [1, 1]} : vector<72x64xf32> to vector<3x64xf32>
    %c6_153 = arith.constant 6 : index
    %c192_154 = arith.constant 192 : index
    %267 = vector.load %arg16[%c6_153, %c192_154] : memref<18x1024xf32, #tpu.memory_space<vmem>>, vector<3x64xf32>
    tpu.vector_store %arg16[%c6_153, %c192_154], %266 {strides = array<i32>} : memref<18x1024xf32, #tpu.memory_space<vmem>>, vector<3x64xf32>,
    %268 = vector.extract_strided_slice %195 {offsets = [18, 0], sizes = [3, 64], strides = [1, 1]} : vector<72x64xf32> to vector<3x64xf32>
    %c6_155 = arith.constant 6 : index
    %c256_156 = arith.constant 256 : index
    %269 = vector.load %arg16[%c6_155, %c256_156] : memref<18x1024xf32, #tpu.memory_space<vmem>>, vector<3x64xf32>
    tpu.vector_store %arg16[%c6_155, %c256_156], %268 {strides = array<i32>} : memref<18x1024xf32, #tpu.memory_space<vmem>>, vector<3x64xf32>,
    %270 = vector.extract_strided_slice %195 {offsets = [19, 0], sizes = [3, 64], strides = [1, 1]} : vector<72x64xf32> to vector<3x64xf32>
    %c6_157 = arith.constant 6 : index
    %c320_158 = arith.constant 320 : index
    %271 = vector.load %arg16[%c6_157, %c320_158] : memref<18x1024xf32, #tpu.memory_space<vmem>>, vector<3x64xf32>
    tpu.vector_store %arg16[%c6_157, %c320_158], %270 {strides = array<i32>} : memref<18x1024xf32, #tpu.memory_space<vmem>>, vector<3x64xf32>,
    %272 = vector.extract_strided_slice %195 {offsets = [20, 0], sizes = [3, 64], strides = [1, 1]} : vector<72x64xf32> to vector<3x64xf32>
    %c6_159 = arith.constant 6 : index
    %c384_160 = arith.constant 384 : index
    %273 = vector.load %arg16[%c6_159, %c384_160] : memref<18x1024xf32, #tpu.memory_space<vmem>>, vector<3x64xf32>
    tpu.vector_store %arg16[%c6_159, %c384_160], %272 {strides = array<i32>} : memref<18x1024xf32, #tpu.memory_space<vmem>>, vector<3x64xf32>,
    %274 = vector.extract_strided_slice %195 {offsets = [21, 0], sizes = [3, 64], strides = [1, 1]} : vector<72x64xf32> to vector<3x64xf32>
    %c6_161 = arith.constant 6 : index
    %c448_162 = arith.constant 448 : index
    %275 = vector.load %arg16[%c6_161, %c448_162] : memref<18x1024xf32, #tpu.memory_space<vmem>>, vector<3x64xf32>
    tpu.vector_store %arg16[%c6_161, %c448_162], %274 {strides = array<i32>} : memref<18x1024xf32, #tpu.memory_space<vmem>>, vector<3x64xf32>,
    %276 = vector.extract_strided_slice %195 {offsets = [24, 0], sizes = [3, 64], strides = [1, 1]} : vector<72x64xf32> to vector<3x64xf32>
    %c6_163 = arith.constant 6 : index
    %c512_164 = arith.constant 512 : index
    %277 = vector.load %arg16[%c6_163, %c512_164] : memref<18x1024xf32, #tpu.memory_space<vmem>>, vector<3x64xf32>
    tpu.vector_store %arg16[%c6_163, %c512_164], %276 {strides = array<i32>} : memref<18x1024xf32, #tpu.memory_space<vmem>>, vector<3x64xf32>,
    %278 = vector.extract_strided_slice %195 {offsets = [25, 0], sizes = [3, 64], strides = [1, 1]} : vector<72x64xf32> to vector<3x64xf32>
    %c6_165 = arith.constant 6 : index
    %c576_166 = arith.constant 576 : index
    %279 = vector.load %arg16[%c6_165, %c576_166] : memref<18x1024xf32, #tpu.memory_space<vmem>>, vector<3x64xf32>
    tpu.vector_store %arg16[%c6_165, %c576_166], %278 {strides = array<i32>} : memref<18x1024xf32, #tpu.memory_space<vmem>>, vector<3x64xf32>,
    %280 = vector.extract_strided_slice %195 {offsets = [26, 0], sizes = [3, 64], strides = [1, 1]} : vector<72x64xf32> to vector<3x64xf32>
    %c6_167 = arith.constant 6 : index
    %c640_168 = arith.constant 640 : index
    %281 = vector.load %arg16[%c6_167, %c640_168] : memref<18x1024xf32, #tpu.memory_space<vmem>>, vector<3x64xf32>
    tpu.vector_store %arg16[%c6_167, %c640_168], %280 {strides = array<i32>} : memref<18x1024xf32, #tpu.memory_space<vmem>>, vector<3x64xf32>,
    %282 = vector.extract_strided_slice %195 {offsets = [27, 0], sizes = [3, 64], strides = [1, 1]} : vector<72x64xf32> to vector<3x64xf32>
    %c6_169 = arith.constant 6 : index
    %c704_170 = arith.constant 704 : index
    %283 = vector.load %arg16[%c6_169, %c704_170] : memref<18x1024xf32, #tpu.memory_space<vmem>>, vector<3x64xf32>
    tpu.vector_store %arg16[%c6_169, %c704_170], %282 {strides = array<i32>} : memref<18x1024xf32, #tpu.memory_space<vmem>>, vector<3x64xf32>,
    %284 = vector.extract_strided_slice %195 {offsets = [30, 0], sizes = [3, 64], strides = [1, 1]} : vector<72x64xf32> to vector<3x64xf32>
    %c6_171 = arith.constant 6 : index
    %c768_172 = arith.constant 768 : index
    %285 = vector.load %arg16[%c6_171, %c768_172] : memref<18x1024xf32, #tpu.memory_space<vmem>>, vector<3x64xf32>
    tpu.vector_store %arg16[%c6_171, %c768_172], %284 {strides = array<i32>} : memref<18x1024xf32, #tpu.memory_space<vmem>>, vector<3x64xf32>,
    %286 = vector.extract_strided_slice %195 {offsets = [31, 0], sizes = [3, 64], strides = [1, 1]} : vector<72x64xf32> to vector<3x64xf32>
    %c6_173 = arith.constant 6 : index
    %c832_174 = arith.constant 832 : index
    %287 = vector.load %arg16[%c6_173, %c832_174] : memref<18x1024xf32, #tpu.memory_space<vmem>>, vector<3x64xf32>
    tpu.vector_store %arg16[%c6_173, %c832_174], %286 {strides = array<i32>} : memref<18x1024xf32, #tpu.memory_space<vmem>>, vector<3x64xf32>,
    %288 = vector.extract_strided_slice %195 {offsets = [32, 0], sizes = [3, 64], strides = [1, 1]} : vector<72x64xf32> to vector<3x64xf32>
    %c6_175 = arith.constant 6 : index
    %c896_176 = arith.constant 896 : index
    %289 = vector.load %arg16[%c6_175, %c896_176] : memref<18x1024xf32, #tpu.memory_space<vmem>>, vector<3x64xf32>
    tpu.vector_store %arg16[%c6_175, %c896_176], %288 {strides = array<i32>} : memref<18x1024xf32, #tpu.memory_space<vmem>>, vector<3x64xf32>,
    %290 = vector.extract_strided_slice %195 {offsets = [33, 0], sizes = [3, 64], strides = [1, 1]} : vector<72x64xf32> to vector<3x64xf32>
    %c6_177 = arith.constant 6 : index
    %c960_178 = arith.constant 960 : index
    %291 = vector.load %arg16[%c6_177, %c960_178] : memref<18x1024xf32, #tpu.memory_space<vmem>>, vector<3x64xf32>
    tpu.vector_store %arg16[%c6_177, %c960_178], %290 {strides = array<i32>} : memref<18x1024xf32, #tpu.memory_space<vmem>>, vector<3x64xf32>,
    %292 = vector.extract_strided_slice %195 {offsets = [36, 0], sizes = [3, 64], strides = [1, 1]} : vector<72x64xf32> to vector<3x64xf32>
    %c9 = arith.constant 9 : index
    %c0_179 = arith.constant 0 : index
    %293 = vector.load %arg16[%c9, %c0_179] : memref<18x1024xf32, #tpu.memory_space<vmem>>, vector<3x64xf32>
    tpu.vector_store %arg16[%c9, %c0_179], %292 {strides = array<i32>} : memref<18x1024xf32, #tpu.memory_space<vmem>>, vector<3x64xf32>,
    %294 = vector.extract_strided_slice %195 {offsets = [37, 0], sizes = [3, 64], strides = [1, 1]} : vector<72x64xf32> to vector<3x64xf32>
    %c9_180 = arith.constant 9 : index
    %c64_181 = arith.constant 64 : index
    %295 = vector.load %arg16[%c9_180, %c64_181] : memref<18x1024xf32, #tpu.memory_space<vmem>>, vector<3x64xf32>
    tpu.vector_store %arg16[%c9_180, %c64_181], %294 {strides = array<i32>} : memref<18x1024xf32, #tpu.memory_space<vmem>>, vector<3x64xf32>,
    %296 = vector.extract_strided_slice %195 {offsets = [38, 0], sizes = [3, 64], strides = [1, 1]} : vector<72x64xf32> to vector<3x64xf32>
    %c9_182 = arith.constant 9 : index
    %c128_183 = arith.constant 128 : index
    %297 = vector.load %arg16[%c9_182, %c128_183] : memref<18x1024xf32, #tpu.memory_space<vmem>>, vector<3x64xf32>
    tpu.vector_store %arg16[%c9_182, %c128_183], %296 {strides = array<i32>} : memref<18x1024xf32, #tpu.memory_space<vmem>>, vector<3x64xf32>,
    %298 = vector.extract_strided_slice %195 {offsets = [39, 0], sizes = [3, 64], strides = [1, 1]} : vector<72x64xf32> to vector<3x64xf32>
    %c9_184 = arith.constant 9 : index
    %c192_185 = arith.constant 192 : index
    %299 = vector.load %arg16[%c9_184, %c192_185] : memref<18x1024xf32, #tpu.memory_space<vmem>>, vector<3x64xf32>
    tpu.vector_store %arg16[%c9_184, %c192_185], %298 {strides = array<i32>} : memref<18x1024xf32, #tpu.memory_space<vmem>>, vector<3x64xf32>,
    %300 = vector.extract_strided_slice %195 {offsets = [42, 0], sizes = [3, 64], strides = [1, 1]} : vector<72x64xf32> to vector<3x64xf32>
    %c9_186 = arith.constant 9 : index
    %c256_187 = arith.constant 256 : index
    %301 = vector.load %arg16[%c9_186, %c256_187] : memref<18x1024xf32, #tpu.memory_space<vmem>>, vector<3x64xf32>
    tpu.vector_store %arg16[%c9_186, %c256_187], %300 {strides = array<i32>} : memref<18x1024xf32, #tpu.memory_space<vmem>>, vector<3x64xf32>,
    %302 = vector.extract_strided_slice %195 {offsets = [43, 0], sizes = [3, 64], strides = [1, 1]} : vector<72x64xf32> to vector<3x64xf32>
    %c9_188 = arith.constant 9 : index
    %c320_189 = arith.constant 320 : index
    %303 = vector.load %arg16[%c9_188, %c320_189] : memref<18x1024xf32, #tpu.memory_space<vmem>>, vector<3x64xf32>
    tpu.vector_store %arg16[%c9_188, %c320_189], %302 {strides = array<i32>} : memref<18x1024xf32, #tpu.memory_space<vmem>>, vector<3x64xf32>,
    %304 = vector.extract_strided_slice %195 {offsets = [44, 0], sizes = [3, 64], strides = [1, 1]} : vector<72x64xf32> to vector<3x64xf32>
    %c9_190 = arith.constant 9 : index
    %c384_191 = arith.constant 384 : index
    %305 = vector.load %arg16[%c9_190, %c384_191] : memref<18x1024xf32, #tpu.memory_space<vmem>>, vector<3x64xf32>
    tpu.vector_store %arg16[%c9_190, %c384_191], %304 {strides = array<i32>} : memref<18x1024xf32, #tpu.memory_space<vmem>>, vector<3x64xf32>,
    %306 = vector.extract_strided_slice %195 {offsets = [45, 0], sizes = [3, 64], strides = [1, 1]} : vector<72x64xf32> to vector<3x64xf32>
    %c9_192 = arith.constant 9 : index
    %c448_193 = arith.constant 448 : index
    %307 = vector.load %arg16[%c9_192, %c448_193] : memref<18x1024xf32, #tpu.memory_space<vmem>>, vector<3x64xf32>
    tpu.vector_store %arg16[%c9_192, %c448_193], %306 {strides = array<i32>} : memref<18x1024xf32, #tpu.memory_space<vmem>>, vector<3x64xf32>,
    %308 = vector.extract_strided_slice %195 {offsets = [48, 0], sizes = [3, 64], strides = [1, 1]} : vector<72x64xf32> to vector<3x64xf32>
    %c9_194 = arith.constant 9 : index
    %c512_195 = arith.constant 512 : index
    %309 = vector.load %arg16[%c9_194, %c512_195] : memref<18x1024xf32, #tpu.memory_space<vmem>>, vector<3x64xf32>
    tpu.vector_store %arg16[%c9_194, %c512_195], %308 {strides = array<i32>} : memref<18x1024xf32, #tpu.memory_space<vmem>>, vector<3x64xf32>,
    %310 = vector.extract_strided_slice %195 {offsets = [49, 0], sizes = [3, 64], strides = [1, 1]} : vector<72x64xf32> to vector<3x64xf32>
    %c9_196 = arith.constant 9 : index
    %c576_197 = arith.constant 576 : index
    %311 = vector.load %arg16[%c9_196, %c576_197] : memref<18x1024xf32, #tpu.memory_space<vmem>>, vector<3x64xf32>
    tpu.vector_store %arg16[%c9_196, %c576_197], %310 {strides = array<i32>} : memref<18x1024xf32, #tpu.memory_space<vmem>>, vector<3x64xf32>,
    %312 = vector.extract_strided_slice %195 {offsets = [50, 0], sizes = [3, 64], strides = [1, 1]} : vector<72x64xf32> to vector<3x64xf32>
    %c9_198 = arith.constant 9 : index
    %c640_199 = arith.constant 640 : index
    %313 = vector.load %arg16[%c9_198, %c640_199] : memref<18x1024xf32, #tpu.memory_space<vmem>>, vector<3x64xf32>
    tpu.vector_store %arg16[%c9_198, %c640_199], %312 {strides = array<i32>} : memref<18x1024xf32, #tpu.memory_space<vmem>>, vector<3x64xf32>,
    %314 = vector.extract_strided_slice %195 {offsets = [51, 0], sizes = [3, 64], strides = [1, 1]} : vector<72x64xf32> to vector<3x64xf32>
    %c9_200 = arith.constant 9 : index
    %c704_201 = arith.constant 704 : index
    %315 = vector.load %arg16[%c9_200, %c704_201] : memref<18x1024xf32, #tpu.memory_space<vmem>>, vector<3x64xf32>
    tpu.vector_store %arg16[%c9_200, %c704_201], %314 {strides = array<i32>} : memref<18x1024xf32, #tpu.memory_space<vmem>>, vector<3x64xf32>,
    %316 = vector.extract_strided_slice %195 {offsets = [54, 0], sizes = [3, 64], strides = [1, 1]} : vector<72x64xf32> to vector<3x64xf32>
    %c9_202 = arith.constant 9 : index
    %c768_203 = arith.constant 768 : index
    %317 = vector.load %arg16[%c9_202, %c768_203] : memref<18x1024xf32, #tpu.memory_space<vmem>>, vector<3x64xf32>
    tpu.vector_store %arg16[%c9_202, %c768_203], %316 {strides = array<i32>} : memref<18x1024xf32, #tpu.memory_space<vmem>>, vector<3x64xf32>,
    %318 = vector.extract_strided_slice %195 {offsets = [55, 0], sizes = [3, 64], strides = [1, 1]} : vector<72x64xf32> to vector<3x64xf32>
    %c9_204 = arith.constant 9 : index
    %c832_205 = arith.constant 832 : index
    %319 = vector.load %arg16[%c9_204, %c832_205] : memref<18x1024xf32, #tpu.memory_space<vmem>>, vector<3x64xf32>
    tpu.vector_store %arg16[%c9_204, %c832_205], %318 {strides = array<i32>} : memref<18x1024xf32, #tpu.memory_space<vmem>>, vector<3x64xf32>,
    %320 = vector.extract_strided_slice %195 {offsets = [56, 0], sizes = [3, 64], strides = [1, 1]} : vector<72x64xf32> to vector<3x64xf32>
    %c9_206 = arith.constant 9 : index
    %c896_207 = arith.constant 896 : index
    %321 = vector.load %arg16[%c9_206, %c896_207] : memref<18x1024xf32, #tpu.memory_space<vmem>>, vector<3x64xf32>
    tpu.vector_store %arg16[%c9_206, %c896_207], %320 {strides = array<i32>} : memref<18x1024xf32, #tpu.memory_space<vmem>>, vector<3x64xf32>,
    %322 = vector.extract_strided_slice %195 {offsets = [57, 0], sizes = [3, 64], strides = [1, 1]} : vector<72x64xf32> to vector<3x64xf32>
    %c9_208 = arith.constant 9 : index
    %c960_209 = arith.constant 960 : index
    %323 = vector.load %arg16[%c9_208, %c960_209] : memref<18x1024xf32, #tpu.memory_space<vmem>>, vector<3x64xf32>
    tpu.vector_store %arg16[%c9_208, %c960_209], %322 {strides = array<i32>} : memref<18x1024xf32, #tpu.memory_space<vmem>>, vector<3x64xf32>,
    %324 = vector.extract_strided_slice %195 {offsets = [42, 0], sizes = [3, 64], strides = [1, 1]} : vector<72x64xf32> to vector<3x64xf32>
    %c12_210 = arith.constant 12 : index
    %c0_211 = arith.constant 0 : index
    %325 = vector.load %arg16[%c12_210, %c0_211] : memref<18x1024xf32, #tpu.memory_space<vmem>>, vector<3x64xf32>
    tpu.vector_store %arg16[%c12_210, %c0_211], %324 {strides = array<i32>} : memref<18x1024xf32, #tpu.memory_space<vmem>>, vector<3x64xf32>,
    %326 = vector.extract_strided_slice %195 {offsets = [43, 0], sizes = [3, 64], strides = [1, 1]} : vector<72x64xf32> to vector<3x64xf32>
    %c12_212 = arith.constant 12 : index
    %c64_213 = arith.constant 64 : index
    %327 = vector.load %arg16[%c12_212, %c64_213] : memref<18x1024xf32, #tpu.memory_space<vmem>>, vector<3x64xf32>
    tpu.vector_store %arg16[%c12_212, %c64_213], %326 {strides = array<i32>} : memref<18x1024xf32, #tpu.memory_space<vmem>>, vector<3x64xf32>,
    %328 = vector.extract_strided_slice %195 {offsets = [44, 0], sizes = [3, 64], strides = [1, 1]} : vector<72x64xf32> to vector<3x64xf32>
    %c12_214 = arith.constant 12 : index
    %c128_215 = arith.constant 128 : index
    %329 = vector.load %arg16[%c12_214, %c128_215] : memref<18x1024xf32, #tpu.memory_space<vmem>>, vector<3x64xf32>
    tpu.vector_store %arg16[%c12_214, %c128_215], %328 {strides = array<i32>} : memref<18x1024xf32, #tpu.memory_space<vmem>>, vector<3x64xf32>,
    %330 = vector.extract_strided_slice %195 {offsets = [45, 0], sizes = [3, 64], strides = [1, 1]} : vector<72x64xf32> to vector<3x64xf32>
    %c12_216 = arith.constant 12 : index
    %c192_217 = arith.constant 192 : index
    %331 = vector.load %arg16[%c12_216, %c192_217] : memref<18x1024xf32, #tpu.memory_space<vmem>>, vector<3x64xf32>
    tpu.vector_store %arg16[%c12_216, %c192_217], %330 {strides = array<i32>} : memref<18x1024xf32, #tpu.memory_space<vmem>>, vector<3x64xf32>,
    %332 = vector.extract_strided_slice %195 {offsets = [48, 0], sizes = [3, 64], strides = [1, 1]} : vector<72x64xf32> to vector<3x64xf32>
    %c12_218 = arith.constant 12 : index
    %c256_219 = arith.constant 256 : index
    %333 = vector.load %arg16[%c12_218, %c256_219] : memref<18x1024xf32, #tpu.memory_space<vmem>>, vector<3x64xf32>
    tpu.vector_store %arg16[%c12_218, %c256_219], %332 {strides = array<i32>} : memref<18x1024xf32, #tpu.memory_space<vmem>>, vector<3x64xf32>,
    %334 = vector.extract_strided_slice %195 {offsets = [49, 0], sizes = [3, 64], strides = [1, 1]} : vector<72x64xf32> to vector<3x64xf32>
    %c12_220 = arith.constant 12 : index
    %c320_221 = arith.constant 320 : index
    %335 = vector.load %arg16[%c12_220, %c320_221] : memref<18x1024xf32, #tpu.memory_space<vmem>>, vector<3x64xf32>
    tpu.vector_store %arg16[%c12_220, %c320_221], %334 {strides = array<i32>} : memref<18x1024xf32, #tpu.memory_space<vmem>>, vector<3x64xf32>,
    %336 = vector.extract_strided_slice %195 {offsets = [50, 0], sizes = [3, 64], strides = [1, 1]} : vector<72x64xf32> to vector<3x64xf32>
    %c12_222 = arith.constant 12 : index
    %c384_223 = arith.constant 384 : index
    %337 = vector.load %arg16[%c12_222, %c384_223] : memref<18x1024xf32, #tpu.memory_space<vmem>>, vector<3x64xf32>
    tpu.vector_store %arg16[%c12_222, %c384_223], %336 {strides = array<i32>} : memref<18x1024xf32, #tpu.memory_space<vmem>>, vector<3x64xf32>,
    %338 = vector.extract_strided_slice %195 {offsets = [51, 0], sizes = [3, 64], strides = [1, 1]} : vector<72x64xf32> to vector<3x64xf32>
    %c12_224 = arith.constant 12 : index
    %c448_225 = arith.constant 448 : index
    %339 = vector.load %arg16[%c12_224, %c448_225] : memref<18x1024xf32, #tpu.memory_space<vmem>>, vector<3x64xf32>
    tpu.vector_store %arg16[%c12_224, %c448_225], %338 {strides = array<i32>} : memref<18x1024xf32, #tpu.memory_space<vmem>>, vector<3x64xf32>,
    %340 = vector.extract_strided_slice %195 {offsets = [54, 0], sizes = [3, 64], strides = [1, 1]} : vector<72x64xf32> to vector<3x64xf32>
    %c12_226 = arith.constant 12 : index
    %c512_227 = arith.constant 512 : index
    %341 = vector.load %arg16[%c12_226, %c512_227] : memref<18x1024xf32, #tpu.memory_space<vmem>>, vector<3x64xf32>
    tpu.vector_store %arg16[%c12_226, %c512_227], %340 {strides = array<i32>} : memref<18x1024xf32, #tpu.memory_space<vmem>>, vector<3x64xf32>,
    %342 = vector.extract_strided_slice %195 {offsets = [55, 0], sizes = [3, 64], strides = [1, 1]} : vector<72x64xf32> to vector<3x64xf32>
    %c12_228 = arith.constant 12 : index
    %c576_229 = arith.constant 576 : index
    %343 = vector.load %arg16[%c12_228, %c576_229] : memref<18x1024xf32, #tpu.memory_space<vmem>>, vector<3x64xf32>
    tpu.vector_store %arg16[%c12_228, %c576_229], %342 {strides = array<i32>} : memref<18x1024xf32, #tpu.memory_space<vmem>>, vector<3x64xf32>,
    %344 = vector.extract_strided_slice %195 {offsets = [56, 0], sizes = [3, 64], strides = [1, 1]} : vector<72x64xf32> to vector<3x64xf32>
    %c12_230 = arith.constant 12 : index
    %c640_231 = arith.constant 640 : index
    %345 = vector.load %arg16[%c12_230, %c640_231] : memref<18x1024xf32, #tpu.memory_space<vmem>>, vector<3x64xf32>
    tpu.vector_store %arg16[%c12_230, %c640_231], %344 {strides = array<i32>} : memref<18x1024xf32, #tpu.memory_space<vmem>>, vector<3x64xf32>,
    %346 = vector.extract_strided_slice %195 {offsets = [57, 0], sizes = [3, 64], strides = [1, 1]} : vector<72x64xf32> to vector<3x64xf32>
    %c12_232 = arith.constant 12 : index
    %c704_233 = arith.constant 704 : index
    %347 = vector.load %arg16[%c12_232, %c704_233] : memref<18x1024xf32, #tpu.memory_space<vmem>>, vector<3x64xf32>
    tpu.vector_store %arg16[%c12_232, %c704_233], %346 {strides = array<i32>} : memref<18x1024xf32, #tpu.memory_space<vmem>>, vector<3x64xf32>,
    %348 = vector.extract_strided_slice %195 {offsets = [60, 0], sizes = [3, 64], strides = [1, 1]} : vector<72x64xf32> to vector<3x64xf32>
    %c12_234 = arith.constant 12 : index
    %c768_235 = arith.constant 768 : index
    %349 = vector.load %arg16[%c12_234, %c768_235] : memref<18x1024xf32, #tpu.memory_space<vmem>>, vector<3x64xf32>
    tpu.vector_store %arg16[%c12_234, %c768_235], %348 {strides = array<i32>} : memref<18x1024xf32, #tpu.memory_space<vmem>>, vector<3x64xf32>,
    %350 = vector.extract_strided_slice %195 {offsets = [61, 0], sizes = [3, 64], strides = [1, 1]} : vector<72x64xf32> to vector<3x64xf32>
    %c12_236 = arith.constant 12 : index
    %c832_237 = arith.constant 832 : index
    %351 = vector.load %arg16[%c12_236, %c832_237] : memref<18x1024xf32, #tpu.memory_space<vmem>>, vector<3x64xf32>
    tpu.vector_store %arg16[%c12_236, %c832_237], %350 {strides = array<i32>} : memref<18x1024xf32, #tpu.memory_space<vmem>>, vector<3x64xf32>,
    %352 = vector.extract_strided_slice %195 {offsets = [62, 0], sizes = [3, 64], strides = [1, 1]} : vector<72x64xf32> to vector<3x64xf32>
    %c12_238 = arith.constant 12 : index
    %c896_239 = arith.constant 896 : index
    %353 = vector.load %arg16[%c12_238, %c896_239] : memref<18x1024xf32, #tpu.memory_space<vmem>>, vector<3x64xf32>
    tpu.vector_store %arg16[%c12_238, %c896_239], %352 {strides = array<i32>} : memref<18x1024xf32, #tpu.memory_space<vmem>>, vector<3x64xf32>,
    %354 = vector.extract_strided_slice %195 {offsets = [63, 0], sizes = [3, 64], strides = [1, 1]} : vector<72x64xf32> to vector<3x64xf32>
    %c12_240 = arith.constant 12 : index
    %c960_241 = arith.constant 960 : index
    %355 = vector.load %arg16[%c12_240, %c960_241] : memref<18x1024xf32, #tpu.memory_space<vmem>>, vector<3x64xf32>
    tpu.vector_store %arg16[%c12_240, %c960_241], %354 {strides = array<i32>} : memref<18x1024xf32, #tpu.memory_space<vmem>>, vector<3x64xf32>,
    %356 = vector.extract_strided_slice %195 {offsets = [48, 0], sizes = [3, 64], strides = [1, 1]} : vector<72x64xf32> to vector<3x64xf32>
    %c15 = arith.constant 15 : index
    %c0_242 = arith.constant 0 : index
    %357 = vector.load %arg16[%c15, %c0_242] : memref<18x1024xf32, #tpu.memory_space<vmem>>, vector<3x64xf32>
    tpu.vector_store %arg16[%c15, %c0_242], %356 {strides = array<i32>} : memref<18x1024xf32, #tpu.memory_space<vmem>>, vector<3x64xf32>,
    %358 = vector.extract_strided_slice %195 {offsets = [49, 0], sizes = [3, 64], strides = [1, 1]} : vector<72x64xf32> to vector<3x64xf32>
    %c15_243 = arith.constant 15 : index
    %c64_244 = arith.constant 64 : index
    %359 = vector.load %arg16[%c15_243, %c64_244] : memref<18x1024xf32, #tpu.memory_space<vmem>>, vector<3x64xf32>
    tpu.vector_store %arg16[%c15_243, %c64_244], %358 {strides = array<i32>} : memref<18x1024xf32, #tpu.memory_space<vmem>>, vector<3x64xf32>,
    %360 = vector.extract_strided_slice %195 {offsets = [50, 0], sizes = [3, 64], strides = [1, 1]} : vector<72x64xf32> to vector<3x64xf32>
    %c15_245 = arith.constant 15 : index
    %c128_246 = arith.constant 128 : index
    %361 = vector.load %arg16[%c15_245, %c128_246] : memref<18x1024xf32, #tpu.memory_space<vmem>>, vector<3x64xf32>
    tpu.vector_store %arg16[%c15_245, %c128_246], %360 {strides = array<i32>} : memref<18x1024xf32, #tpu.memory_space<vmem>>, vector<3x64xf32>,
    %362 = vector.extract_strided_slice %195 {offsets = [51, 0], sizes = [3, 64], strides = [1, 1]} : vector<72x64xf32> to vector<3x64xf32>
    %c15_247 = arith.constant 15 : index
    %c192_248 = arith.constant 192 : index
    %363 = vector.load %arg16[%c15_247, %c192_248] : memref<18x1024xf32, #tpu.memory_space<vmem>>, vector<3x64xf32>
    tpu.vector_store %arg16[%c15_247, %c192_248], %362 {strides = array<i32>} : memref<18x1024xf32, #tpu.memory_space<vmem>>, vector<3x64xf32>,
    %364 = vector.extract_strided_slice %195 {offsets = [54, 0], sizes = [3, 64], strides = [1, 1]} : vector<72x64xf32> to vector<3x64xf32>
    %c15_249 = arith.constant 15 : index
    %c256_250 = arith.constant 256 : index
    %365 = vector.load %arg16[%c15_249, %c256_250] : memref<18x1024xf32, #tpu.memory_space<vmem>>, vector<3x64xf32>
    tpu.vector_store %arg16[%c15_249, %c256_250], %364 {strides = array<i32>} : memref<18x1024xf32, #tpu.memory_space<vmem>>, vector<3x64xf32>,
    %366 = vector.extract_strided_slice %195 {offsets = [55, 0], sizes = [3, 64], strides = [1, 1]} : vector<72x64xf32> to vector<3x64xf32>
    %c15_251 = arith.constant 15 : index
    %c320_252 = arith.constant 320 : index
    %367 = vector.load %arg16[%c15_251, %c320_252] : memref<18x1024xf32, #tpu.memory_space<vmem>>, vector<3x64xf32>
    tpu.vector_store %arg16[%c15_251, %c320_252], %366 {strides = array<i32>} : memref<18x1024xf32, #tpu.memory_space<vmem>>, vector<3x64xf32>,
    %368 = vector.extract_strided_slice %195 {offsets = [56, 0], sizes = [3, 64], strides = [1, 1]} : vector<72x64xf32> to vector<3x64xf32>
    %c15_253 = arith.constant 15 : index
    %c384_254 = arith.constant 384 : index
    %369 = vector.load %arg16[%c15_253, %c384_254] : memref<18x1024xf32, #tpu.memory_space<vmem>>, vector<3x64xf32>
    tpu.vector_store %arg16[%c15_253, %c384_254], %368 {strides = array<i32>} : memref<18x1024xf32, #tpu.memory_space<vmem>>, vector<3x64xf32>,
    %370 = vector.extract_strided_slice %195 {offsets = [57, 0], sizes = [3, 64], strides = [1, 1]} : vector<72x64xf32> to vector<3x64xf32>
    %c15_255 = arith.constant 15 : index
    %c448_256 = arith.constant 448 : index
    %371 = vector.load %arg16[%c15_255, %c448_256] : memref<18x1024xf32, #tpu.memory_space<vmem>>, vector<3x64xf32>
    tpu.vector_store %arg16[%c15_255, %c448_256], %370 {strides = array<i32>} : memref<18x1024xf32, #tpu.memory_space<vmem>>, vector<3x64xf32>,
    %372 = vector.extract_strided_slice %195 {offsets = [60, 0], sizes = [3, 64], strides = [1, 1]} : vector<72x64xf32> to vector<3x64xf32>
    %c15_257 = arith.constant 15 : index
    %c512_258 = arith.constant 512 : index
    %373 = vector.load %arg16[%c15_257, %c512_258] : memref<18x1024xf32, #tpu.memory_space<vmem>>, vector<3x64xf32>
    tpu.vector_store %arg16[%c15_257, %c512_258], %372 {strides = array<i32>} : memref<18x1024xf32, #tpu.memory_space<vmem>>, vector<3x64xf32>,
    %374 = vector.extract_strided_slice %195 {offsets = [61, 0], sizes = [3, 64], strides = [1, 1]} : vector<72x64xf32> to vector<3x64xf32>
    %c15_259 = arith.constant 15 : index
    %c576_260 = arith.constant 576 : index
    %375 = vector.load %arg16[%c15_259, %c576_260] : memref<18x1024xf32, #tpu.memory_space<vmem>>, vector<3x64xf32>
    tpu.vector_store %arg16[%c15_259, %c576_260], %374 {strides = array<i32>} : memref<18x1024xf32, #tpu.memory_space<vmem>>, vector<3x64xf32>,
    %376 = vector.extract_strided_slice %195 {offsets = [62, 0], sizes = [3, 64], strides = [1, 1]} : vector<72x64xf32> to vector<3x64xf32>
    %c15_261 = arith.constant 15 : index
    %c640_262 = arith.constant 640 : index
    %377 = vector.load %arg16[%c15_261, %c640_262] : memref<18x1024xf32, #tpu.memory_space<vmem>>, vector<3x64xf32>
    tpu.vector_store %arg16[%c15_261, %c640_262], %376 {strides = array<i32>} : memref<18x1024xf32, #tpu.memory_space<vmem>>, vector<3x64xf32>,
    %378 = vector.extract_strided_slice %195 {offsets = [63, 0], sizes = [3, 64], strides = [1, 1]} : vector<72x64xf32> to vector<3x64xf32>
    %c15_263 = arith.constant 15 : index
    %c704_264 = arith.constant 704 : index
    %379 = vector.load %arg16[%c15_263, %c704_264] : memref<18x1024xf32, #tpu.memory_space<vmem>>, vector<3x64xf32>
    tpu.vector_store %arg16[%c15_263, %c704_264], %378 {strides = array<i32>} : memref<18x1024xf32, #tpu.memory_space<vmem>>, vector<3x64xf32>,
    %380 = vector.extract_strided_slice %195 {offsets = [66, 0], sizes = [3, 64], strides = [1, 1]} : vector<72x64xf32> to vector<3x64xf32>
    %c15_265 = arith.constant 15 : index
    %c768_266 = arith.constant 768 : index
    %381 = vector.load %arg16[%c15_265, %c768_266] : memref<18x1024xf32, #tpu.memory_space<vmem>>, vector<3x64xf32>
    tpu.vector_store %arg16[%c15_265, %c768_266], %380 {strides = array<i32>} : memref<18x1024xf32, #tpu.memory_space<vmem>>, vector<3x64xf32>,
    %382 = vector.extract_strided_slice %195 {offsets = [67, 0], sizes = [3, 64], strides = [1, 1]} : vector<72x64xf32> to vector<3x64xf32>
    %c15_267 = arith.constant 15 : index
    %c832_268 = arith.constant 832 : index
    %383 = vector.load %arg16[%c15_267, %c832_268] : memref<18x1024xf32, #tpu.memory_space<vmem>>, vector<3x64xf32>
    tpu.vector_store %arg16[%c15_267, %c832_268], %382 {strides = array<i32>} : memref<18x1024xf32, #tpu.memory_space<vmem>>, vector<3x64xf32>,
    %384 = vector.extract_strided_slice %195 {offsets = [68, 0], sizes = [3, 64], strides = [1, 1]} : vector<72x64xf32> to vector<3x64xf32>
    %c15_269 = arith.constant 15 : index
    %c896_270 = arith.constant 896 : index
    %385 = vector.load %arg16[%c15_269, %c896_270] : memref<18x1024xf32, #tpu.memory_space<vmem>>, vector<3x64xf32>
    tpu.vector_store %arg16[%c15_269, %c896_270], %384 {strides = array<i32>} : memref<18x1024xf32, #tpu.memory_space<vmem>>, vector<3x64xf32>,
    %386 = vector.extract_strided_slice %195 {offsets = [69, 0], sizes = [3, 64], strides = [1, 1]} : vector<72x64xf32> to vector<3x64xf32>
    %c15_271 = arith.constant 15 : index
    %c960_272 = arith.constant 960 : index
    %387 = vector.load %arg16[%c15_271, %c960_272] : memref<18x1024xf32, #tpu.memory_space<vmem>>, vector<3x64xf32>
    tpu.vector_store %arg16[%c15_271, %c960_272], %386 {strides = array<i32>} : memref<18x1024xf32, #tpu.memory_space<vmem>>, vector<3x64xf32>,
    %c0_273 = arith.constant 0 : index
    %c0_274 = arith.constant 0 : index
    %388 = vector.load %arg16[%c0_273, %c0_274] : memref<18x1024xf32, #tpu.memory_space<vmem>>, vector<18x1024xf32>
    %389 = arith.truncf %388 : vector<18x1024xf32> to vector<18x1024xbf16>
    %c0_275 = arith.constant 0 : index
    %c0_276 = arith.constant 0 : index
    %390 = vector.load %arg6[%c0_275, %c0_276] : memref<1024x128xbf16, #tpu.memory_space<vmem>>, vector<1024x128xbf16>
    %cst_277 = arith.constant dense<0.000000e+00> : vector<18x128xf32>
    %391 = tpu.matmul %389, %390, %cst_277 {dimension_numbers = #tpu.dot_dimension_numbers<[1], [0], [0], [1], [0, 0, 1, 1], [], []>} : vector<18x1024xbf16>, vector<1024x128xbf16>, vector<18x128xf32> -> vector<18x128xf32>
    %c0_278 = arith.constant 0 : index
    %c0_279 = arith.constant 0 : index
    %392 = vector.load %arg7[%c0_278, %c0_279] : memref<1x128xf32, #tpu.memory_space<vmem>>, vector<1x128xf32>
    %393 = vector.broadcast %392 : vector<1x128xf32> to vector<18x128xf32>
    %394 = arith.addf %391, %393 : vector<18x128xf32>
    %c2 = arith.constant 2 : index
    %395 = memref.load %arg0[%c2] : memref<3xf32, #tpu.memory_space<smem>>
    %cst_280 = arith.constant 0.000000e+00 : f32
    %396 = vector.broadcast %cst_280 : f32 to vector<18x128xf32>
    %397 = arith.cmpf ogt, %394, %396 : vector<18x128xf32>
    %398 = vector.broadcast %395 : f32 to vector<18x128xf32>
    %399 = arith.mulf %398, %394 : vector<18x128xf32>
    %400 = arith.select %397, %394, %399 : vector<18x128xi1>, vector<18x128xf32>
    %401 = vector.extract_strided_slice %400 {offsets = [0, 0], sizes = [1, 128], strides = [1, 1]} : vector<18x128xf32> to vector<1x128xf32>
    %c0_281 = arith.constant 0 : index
    %c0_282 = arith.constant 0 : index
    %402 = vector.load %arg17[%c0_281, %c0_282] : memref<2x1152xf32, #tpu.memory_space<vmem>>, vector<1x128xf32>
    tpu.vector_store %arg17[%c0_281, %c0_282], %401 {strides = array<i32>} : memref<2x1152xf32, #tpu.memory_space<vmem>>, vector<1x128xf32>,
    %403 = vector.extract_strided_slice %400 {offsets = [1, 0], sizes = [1, 128], strides = [1, 1]} : vector<18x128xf32> to vector<1x128xf32>
    %c0_283 = arith.constant 0 : index
    %c128_284 = arith.constant 128 : index
    %404 = vector.load %arg17[%c0_283, %c128_284] : memref<2x1152xf32, #tpu.memory_space<vmem>>, vector<1x128xf32>
    tpu.vector_store %arg17[%c0_283, %c128_284], %403 {strides = array<i32>} : memref<2x1152xf32, #tpu.memory_space<vmem>>, vector<1x128xf32>,
    %405 = vector.extract_strided_slice %400 {offsets = [2, 0], sizes = [1, 128], strides = [1, 1]} : vector<18x128xf32> to vector<1x128xf32>
    %c0_285 = arith.constant 0 : index
    %c256_286 = arith.constant 256 : index
    %406 = vector.load %arg17[%c0_285, %c256_286] : memref<2x1152xf32, #tpu.memory_space<vmem>>, vector<1x128xf32>
    tpu.vector_store %arg17[%c0_285, %c256_286], %405 {strides = array<i32>} : memref<2x1152xf32, #tpu.memory_space<vmem>>, vector<1x128xf32>,
    %407 = vector.extract_strided_slice %400 {offsets = [3, 0], sizes = [1, 128], strides = [1, 1]} : vector<18x128xf32> to vector<1x128xf32>
    %c0_287 = arith.constant 0 : index
    %c384_288 = arith.constant 384 : index
    %408 = vector.load %arg17[%c0_287, %c384_288] : memref<2x1152xf32, #tpu.memory_space<vmem>>, vector<1x128xf32>
    tpu.vector_store %arg17[%c0_287, %c384_288], %407 {strides = array<i32>} : memref<2x1152xf32, #tpu.memory_space<vmem>>, vector<1x128xf32>,
    %409 = vector.extract_strided_slice %400 {offsets = [4, 0], sizes = [1, 128], strides = [1, 1]} : vector<18x128xf32> to vector<1x128xf32>
    %c0_289 = arith.constant 0 : index
    %c512_290 = arith.constant 512 : index
    %410 = vector.load %arg17[%c0_289, %c512_290] : memref<2x1152xf32, #tpu.memory_space<vmem>>, vector<1x128xf32>
    tpu.vector_store %arg17[%c0_289, %c512_290], %409 {strides = array<i32>} : memref<2x1152xf32, #tpu.memory_space<vmem>>, vector<1x128xf32>,
    %411 = vector.extract_strided_slice %400 {offsets = [5, 0], sizes = [1, 128], strides = [1, 1]} : vector<18x128xf32> to vector<1x128xf32>
    %c0_291 = arith.constant 0 : index
    %c640_292 = arith.constant 640 : index
    %412 = vector.load %arg17[%c0_291, %c640_292] : memref<2x1152xf32, #tpu.memory_space<vmem>>, vector<1x128xf32>
    tpu.vector_store %arg17[%c0_291, %c640_292], %411 {strides = array<i32>} : memref<2x1152xf32, #tpu.memory_space<vmem>>, vector<1x128xf32>,
    %413 = vector.extract_strided_slice %400 {offsets = [6, 0], sizes = [1, 128], strides = [1, 1]} : vector<18x128xf32> to vector<1x128xf32>
    %c0_293 = arith.constant 0 : index
    %c768_294 = arith.constant 768 : index
    %414 = vector.load %arg17[%c0_293, %c768_294] : memref<2x1152xf32, #tpu.memory_space<vmem>>, vector<1x128xf32>
    tpu.vector_store %arg17[%c0_293, %c768_294], %413 {strides = array<i32>} : memref<2x1152xf32, #tpu.memory_space<vmem>>, vector<1x128xf32>,
    %415 = vector.extract_strided_slice %400 {offsets = [7, 0], sizes = [1, 128], strides = [1, 1]} : vector<18x128xf32> to vector<1x128xf32>
    %c0_295 = arith.constant 0 : index
    %c896_296 = arith.constant 896 : index
    %416 = vector.load %arg17[%c0_295, %c896_296] : memref<2x1152xf32, #tpu.memory_space<vmem>>, vector<1x128xf32>
    tpu.vector_store %arg17[%c0_295, %c896_296], %415 {strides = array<i32>} : memref<2x1152xf32, #tpu.memory_space<vmem>>, vector<1x128xf32>,
    %417 = vector.extract_strided_slice %400 {offsets = [8, 0], sizes = [1, 128], strides = [1, 1]} : vector<18x128xf32> to vector<1x128xf32>
    %c0_297 = arith.constant 0 : index
    %c1024 = arith.constant 1024 : index
    %418 = vector.load %arg17[%c0_297, %c1024] : memref<2x1152xf32, #tpu.memory_space<vmem>>, vector<1x128xf32>
    tpu.vector_store %arg17[%c0_297, %c1024], %417 {strides = array<i32>} : memref<2x1152xf32, #tpu.memory_space<vmem>>, vector<1x128xf32>,
    %419 = vector.extract_strided_slice %400 {offsets = [9, 0], sizes = [1, 128], strides = [1, 1]} : vector<18x128xf32> to vector<1x128xf32>
    %c1_298 = arith.constant 1 : index
    %c0_299 = arith.constant 0 : index
    %420 = vector.load %arg17[%c1_298, %c0_299] : memref<2x1152xf32, #tpu.memory_space<vmem>>, vector<1x128xf32>
    tpu.vector_store %arg17[%c1_298, %c0_299], %419 {strides = array<i32>} : memref<2x1152xf32, #tpu.memory_space<vmem>>, vector<1x128xf32>,
    %421 = vector.extract_strided_slice %400 {offsets = [10, 0], sizes = [1, 128], strides = [1, 1]} : vector<18x128xf32> to vector<1x128xf32>
    %c1_300 = arith.constant 1 : index
    %c128_301 = arith.constant 128 : index
    %422 = vector.load %arg17[%c1_300, %c128_301] : memref<2x1152xf32, #tpu.memory_space<vmem>>, vector<1x128xf32>
    tpu.vector_store %arg17[%c1_300, %c128_301], %421 {strides = array<i32>} : memref<2x1152xf32, #tpu.memory_space<vmem>>, vector<1x128xf32>,
    %423 = vector.extract_strided_slice %400 {offsets = [11, 0], sizes = [1, 128], strides = [1, 1]} : vector<18x128xf32> to vector<1x128xf32>
    %c1_302 = arith.constant 1 : index
    %c256_303 = arith.constant 256 : index
    %424 = vector.load %arg17[%c1_302, %c256_303] : memref<2x1152xf32, #tpu.memory_space<vmem>>, vector<1x128xf32>
    tpu.vector_store %arg17[%c1_302, %c256_303], %423 {strides = array<i32>} : memref<2x1152xf32, #tpu.memory_space<vmem>>, vector<1x128xf32>,
    %425 = vector.extract_strided_slice %400 {offsets = [12, 0], sizes = [1, 128], strides = [1, 1]} : vector<18x128xf32> to vector<1x128xf32>
    %c1_304 = arith.constant 1 : index
    %c384_305 = arith.constant 384 : index
    %426 = vector.load %arg17[%c1_304, %c384_305] : memref<2x1152xf32, #tpu.memory_space<vmem>>, vector<1x128xf32>
    tpu.vector_store %arg17[%c1_304, %c384_305], %425 {strides = array<i32>} : memref<2x1152xf32, #tpu.memory_space<vmem>>, vector<1x128xf32>,
    %427 = vector.extract_strided_slice %400 {offsets = [13, 0], sizes = [1, 128], strides = [1, 1]} : vector<18x128xf32> to vector<1x128xf32>
    %c1_306 = arith.constant 1 : index
    %c512_307 = arith.constant 512 : index
    %428 = vector.load %arg17[%c1_306, %c512_307] : memref<2x1152xf32, #tpu.memory_space<vmem>>, vector<1x128xf32>
    tpu.vector_store %arg17[%c1_306, %c512_307], %427 {strides = array<i32>} : memref<2x1152xf32, #tpu.memory_space<vmem>>, vector<1x128xf32>,
    %429 = vector.extract_strided_slice %400 {offsets = [14, 0], sizes = [1, 128], strides = [1, 1]} : vector<18x128xf32> to vector<1x128xf32>
    %c1_308 = arith.constant 1 : index
    %c640_309 = arith.constant 640 : index
    %430 = vector.load %arg17[%c1_308, %c640_309] : memref<2x1152xf32, #tpu.memory_space<vmem>>, vector<1x128xf32>
    tpu.vector_store %arg17[%c1_308, %c640_309], %429 {strides = array<i32>} : memref<2x1152xf32, #tpu.memory_space<vmem>>, vector<1x128xf32>,
    %431 = vector.extract_strided_slice %400 {offsets = [15, 0], sizes = [1, 128], strides = [1, 1]} : vector<18x128xf32> to vector<1x128xf32>
    %c1_310 = arith.constant 1 : index
    %c768_311 = arith.constant 768 : index
    %432 = vector.load %arg17[%c1_310, %c768_311] : memref<2x1152xf32, #tpu.memory_space<vmem>>, vector<1x128xf32>
    tpu.vector_store %arg17[%c1_310, %c768_311], %431 {strides = array<i32>} : memref<2x1152xf32, #tpu.memory_space<vmem>>, vector<1x128xf32>,
    %433 = vector.extract_strided_slice %400 {offsets = [16, 0], sizes = [1, 128], strides = [1, 1]} : vector<18x128xf32> to vector<1x128xf32>
    %c1_312 = arith.constant 1 : index
    %c896_313 = arith.constant 896 : index
    %434 = vector.load %arg17[%c1_312, %c896_313] : memref<2x1152xf32, #tpu.memory_space<vmem>>, vector<1x128xf32>
    tpu.vector_store %arg17[%c1_312, %c896_313], %433 {strides = array<i32>} : memref<2x1152xf32, #tpu.memory_space<vmem>>, vector<1x128xf32>,
    %435 = vector.extract_strided_slice %400 {offsets = [17, 0], sizes = [1, 128], strides = [1, 1]} : vector<18x128xf32> to vector<1x128xf32>
    %c1_314 = arith.constant 1 : index
    %c1024_315 = arith.constant 1024 : index
    %436 = vector.load %arg17[%c1_314, %c1024_315] : memref<2x1152xf32, #tpu.memory_space<vmem>>, vector<1x128xf32>
    tpu.vector_store %arg17[%c1_314, %c1024_315], %435 {strides = array<i32>} : memref<2x1152xf32, #tpu.memory_space<vmem>>, vector<1x128xf32>,
    %c0_316 = arith.constant 0 : index
    %c0_317 = arith.constant 0 : index
    %437 = vector.load %arg17[%c0_316, %c0_317] : memref<2x1152xf32, #tpu.memory_space<vmem>>, vector<2x1152xf32>
    %438 = arith.truncf %437 : vector<2x1152xf32> to vector<2x1152xbf16>
    %c0_318 = arith.constant 0 : index
    %c0_319 = arith.constant 0 : index
    %439 = vector.load %arg8[%c0_318, %c0_319] : memref<1152x512xbf16, #tpu.memory_space<vmem>>, vector<1152x512xbf16>
    %cst_320 = arith.constant dense<0.000000e+00> : vector<2x512xf32>
    %440 = tpu.matmul %438, %439, %cst_320 {dimension_numbers = #tpu.dot_dimension_numbers<[1], [0], [0], [1], [0, 0, 1, 1], [], []>} : vector<2x1152xbf16>, vector<1152x512xbf16>, vector<2x512xf32> -> vector<2x512xf32>
    %c0_321 = arith.constant 0 : index
    %c0_322 = arith.constant 0 : index
    %441 = vector.load %arg9[%c0_321, %c0_322] : memref<1x512xf32, #tpu.memory_space<vmem>>, vector<1x512xf32>
    %442 = vector.broadcast %441 : vector<1x512xf32> to vector<2x512xf32>
    %443 = arith.addf %440, %442 : vector<2x512xf32>
    %444 = arith.negf %443 : vector<2x512xf32>
    %445 = math.exp %444 : vector<2x512xf32>
    %cst_323 = arith.constant 1.000000e+00 : f32
    %446 = vector.broadcast %cst_323 : f32 to vector<2x512xf32>
    %447 = arith.addf %446, %445 : vector<2x512xf32>
    %448 = arith.divf %446, %447 : vector<2x512xf32>
    %449 = arith.mulf %443, %448 : vector<2x512xf32>
    %450 = arith.truncf %449 : vector<2x512xf32> to vector<2x512xbf16>
    %c0_324 = arith.constant 0 : index
    %c0_325 = arith.constant 0 : index
    %451 = vector.load %arg10[%c0_324, %c0_325] : memref<512x256xbf16, #tpu.memory_space<vmem>>, vector<512x256xbf16>
    %cst_326 = arith.constant dense<0.000000e+00> : vector<2x256xf32>
    %452 = tpu.matmul %450, %451, %cst_326 {dimension_numbers = #tpu.dot_dimension_numbers<[1], [0], [0], [1], [0, 0, 1, 1], [], []>} : vector<2x512xbf16>, vector<512x256xbf16>, vector<2x256xf32> -> vector<2x256xf32>
    %c0_327 = arith.constant 0 : index
    %c0_328 = arith.constant 0 : index
    %453 = vector.load %arg11[%c0_327, %c0_328] : memref<1x256xf32, #tpu.memory_space<vmem>>, vector<1x256xf32>
    %454 = vector.broadcast %453 : vector<1x256xf32> to vector<2x256xf32>
    %455 = arith.addf %452, %454 : vector<2x256xf32>
    %456 = arith.negf %455 : vector<2x256xf32>
    %457 = math.exp %456 : vector<2x256xf32>
    %cst_329 = arith.constant 1.000000e+00 : f32
    %458 = vector.broadcast %cst_329 : f32 to vector<2x256xf32>
    %459 = arith.addf %458, %457 : vector<2x256xf32>
    %460 = arith.divf %458, %459 : vector<2x256xf32>
    %461 = arith.mulf %455, %460 : vector<2x256xf32>
    %462 = arith.truncf %461 : vector<2x256xf32> to vector<2x256xbf16>
    %c0_330 = arith.constant 0 : index
    %c0_331 = arith.constant 0 : index
    %463 = vector.load %arg12[%c0_330, %c0_331] : memref<256x4xbf16, #tpu.memory_space<vmem>>, vector<256x4xbf16>
    %cst_332 = arith.constant dense<0.000000e+00> : vector<2x4xf32>
    %464 = tpu.matmul %462, %463, %cst_332 {dimension_numbers = #tpu.dot_dimension_numbers<[1], [0], [0], [1], [0, 0, 1, 1], [], []>} : vector<2x256xbf16>, vector<256x4xbf16>, vector<2x4xf32> -> vector<2x4xf32>
    %c0_333 = arith.constant 0 : index
    %c0_334 = arith.constant 0 : index
    %465 = vector.load %arg13[%c0_333, %c0_334] : memref<1x4xf32, #tpu.memory_space<vmem>>, vector<1x4xf32>
    %466 = vector.broadcast %465 : vector<1x4xf32> to vector<2x4xf32>
    %467 = arith.addf %464, %466 : vector<2x4xf32>
    %c0_335 = arith.constant 0 : index
    %c0_336 = arith.constant 0 : index
    %468 = vector.load %arg14[%c0_335, %c0_336] : memref<2x4xf32, #tpu.memory_space<vmem>>, vector<2x4xf32>
    tpu.vector_store %arg14[%c0_335, %c0_336], %467 {strides = array<i32>} : memref<2x4xf32, #tpu.memory_space<vmem>>, vector<2x4xf32>,
    return
  }
}

</mosaic_0001>

<bundles_post_ra>
// kernel: forward.1
= control target key start
LH: loop header
LB: loop body
LE: loop exit
PB: predicated region body
PF: predicated region fallthrough
CT: control target
= control target key end

     0   :  { %19 = vsyncpa [#allocation8], 0  ;;  %s7685_s0 = inlined_call_operand.hbm [shape: f32[3], index: 0, kind: input, shape index: {}]   ;;  %s7686_s1 = inlined_call_operand.vmem [shape: f32[2,8,8,1], index: 1, kind: input, shape index: {}]   ;;  %s7687_s2 = inlined_call_operand.hbm [shape: f32[4,32], index: 2, kind: input, shape index: {}]   ;;  %s7688_s3 = inlined_call_operand.hbm [shape: f32[1,32], index: 3, kind: input, shape index: {}]   ;;  %s7689_s4 = inlined_call_operand.vmem [shape: bf16[128,64], index: 4, kind: input, shape index: {}]   ;;  %s7690_s5 = inlined_call_operand.hbm [shape: f32[1,64], index: 5, kind: input, shape index: {}]   ;;  %s7691_s6 = inlined_call_operand.hbm [shape: bf16[1024,128], index: 6, kind: input, shape index: {}]   ;;  %s7692_s7 = inlined_call_operand.hbm [shape: f32[1,128], index: 7, kind: input, shape index: {}]   ;;  %s7693_s8 = inlined_call_operand.hbm [shape: bf16[1152,512], index: 8, kind: input, shape index: {}]   ;;  %s7694_s9 = inlined_call_operand.hbm [shape: f32[1,512], index: 9, kind: input, shape index: {}]   ;;  %s7695_s10 = inlined_call_operand.hbm [shape: bf16[512,256], index: 10, kind: input, shape index: {}]   ;;  %s7696_s11 = inlined_call_operand.hbm [shape: f32[1,256], index: 11, kind: input, shape index: {}]   ;;  %s7697_s12 = inlined_call_operand.vmem [shape: bf16[256,4], index: 12, kind: input, shape index: {}]   ;;  %s7698_s13 = inlined_call_operand.hbm [shape: f32[1,4], index: 13, kind: input, shape index: {}]   ;;  %s7699_s14 = inlined_call_operand.hbm [shape: f32[2,4], index: 14, kind: output, shape index: {}]  }
   0x1   :  { %20 = vsyncpa [#allocation6], 0 }
   0x2   :  { %21 = vsyncpa [#allocation11], 0 }
   0x3   :  { %22 = vsyncpa [#allocation14], 0 }
   0x4   :  { %23 = vsyncpa [#allocation17], 0 }
   0x5   :  { %24 = vsyncpa [#allocation20], 0 }
   0x6   :  { %25 = vsyncpa [#allocation23], 0 }
   0x7   :  { %26 = vsyncpa [#allocation7], 0  ;;  %s6688_s29 = smov [#allocation10]   ;;  %s6689_s15 = smov [#allocation13]  }
   0x8   :  { %s53_s30 = sshll.u32 %s6688_s29, 4  ;;  %s74_s16 = sshll.u32 %s6689_s15, 4  ;;  %s54_s30 = int_to_ptr.vmem [resolvable:$true] %s53_s30  ;;  %s75_s16 = int_to_ptr.vmem [resolvable:$true] %s74_s16 }
   0x9   :  { %s6452_s17 = scalar_lea.vmem %s54_s30, 16  ;;  %s6456_s18 = scalar_lea.vmem %s54_s30, 32 }
   0xa   :  { %p6453_p0 = scmp.ne.s32.totalorder %s54_s30, %s6452_s17  ;;  %p6457_p1 = scmp.lt.s32.totalorder %s54_s30, %s54_s30 }
   0xb   :  { %p6458_p2 = scmp.lt.s32.totalorder %s6456_s18, %s6452_s17 }
   0xd   :  { %p6459_p3 = por %p6458_p2, %p6457_p1 }
   0xf   :  { %p6460_p4 = pnand %p6459_p3, %p6453_p0 }
  0x11   :  { %6463 = shalt.err (!%p6460_p4)
}
  0x12   :  { %56 = dma.hbm_to_vmem [thread:$0]  %s7688_s3, 16, %s54_s30, [#allocation11]  }
  0x13   :  { %s6472_s21 = scalar_lea.vmem %s75_s16, 8192  ;;  %p6477_p6 = scmp.lt.s32.totalorder %s75_s16, %s75_s16 }
  0x14   :  { %p6473_p5 = scmp.ne.s32.totalorder %s75_s16, %s6472_s21  ;;  %p6478_p7 = scmp.lt.s32.totalorder %s6472_s21, %s6472_s21 }
  0x16   :  { %p6479_p8 = por %p6478_p7, %p6477_p6 }
  0x18   :  { %p6480_p9 = pnand %p6479_p8, %p6473_p5 }
  0x1a   :  { %6483 = shalt.err (!%p6480_p9)
}
  0x1b   :  { %s6690_s22 = smov 64   ;;  %s6691_s23 = smov 4  }
  0x1c   :  { %80 = dma.hbm_to_vmem [thread:$0]  %s7691_s6, 8192, %s75_s16, [#allocation14], %s6690_s22, %s6690_s22, %s6691_s23  }
  0x1d   :  { %s6692_s26 = smov [#allocation16]  }
  0x1e   :  { %s96_s27 = sshll.u32 %s6692_s26, 4  ;;  %s97_s27 = int_to_ptr.vmem [resolvable:$true] %s96_s27 }
  0x1f   :  { %s6492_s28 = scalar_lea.vmem %s97_s27, 36864  ;;  %p6497_p11 = scmp.lt.s32.totalorder %s97_s27, %s97_s27 }
  0x20   :  { %p6493_p10 = scmp.ne.s32.totalorder %s97_s27, %s6492_s28  ;;  %p6498_p12 = scmp.lt.s32.totalorder %s6492_s28, %s6492_s28 }
  0x22   :  { %p6499_p13 = por %p6498_p12, %p6497_p11 }
  0x24   :  { %p6500_p0 = pnand %p6499_p13, %p6493_p10 }
  0x26   :  { %6503 = shalt.err (!%p6500_p0)
}
  0x27   :  { %s6693_s3 = smov 256   ;;  %s6694_s29 = smov 16  }
  0x28   :  { %102 = dma.hbm_to_vmem [thread:$0]  %s7693_s8, 36864, %s97_s27, [#allocation17], %s6693_s3, %s6693_s3, %s6694_s29  }
  0x29   :  { %s6695_s17 = smov [#allocation19]  }
  0x2a   :  { %s118_s18 = sshll.u32 %s6695_s17, 4  ;;  %s119_s18 = int_to_ptr.vmem [resolvable:$true] %s118_s18 }
  0x2b   :  { %s6512_s6 = scalar_lea.vmem %s119_s18, 8192  ;;  %p6517_p2 = scmp.lt.s32.totalorder %s119_s18, %s119_s18 }
  0x2c   :  { %p6513_p1 = scmp.ne.s32.totalorder %s119_s18, %s6512_s6  ;;  %p6518_p3 = scmp.lt.s32.totalorder %s6512_s6, %s6512_s6 }
  0x2e   :  { %p6519_p4 = por %p6518_p3, %p6517_p2 }
  0x30   :  { %p6520_p5 = pnand %p6519_p4, %p6513_p1 }
  0x32   :  { %6523 = shalt.err (!%p6520_p5)
}
  0x33   :  { %s6696_s16 = smov 128   ;;  %s6697_s19 = smov 8  }
  0x34   :  { %124 = dma.hbm_to_vmem [thread:$0]  %s7695_s10, 8192, %s119_s18, [#allocation20], %s6696_s16, %s6696_s16, %s6697_s19  }
  0x35   :  { %s6698_s23 = smov [#allocation5]   ;;  %s6699_s8 = smov [#allocation9]  }
  0x36   :  { %34 = dma.hbm_to_smem %s7685_s0, 16, %s6698_s23, [#allocation8]  }
  0x37   :  { %s43_s26 = sshll.u32 %s6699_s8, 4  ;;  %s6700_s27 = smov [#allocation12]   ;;  %s44_s26 = int_to_ptr.vmem [resolvable:$true] %s43_s26 }
  0x38   :  { %s65_s28 = sshll.u32 %s6700_s27, 4  ;;  %s6540_s3 = scalar_lea.vmem %s44_s26, 64  ;;  %s66_s28 = int_to_ptr.vmem [resolvable:$true] %s65_s28 }
  0x39   :  { %p6541_p6 = scmp.ne.s32.totalorder %s44_s26, %s6540_s3  ;;  %p6545_p7 = scmp.lt.s32.totalorder %s44_s26, %s44_s26 }
  0x3a   :  { %p6546_p8 = scmp.lt.s32.totalorder %s6540_s3, %s6540_s3 }
  0x3c   :  { %p6547_p9 = por %p6546_p8, %p6545_p7 }
  0x3e   :  { %p6548_p10 = pnand %p6547_p9, %p6541_p6 }
  0x40   :  { %6551 = shalt.err (!%p6548_p10)
}
  0x41   :  { %46 = dma.hbm_to_vmem [thread:$0]  %s7687_s2, 64, %s44_s26, [#allocation6]  }
  0x42   :  { %s6560_s10 = scalar_lea.vmem %s66_s28, 16  ;;  %s6564_s0 = scalar_lea.vmem %s66_s28, 32 }
  0x43   :  { %p6561_p11 = scmp.ne.s32.totalorder %s66_s28, %s6560_s10  ;;  %p6565_p12 = scmp.lt.s32.totalorder %s66_s28, %s66_s28 }
  0x44   :  { %p6566_p13 = scmp.lt.s32.totalorder %s6564_s0, %s6560_s10 }
  0x46   :  { %p6567_p0 = por %p6566_p13, %p6565_p12 }
  0x48   :  { %p6568_p1 = pnand %p6567_p0, %p6561_p11 }
  0x4a   :  { %6571 = shalt.err (!%p6568_p1)
}
  0x4b   :  { %68 = dma.hbm_to_vmem [thread:$0]  %s7690_s5, 16, %s66_s28, [#allocation11]  }
  0x4c   :  { %s6701_s18 = smov [#allocation15]   ;;  %s6702_s16 = smov [#allocation18]  }
  0x4d   :  { %s87_s6 = sshll.u32 %s6701_s18, 4  ;;  %s109_s19 = sshll.u32 %s6702_s16, 4  ;;  %s88_s6 = int_to_ptr.vmem [resolvable:$true] %s87_s6  ;;  %s110_s19 = int_to_ptr.vmem [resolvable:$true] %s109_s19 }
  0x4e   :  { %s6580_s20 = scalar_lea.vmem %s88_s6, 16  ;;  %s6584_s2 = scalar_lea.vmem %s88_s6, 32 }
  0x4f   :  { %p6581_p2 = scmp.ne.s32.totalorder %s88_s6, %s6580_s20  ;;  %p6585_p3 = scmp.lt.s32.totalorder %s88_s6, %s88_s6 }
  0x50   :  { %p6586_p4 = scmp.lt.s32.totalorder %s6584_s2, %s6580_s20 }
  0x52   :  { %p6587_p5 = por %p6586_p4, %p6585_p3 }
  0x54   :  { %p6588_p6 = pnand %p6587_p5, %p6581_p2 }
  0x56   :  { %6591 = shalt.err (!%p6588_p6)
}
  0x57   :  { %90 = dma.hbm_to_vmem [thread:$0]  %s7692_s7, 16, %s88_s6, [#allocation14]  }
  0x58   :  { %s6600_s24 = scalar_lea.vmem %s110_s19, 64  ;;  %p6605_p8 = scmp.lt.s32.totalorder %s110_s19, %s110_s19 }
  0x59   :  { %p6601_p7 = scmp.ne.s32.totalorder %s110_s19, %s6600_s24  ;;  %p6606_p9 = scmp.lt.s32.totalorder %s6600_s24, %s6600_s24 }
  0x5b   :  { %p6607_p10 = por %p6606_p9, %p6605_p8 }
  0x5d   :  { %p6608_p11 = pnand %p6607_p10, %p6601_p7 }
  0x5f   :  { %6611 = shalt.err (!%p6608_p11)
}
  0x60   :  { %112 = dma.hbm_to_vmem [thread:$0]  %s7694_s9, 64, %s110_s19, [#allocation17]  }
  0x61   :  { %s6703_s8 = smov [#allocation21]   ;;  %s6704_s27 = smov [#allocation22]  }
  0x62   :  { %s131_s26 = sshll.u32 %s6703_s8, 4  ;;  %s143_s28 = sshll.u32 %s6704_s27, 4  ;;  %s132_s26 = int_to_ptr.vmem [resolvable:$true] %s131_s26  ;;  %s144_s28 = int_to_ptr.vmem [resolvable:$true] %s143_s28 }
  0x63   :  { %s6620_s3 = scalar_lea.vmem %s132_s26, 32  ;;  %p6625_p13 = scmp.lt.s32.totalorder %s132_s26, %s132_s26 }
  0x64   :  { %p6621_p12 = scmp.ne.s32.totalorder %s132_s26, %s6620_s3  ;;  %p6626_p0 = scmp.lt.s32.totalorder %s6620_s3, %s6620_s3 }
  0x66   :  { %p6627_p1 = por %p6626_p0, %p6625_p13 }
  0x68   :  { %p6628_p2 = pnand %p6627_p1, %p6621_p12 }
  0x6a   :  { %6631 = shalt.err (!%p6628_p2)
}
  0x6b   :  { %134 = dma.hbm_to_vmem [thread:$0]  %s7696_s11, 32, %s132_s26, [#allocation20]  }
  0x6c   :  { %s6640_s30 = scalar_lea.vmem %s144_s28, 16  ;;  %s6644_s9 = scalar_lea.vmem %s144_s28, 32 }
  0x6d   :  { %p6641_p3 = scmp.ne.s32.totalorder %s144_s28, %s6640_s30  ;;  %p6645_p4 = scmp.lt.s32.totalorder %s144_s28, %s144_s28 }
  0x6e   :  { %p6646_p5 = scmp.lt.s32.totalorder %s6644_s9, %s6640_s30 }
  0x70   :  { %p6647_p6 = por %p6646_p5, %p6645_p4 }
  0x72   :  { %p6648_p7 = pnand %p6647_p6, %p6641_p3 }
  0x74   :  { %6651 = shalt.err (!%p6648_p7)
}
  0x75   :  { %146 = dma.hbm_to_vmem [thread:$0]  %s7698_s13, 16, %s144_s28, [#allocation23]  }
  0x76   :  { %6672 = dma.done.wait [#allocation8], 16  }
  0x77   :  { %6673 = vsyncadd [#allocation8], 4294967280 }
  0x78   :  { %6674 = dma.done.wait [#allocation6], 64  }
  0x79   :  { %6675 = vsyncadd [#allocation6], 4294967232 }
  0x7a   :  { %6676 = dma.done.wait [#allocation11], 32  }
  0x7b   :  { %6677 = vsyncadd [#allocation11], 4294967264 }
  0x7c   :  { %6678 = dma.done.wait [#allocation14], 8208  }
  0x7d   :  { %6679 = vsyncadd [#allocation14], 4294959088 }
  0x7e   :  { %6680 = dma.done.wait [#allocation17], 36928  }
  0x7f   :  { %6681 = vsyncadd [#allocation17], 4294930368 }
  0x80   :  { %6682 = dma.done.wait [#allocation20], 8224  }
  0x81   :  { %6683 = vsyncadd [#allocation20], 4294959072 }
  0x82   :  { %6684 = dma.done.wait [#allocation23], 16  }
  0x83   :  { %6685 = vsyncadd [#allocation23], 4294967280 }
  0x84   :  { %180 = sfence }
  0x85   :  { %v184_v0 = vld [vmem:[%s7686_s1 + $0x10] sm:$0xff]  ;;  %v182_v1 = vld [vmem:[%s7686_s1] sm:$0xff]  ;;  %v6705_v2 = vmov 0   ;;  %v185_v3 = vld [vmem:[%s7686_s1 + $0x18] sm:$0xff]  ;;  %v6706_v19 = vmov 0.0   ;;  %v269_v20 = vlaneseq  ;;  %vm542_vm0 = vcmask 259072  }
  0x86   :  { %5801 = vset.pattern.permute.xlu1 %v6705_v2  ;;  %5800 = vset.pattern.permute.xlu0 %v6705_v2  ;;  %v183_v4 = vld [vmem:[%s7686_s1 + $0x8] sm:$0xff]  ;;  %v186_v6 = vld [vmem:[%s7686_s1 + $0x20] sm:$0xff]  ;;  %v189_v7 = vld [vmem:[%s7686_s1 + $0x38] sm:$0xff]  ;;  %s6707_s26 = smov 32   ;;  %s6708_s9 = smov 96   ;;  %vm6709_vm15 = vmmov 0  }
  0x87   :  { %211 = vperm.xlu1 %5801, %v184_v0   ;;  %201 = vperm.xlu0 %5800, %v182_v1   ;;  %v187_v5 = vld [vmem:[%s7686_s1 + $0x28] sm:$0xff]  ;;  %v188_v8 = vld [vmem:[%s7686_s1 + $0x30] sm:$0xff]  ;;  %v190_v10 = vld [vmem:[%s7686_s1 + $0x40] sm:$0xff]  ;;  %v6881_v21 = vshrl.u32 %v269_v20, 7 }
  0x88   :  { %v191_v9 = vld [vmem:[%s7686_s1 + $0x48] sm:$0xff]  ;;  %v193_v11 = vld [vmem:[%s7686_s1 + $0x58] sm:$0xff]  ;;  %v192_v12 = vld [vmem:[%s7686_s1 + $0x50] sm:$0xff]  ;;  %5740 = vmatprep.subr.bf16.mxu0 %v6706_v19  ;;  %5756 = vmatprep.mubr.msk.bf16.mxu0 %vm6709_vm15, %v6706_v19 }
  0x89   :  { %v195_v13 = vld [vmem:[%s7686_s1 + $0x68] sm:$0xff]  ;;  %v194_v14 = vld [vmem:[%s7686_s1 + $0x60] sm:$0xff]  ;;  %v197_v15 = vld [vmem:[%s7686_s1 + $0x78] sm:$0xff]  ;;  %v6884_v23 = vsub.s32 1, %v6881_v21  ;;  %v6887_v24 = vsub.s32 0, %v6881_v21  ;;  %v405_v26 = vsub.s32 3, %v6881_v21 }
  0x8a   :  { %v196_v16 = vld [vmem:[%s7686_s1 + $0x70] sm:$0xff]  ;;  %v5802_v17 = vld [vmem:[%s7689_s4 + $0x38] sm:$0xff]   ;;  %s498_s1 = sld [smem:[#allocation5]]  ;;  %v373_v28 = vsub.s32 2, %v6881_v21  ;;  %v5804_v0 = vld [vmem:[%s7689_s4 + $0x28] sm:$0xff]  }
  0x8b   :  { %216 = vperm.xlu1 %5801, %v185_v3   ;;  %206 = vperm.xlu0 %5800, %v183_v4   ;;  %v5803_v18 = vld [vmem:[%s7689_s4 + $0x30] sm:$0xff]   ;;  %v198_v22 = vld [vmem:[#allocation9] sm:$0xf] }
  0x8c   :  { %5741 = vmatpush3.bf16.msra.mxu0 %v5802_v17  ;;  %v6890_v25 = vrot.slane %v198_v22, %v6884_v23  ;;  %v6894_v27 = vrot.slane %v198_v22, %v6887_v24  ;;  %v6901_v33 = vrot.slane %v198_v22, %v405_v26  ;;  %v6906_v35 = vrot.slane %v198_v22, %v373_v28 }
  0x8d   :  { %5742 = vmatprep.subr.bf16.mxu0 %v6706_v19 }
  0x8f   :  { %226 = vperm.xlu1 %5801, %v187_v5   ;;  %221 = vperm.xlu0 %5800, %v186_v6  }
  0x90   :  { %5743 = vmatpush3.bf16.msra.mxu0 %v5803_v18  ;;  %v6917_v49 = vstv %s498_s1 }
  0x91   :  { %5744 = vmatprep.subr.bf16.mxu0 %v6706_v19 }
  0x93   :  { %363 = vperm.xlu1 %5801, %v189_v7   ;;  %231 = vperm.xlu0 %5800, %v188_v8  }
  0x94   :  { %5745 = vmatpush3.bf16.msra.mxu0 %v5804_v0 }
  0x95   :  { %5746 = vmatprep.subr.bf16.mxu0 %v6706_v19 }
  0x97   :  { %241 = vperm.xlu1 %5801, %v191_v9   ;;  %236 = vperm.xlu0 %5800, %v190_v10   ;;  %v6935_v10 = vld [vmem:[#allocation10] ss:$0 sm:$0xff] }
  0x9b   :  { %251 = vperm.xlu1 %5801, %v193_v11   ;;  %246 = vperm.xlu0 %5800, %v192_v12  }
  0x9f   :  { %261 = vperm.xlu1 %5801, %v195_v13   ;;  %256 = vperm.xlu0 %5800, %v194_v14  }
  0xa3   :  { %368 = vperm.xlu1 %5801, %v197_v15   ;;  %266 = vperm.xlu0 %5800, %v196_v16  }
 0x102   :  { %v212_v29 = vpop.permute.xlu1 %211  ;;  %v202_v30 = vpop.permute.xlu0 %201 }
 0x103   :  { %v275_v31 = vmul.f32 %v6894_v27, %v212_v29  ;;  %v293_v32 = vmul.f32 %v6890_v25, %v212_v29  ;;  %v291_v34 = vmul.f32 %v6890_v25, %v202_v30  ;;  %v6909_v37 = vmul.f32 %v6901_v33, %v212_v29 }
 0x104   :  { %v273_v38 = vmul.f32 %v6894_v27, %v202_v30  ;;  %v376_v54 = vmul.f32 %v6906_v35, %v212_v29 }
 0x105   :  { %v321_v36 = vrot.slane %v293_v32, 1  ;;  %v319_v39 = vrot.slane %v291_v34, 1  ;;  %v436_v60 = vrot.slane %v6909_v37, 1 }
 0x106   :  { %v217_v40 = vpop.permute.xlu1 %216  ;;  %v207_v41 = vpop.permute.xlu0 %206 }
 0x107   :  { %v349_v42 = vadd.f32 %v321_v36, %v275_v31  ;;  %v276_v43 = vmul.f32 %v6894_v27, %v217_v40  ;;  %v294_v44 = vmul.f32 %v6890_v25, %v217_v40  ;;  %v377_v45 = vmul.f32 %v6906_v35, %v217_v40 }
 0x108   :  { %v347_v46 = vadd.f32 %v319_v39, %v273_v38  ;;  %v409_v47 = vmul.f32 %v6901_v33, %v217_v40  ;;  %v292_v48 = vmul.f32 %v6890_v25, %v207_v41  ;;  %v375_v52 = vmul.f32 %v6906_v35, %v207_v41 }
 0x109   :  { %v322_v50 = vrot.slane %v294_v44, 1  ;;  %v391_v51 = vadd.f32 %v377_v45, %v349_v42  ;;  %v407_v53 = vmul.f32 %v6901_v33, %v207_v41  ;;  %v274_v56 = vmul.f32 %v6894_v27, %v207_v41 }
 0x10a   :  { %v437_v55 = vrot.slane %v409_v47, 1  ;;  %v320_v57 = vrot.slane %v292_v48, 1  ;;  %v227_v58 = vpop.permute.xlu1 %226  ;;  %v222_v59 = vpop.permute.xlu0 %221  ;;  %v389_v62 = vadd.f32 %v375_v52, %v347_v46 }
 0x10b   :  { %v350_v61 = vadd.f32 %v322_v50, %v276_v43  ;;  %v435_v63 = vrot.slane %v407_v53, 1  ;;  %v278_v4 = vmul.f32 %v6894_v27, %v227_v58  ;;  %v296_v5 = vmul.f32 %v6890_v25, %v227_v58 }
 0x10c   :  { %v465_v1 = vadd.f32 %v437_v55, %v391_v51  ;;  %v348_v3 = vadd.f32 %v320_v57, %v274_v56  ;;  %v379_v6 = vmul.f32 %v6906_v35, %v227_v58  ;;  %v6931_v7 = vmul.f32 %v6901_v33, %v227_v58  ;;  %v5805_v51 = vld [vmem:[%s7689_s4 + $0x20] sm:$0xff]  }
 0x10d   :  { %v295_v8 = vmul.f32 %v6890_v25, %v222_v59  ;;  %v378_v9 = vmul.f32 %v6906_v35, %v222_v59  ;;  %v324_v11 = vrot.slane %v296_v5, 1  ;;  %v277_v12 = vmul.f32 %v6894_v27, %v222_v59  ;;  %5747 = vmatpush3.bf16.msra.mxu0 %v5805_v51 }
 0x10e   :  { %v410_v13 = vmul.f32 %v6901_v33, %v222_v59  ;;  %v364_v14 = vpop.permute.xlu1 %363  ;;  %v232_v15 = vpop.permute.xlu0 %231  ;;  %v463_v16 = vadd.f32 %v435_v63, %v389_v62  ;;  %v390_v17 = vadd.f32 %v376_v54, %v348_v3  ;;  %v439_v18 = vrot.slane %v6931_v7, 1  ;;  %5748 = vmatprep.subr.bf16.mxu0 %v6706_v19 }
 0x10f   :  { %v323_v20 = vrot.slane %v295_v8, 1  ;;  %v392_v22 = vadd.f32 %v378_v9, %v350_v61  ;;  %v352_v29 = vadd.f32 %v324_v11, %v278_v4  ;;  %v6942_v31 = vmul.f32 %v6906_v35, %v364_v14  ;;  %v5806_v8 = vld [vmem:[%s7689_s4 + $0x18] sm:$0xff]  }
 0x110   :  { %v438_v30 = vrot.slane %v410_v13, 1  ;;  %v6945_v32 = vmul.f32 %v6901_v33, %v364_v14  ;;  %v297_v36 = vmul.f32 %v6890_v25, %v232_v15  ;;  %v380_v38 = vmul.f32 %v6906_v35, %v232_v15 }
 0x111   :  { %v351_v34 = vadd.f32 %v323_v20, %v277_v12  ;;  %v412_v39 = vmul.f32 %v6901_v33, %v232_v15  ;;  %v279_v42 = vmul.f32 %v6894_v27, %v232_v15  ;;  %v484_v44 = vadd.f32 %v6935_v10, %v463_v16  ;;  %5749 = vmatpush3.bf16.msra.mxu0 %v5806_v8 }
 0x112   :  { %v6950_v40 = vadd.f32 %v438_v30, %v392_v22  ;;  %v441_v41 = vrot.slane %v6945_v32, 1  ;;  %v242_v43 = vpop.permute.xlu1 %241  ;;  %v237_v45 = vpop.permute.xlu0 %236  ;;  %v325_v46 = vrot.slane %v297_v36, 1  ;;  %v394_v47 = vadd.f32 %v380_v38, %v352_v29  ;;  %5750 = vmatprep.subr.bf16.mxu0 %v6706_v19 }
 0x113   :  { %v440_v48 = vrot.slane %v412_v39, 1  ;;  %v486_v50 = vadd.f32 %v6935_v10, %v465_v1  ;;  %v6959_v52 = vadd.f32 %v379_v6, %v351_v34  ;;  %v281_v53 = vmul.f32 %v6894_v27, %v242_v43 }
 0x114   :  { %v299_v54 = vmul.f32 %v6890_v25, %v242_v43  ;;  %v414_v55 = vmul.f32 %v6901_v33, %v242_v43  ;;  %v6964_v56 = vadd.f32 %v325_v46, %v279_v42  ;;  %v382_v57 = vmul.f32 %v6906_v35, %v242_v43 }
 0x115   :  { %vm499_vm1 = vcmp.gt.f32.partialorder %v484_v44, 0.0  ;;  %v514_v58 = vmul.f32 %v6917_v49, %v484_v44  ;;  %v6968_v59 = vadd.f32 %v440_v48, %v394_v47  ;;  %v298_v63 = vmul.f32 %v6890_v25, %v237_v45 }
 0x116   :  { %v327_v61 = vrot.slane %v299_v54, 1  ;;  %v442_v62 = vrot.slane %v414_v55, 1  ;;  %v252_v0 = vpop.permute.xlu1 %251  ;;  %v247_v1 = vpop.permute.xlu0 %246  ;;  %v280_v4 = vmul.f32 %v6894_v27, %v237_v45  ;;  %vm501_vm2 = vcmp.gt.f32.partialorder %v486_v50, 0.0 }
 0x117   :  { %v528_v3 = vsel %vm499_vm1, %v484_v44, %v514_v58  ;;  %v283_v5 = vmul.f32 %v6894_v27, %v252_v0  ;;  %v301_v6 = vmul.f32 %v6890_v25, %v252_v0  ;;  %v326_v11 = vrot.slane %v298_v63, 1 }
 0x118   :  { %v355_v9 = vadd.f32 %v327_v61, %v281_v53  ;;  %545 = vrot.lane.b32.xlu1 %v528_v3, %s6707_s26  ;;  %543 = vst.msk [vmem:[#allocation2] sm:$0x3f] %vm542_vm0, %v528_v3  ;;  %v384_v12 = vmul.f32 %v6906_v35, %v252_v0  ;;  %v6982_v14 = vmul.f32 %v6901_v33, %v252_v0  ;;  %v5808_v0 = vld [vmem:[%s7689_s4 + $0x8] sm:$0xff]   ;;  %vm554_vm1 = vcmask 783872  }
 0x119   :  { %v329_v13 = vrot.slane %v301_v6, 1  ;;  %v516_v15 = vmul.f32 %v6917_v49, %v486_v50  ;;  %v464_v16 = vadd.f32 %v436_v60, %v390_v17  ;;  %v354_v20 = vadd.f32 %v326_v11, %v280_v4  ;;  %v5807_v60 = vld [vmem:[%s7689_s4 + $0x10] sm:$0xff]  }
 0x11a   :  { %v282_v22 = vmul.f32 %v6894_v27, %v247_v1  ;;  %v300_v29 = vmul.f32 %v6890_v25, %v247_v1  ;;  %v383_v30 = vmul.f32 %v6906_v35, %v247_v1  ;;  %v262_v34 = vpop.permute.xlu1 %261  ;;  %v257_v36 = vpop.permute.xlu0 %256  ;;  %v415_v37 = vmul.f32 %v6901_v33, %v247_v1  ;;  %5751 = vmatpush3.bf16.msra.mxu0 %v5807_v60 }
 0x11b   :  { %v357_v38 = vadd.f32 %v329_v13, %v283_v5  ;;  %v6991_v39 = vsel %vm501_vm2, %v486_v50, %v516_v15  ;;  %v485_v42 = vadd.f32 %v6935_v10, %v464_v16  ;;  %v396_v17 = vadd.f32 %v382_v57, %v354_v20  ;;  %5752 = vmatprep.subr.bf16.mxu0 %v6706_v19 }
 0x11c   :  { %576 = vrot.lane.b32.xlu1 %v6991_v39, %s6707_s26  ;;  %575 = vst.msk [vmem:[#allocation2 + $0xc] sm:$0x3f] %vm542_vm0, %v6991_v39  ;;  %v328_v43 = vrot.slane %v300_v29, 1  ;;  %v397_v44 = vadd.f32 %v383_v30, %v355_v9  ;;  %v285_v45 = vmul.f32 %v6894_v27, %v262_v34  ;;  %v443_v47 = vrot.slane %v415_v37, 1  ;;  %v5809_v30 = vld [vmem:[%s7689_s4] sm:$0xff]   ;;  %s5139_s4 = sld [smem:[#allocation5 + $0x1]] }
 0x11d   :  { %vm500_vm3 = vcmp.gt.f32.partialorder %v485_v42, 0.0  ;;  %v515_v46 = vmul.f32 %v6917_v49, %v485_v42  ;;  %v303_v48 = vmul.f32 %v6890_v25, %v262_v34  ;;  %v470_v50 = vadd.f32 %v442_v62, %v396_v17 }
 0x11e   :  { %v356_v51 = vadd.f32 %v328_v43, %v282_v22  ;;  %v386_v53 = vmul.f32 %v6906_v35, %v262_v34  ;;  %v7007_v54 = vmul.f32 %v6901_v33, %v262_v34  ;;  %v369_v55 = vpop.permute.xlu1 %368  ;;  %v471_v58 = vadd.f32 %v443_v47, %v397_v44  ;;  %v267_v5 = vpop.permute.xlu0 %266  ;;  %5753 = vmatpush3.bf16.msra.mxu0 %v5808_v0 }
 0x11f   :  { %v529_v57 = vsel %vm500_vm3, %v485_v42, %v515_v46  ;;  %v331_v61 = vrot.slane %v303_v48, 1  ;;  %v284_v63 = vmul.f32 %v6894_v27, %v257_v36  ;;  %v444_v62 = vrot.slane %v6982_v14, 1  ;;  %5754 = vmatprep.subr.bf16.mxu0 %v6706_v19 }
 0x120   :  { %562 = vrot.lane.b32.xlu0 %v529_v57, %s6707_s26  ;;  %561 = vst.msk [vmem:[#allocation2 + $0x6] sm:$0x3f] %vm542_vm0, %v529_v57  ;;  %v398_v1 = vadd.f32 %v384_v12, %v356_v51  ;;  %567 = vrot.lane.b32.xlu1 %v6991_v39, %s6690_s22  ;;  %v302_v3 = vmul.f32 %v6890_v25, %v257_v36  ;;  %v446_v8 = vrot.slane %v7007_v54, 1  ;;  %vm559_vm2 = vcmask 1047297  }
 0x121   :  { %v385_v4 = vmul.f32 %v6906_v35, %v257_v36  ;;  %v359_v6 = vadd.f32 %v331_v61, %v285_v45  ;;  %v417_v9 = vmul.f32 %v6901_v33, %v257_v36  ;;  %v388_v11 = vmul.f32 %v6906_v35, %v369_v55 }
 0x122   :  { %v330_v13 = vrot.slane %v302_v3, 1  ;;  %v7025_v12 = vmul.f32 %v6901_v33, %v369_v55  ;;  %v487_v15 = vadd.f32 %v6935_v10, %v6950_v40  ;;  %v286_v20 = vmul.f32 %v6894_v27, %v267_v5  ;;  %5755 = vmatpush3.bf16.msra.mxu0 %v5809_v30 }
 0x123   :  { %v399_v14 = vadd.f32 %v385_v4, %v357_v38  ;;  %v445_v16 = vrot.slane %v417_v9, 1  ;;  %v304_v22 = vmul.f32 %v6890_v25, %v267_v5  ;;  %v387_v29 = vmul.f32 %v6906_v35, %v267_v5 }
 0x124   :  { %551 = vrot.lane.b32.xlu0 %v529_v57, %s6690_s22  ;;  %v358_v34 = vadd.f32 %v330_v13, %v284_v63  ;;  %556 = vrot.lane.b32.xlu1 %v529_v57, %s6708_s9  ;;  %vm502_vm4 = vcmp.gt.f32.partialorder %v487_v15, 0.0  ;;  %v517_v40 = vmul.f32 %v6917_v49, %v487_v15  ;;  %v419_v36 = vmul.f32 %v6901_v33, %v267_v5 }
 0x125   :  { %v473_v27 = vadd.f32 %v445_v16, %v399_v14  ;;  %v332_v38 = vrot.slane %v304_v22, 1  ;;  %v401_v25 = vadd.f32 %v387_v29, %v359_v6  ;;  %v467_v35 = vadd.f32 %v439_v18, %v6959_v52 }
 0x126   :  { %v400_v42 = vadd.f32 %v386_v53, %v358_v34  ;;  %v531_v37 = vsel %vm502_vm4, %v487_v15, %v517_v40  ;;  %v447_v60 = vrot.slane %v419_v36, 1  ;;  %v489_v17 = vadd.f32 %v6935_v10, %v6968_v59 }
 0x127   :  { %589 = vst.msk [vmem:[#allocation2 + $0x12] sm:$0x3f] %vm542_vm0, %v531_v37  ;;  %v360_v43 = vadd.f32 %v332_v38, %v286_v20  ;;  %v488_v44 = vadd.f32 %v6935_v10, %v467_v35  ;;  %v395_v33 = vadd.f32 %v6942_v31, %v6964_v56  ;;  %v492_v45 = vadd.f32 %v6935_v10, %v471_v58 }
 0x128   :  { %581 = vrot.lane.b32.xlu0 %v531_v37, %s6690_s22  ;;  %v475_v7 = vadd.f32 %v447_v60, %v401_v25  ;;  %585 = vrot.lane.b32.xlu1 %v531_v37, %s6708_s9  ;;  %vm504_vm5 = vcmp.gt.f32.partialorder %v489_v17, 0.0  ;;  %v519_v18 = vmul.f32 %v6917_v49, %v489_v17  ;;  %v491_v52 = vadd.f32 %v6935_v10, %v470_v50 }
 0x129   :  { %v402_v59 = vadd.f32 %v388_v11, %v360_v43  ;;  %vm503_vm6 = vcmp.gt.f32.partialorder %v488_v44, 0.0  ;;  %v518_v46 = vmul.f32 %v6917_v49, %v488_v44  ;;  %v469_v47 = vadd.f32 %v441_v41, %v395_v33 }
 0x12a   :  { %v533_v31 = vsel %vm504_vm5, %v489_v17, %v519_v18  ;;  %vm507_vm7 = vcmp.gt.f32.partialorder %v492_v45, 0.0  ;;  %v522_v56 = vmul.f32 %v6917_v49, %v492_v45  ;;  %vm506_vm8 = vcmp.gt.f32.partialorder %v491_v52, 0.0 }
 0x12b   :  { %v532_v48 = vsel %vm503_vm6, %v488_v44, %v518_v46  ;;  %617 = vst.msk [vmem:[#allocation2 + $0x1e] sm:$0x3f] %vm542_vm0, %v533_v31  ;;  %v490_v51 = vadd.f32 %v6935_v10, %v469_v47  ;;  %v521_v53 = vmul.f32 %v6917_v49, %v491_v52  ;;  %v472_v50 = vadd.f32 %v444_v62, %v398_v1 }
 0x12c   :  { %571 = vrot.lane.b32.xlu0 %v6991_v39, %s6708_s9  ;;  %604 = vrot.lane.b32.xlu1 %v532_v48, %s6707_s26  ;;  %603 = vst.msk [vmem:[#allocation2 + $0x18] sm:$0x3f] %vm542_vm0, %v532_v48  ;;  %v536_v32 = vsel %vm507_vm7, %v492_v45, %v522_v56  ;;  %v494_v41 = vadd.f32 %v6935_v10, %v473_v27  ;;  %v448_v55 = vrot.slane %v7025_v12, 1  ;;  %vm902_vm4 = vcmask 518144  }
 0x12d   :  { %v474_v54 = vadd.f32 %v446_v8, %v400_v42  ;;  %vm505_vm9 = vcmp.gt.f32.partialorder %v490_v51, 0.0  ;;  %646 = vst.msk [vmem:[#allocation2 + $0x2a] sm:$0x3f] %vm542_vm0, %v536_v32  ;;  %v535_v57 = vsel %vm506_vm8, %v491_v52, %v521_v53  ;;  %v493_v58 = vadd.f32 %v6935_v10, %v472_v50 }
 0x12e   :  { %631 = vst.msk [vmem:[#allocation2 + $0x24] sm:$0x3f] %vm542_vm0, %v535_v57  ;;  %vm509_vm10 = vcmp.gt.f32.partialorder %v494_v41, 0.0  ;;  %v524_v39 = vmul.f32 %v6917_v49, %v494_v41  ;;  %v496_v63 = vadd.f32 %v6935_v10, %v475_v7  ;;  %v520_v0 = vmul.f32 %v6917_v49, %v490_v51 }
 0x12f   :  { %v495_v61 = vadd.f32 %v6935_v10, %v474_v54  ;;  %vm508_vm11 = vcmp.gt.f32.partialorder %v493_v58, 0.0  ;;  %v523_v62 = vmul.f32 %v6917_v49, %v493_v58  ;;  %v476_v1 = vadd.f32 %v448_v55, %v402_v59 }
 0x130   :  { %590 = vrot.lane.b32.xlu0 %v531_v37, %s6707_s26  ;;  %595 = vrot.lane.b32.xlu1 %v532_v48, %s6690_s22  ;;  %v538_v3 = vsel %vm509_vm10, %v494_v41, %v524_v39  ;;  %vm511_vm13 = vcmp.gt.f32.partialorder %v496_v63, 0.0  ;;  %v526_v6 = vmul.f32 %v6917_v49, %v496_v63  ;;  %v534_v11 = vsel %vm505_vm9, %v490_v51, %v520_v0 }
 0x131   :  { %vm510_vm12 = vcmp.gt.f32.partialorder %v495_v61, 0.0  ;;  %v525_v4 = vmul.f32 %v6917_v49, %v495_v61  ;;  %v537_v5 = vsel %vm508_vm11, %v493_v58, %v523_v62  ;;  %674 = vst.msk [vmem:[#allocation2 + $0x36] sm:$0x3f] %vm542_vm0, %v538_v3  ;;  %v497_v8 = vadd.f32 %v6935_v10, %v476_v1 }
 0x132   :  { %660 = vst.msk [vmem:[#allocation2 + $0x30] sm:$0x3f] %vm542_vm0, %v537_v5  ;;  %v540_v13 = vsel %vm511_vm13, %v496_v63, %v526_v6  ;;  %v7156_v6 = vld [vmem:[#allocation12] ss:$0 sm:$0xff]  ;;  %vm1040_vm6 = vcmask 523270   ;;  %vm981_vm7 = vcmask 1043456  }
 0x133   :  { %v539_v9 = vsel %vm510_vm12, %v495_v61, %v525_v4  ;;  %vm512_vm14 = vcmp.gt.f32.partialorder %v497_v8, 0.0  ;;  %v527_v14 = vmul.f32 %v6917_v49, %v497_v8  ;;  %702 = vst.msk [vmem:[#allocation2 + $0x42] sm:$0x3f] %vm542_vm0, %v540_v13  ;;  %vm920_vm8 = vcmask 1041408  }
 0x134   :  { %688 = vst.msk [vmem:[#allocation2 + $0x3c] sm:$0x3f] %vm542_vm0, %v539_v9  ;;  %618 = vrot.lane.b32.xlu0 %v533_v31, %s6707_s26  ;;  %623 = vrot.lane.b32.xlu1 %v534_v11, %s6690_s22  ;;  %vm548_vm0 = vcmask 522497   ;;  %vm979_vm9 = vcmask 521219   ;;  %vm975_vm10 = vcmask 1044480   ;;  %vm1042_vm11 = vcmask 516096  }
 0x135   :  { %v541_v10 = vsel %vm512_vm14, %v497_v8, %v527_v14  ;;  %vm1053_vm13 = vcmask 1046528  }
 0x138   :  { %609 = vrot.lane.b32.xlu0 %v533_v31, %s6690_s22  ;;  %613 = vrot.lane.b32.xlu1 %v533_v31, %s6708_s9 }
 0x13c   :  { %599 = vrot.lane.b32.xlu0 %v532_v48, %s6708_s9  ;;  %647 = vrot.lane.b32.xlu1 %v536_v32, %s6707_s26 }
 0x140   :  { %627 = vrot.lane.b32.xlu0 %v534_v11, %s6708_s9  ;;  %652 = vrot.lane.b32.xlu1 %v537_v5, %s6690_s22 }
 0x144   :  { %633 = vrot.lane.b32.xlu0 %v535_v57, %s6707_s26  ;;  %656 = vrot.lane.b32.xlu1 %v537_v5, %s6708_s9 }
 0x148   :  { %638 = vrot.lane.b32.xlu0 %v536_v32, %s6690_s22  ;;  %675 = vrot.lane.b32.xlu1 %v538_v3, %s6707_s26 }
 0x14c   :  { %642 = vrot.lane.b32.xlu0 %v536_v32, %s6708_s9  ;;  %666 = vrot.lane.b32.xlu1 %v538_v3, %s6690_s22 }
 0x150   :  { %661 = vrot.lane.b32.xlu0 %v537_v5, %s6707_s26  ;;  %694 = vrot.lane.b32.xlu1 %v540_v13, %s6690_s22 }
 0x154   :  { %689 = vrot.lane.b32.xlu0 %v539_v9, %s6707_s26  ;;  %684 = vrot.lane.b32.xlu1 %v539_v9, %s6708_s9 }
 0x158   :  { %680 = vrot.lane.b32.xlu0 %v539_v9, %s6690_s22  ;;  %703 = vrot.lane.b32.xlu1 %v540_v13, %s6707_s26  ;;  %v7158_v9 = vstv %s5139_s4 }
 0x15c   :  { %670 = vrot.lane.b32.xlu0 %v538_v3, %s6708_s9  ;;  %712 = vrot.lane.b32.xlu1 %v541_v10, %s6708_s9 }
 0x160   :  { %698 = vrot.lane.b32.xlu0 %v540_v13, %s6708_s9 }
 0x164   :  { %708 = vrot.lane.b32.xlu0 %v541_v10, %s6690_s22 }
 0x18a   :  { %v546_v49 = vpop.permute.xlu1 %545 }
 0x18b   :  { %549 = vst.msk [vmem:[#allocation2 - $0x1] sm:$0x7e] %vm548_vm0, %v546_v49 }
 0x18e   :  { %v577_v12 = vpop.permute.xlu1 %576 }
 0x18f   :  { %579 = vst.msk [vmem:[#allocation2 + $0xb] sm:$0x7e] %vm548_vm0, %v577_v12 }
 0x192   :  { %v563_v15 = vpop.permute.xlu0 %562  ;;  %v568_v16 = vpop.permute.xlu1 %567 }
 0x193   :  { %565 = vst.msk [vmem:[#allocation2 + $0x5] sm:$0x7e] %vm548_vm0, %v563_v15 }
 0x194   :  { %570 = vst.msk [vmem:[#allocation2 + $0x6] sm:$0x3f] %vm554_vm1, %v568_v16 }
 0x196   :  { %v552_v20 = vpop.permute.xlu0 %551  ;;  %v557_v22 = vpop.permute.xlu1 %556 }
 0x197   :  { %555 = vst.msk [vmem:[#allocation2] sm:$0x3f] %vm554_vm1, %v552_v20 }
 0x198   :  { %560 = vst.msk [vmem:[#allocation2 - $0x1] sm:$0x7e] %vm559_vm2, %v557_v22 }
 0x19a   :  { %v582_v29 = vpop.permute.xlu0 %581  ;;  %v586_v30 = vpop.permute.xlu1 %585 }
 0x19b   :  { %584 = vst.msk [vmem:[#allocation2 + $0xc] sm:$0x3f] %vm554_vm1, %v582_v29 }
 0x19c   :  { %588 = vst.msk [vmem:[#allocation2 + $0xb] sm:$0x7e] %vm559_vm2, %v586_v30 }
 0x19e   :  { %v572_v34 = vpop.permute.xlu0 %571  ;;  %v605_v40 = vpop.permute.xlu1 %604 }
 0x19f   :  { %574 = vst.msk [vmem:[#allocation2 + $0x5] sm:$0x7e] %vm559_vm2, %v572_v34 }
 0x1a0   :  { %607 = vst.msk [vmem:[#allocation2 + $0x17] sm:$0x7e] %vm548_vm0, %v605_v40 }
 0x1a2   :  { %v591_v36 = vpop.permute.xlu0 %590  ;;  %v596_v27 = vpop.permute.xlu1 %595 }
 0x1a3   :  { %593 = vst.msk [vmem:[#allocation2 + $0x11] sm:$0x7e] %vm548_vm0, %v591_v36 }
 0x1a4   :  { %598 = vst.msk [vmem:[#allocation2 + $0x12] sm:$0x3f] %vm554_vm1, %v596_v27 }
 0x1a6   :  { %v619_v38 = vpop.permute.xlu0 %618  ;;  %v716_v25 = vld [vmem:[#allocation2] sm:$0xff]  ;;  %v717_v35 = vld [vmem:[#allocation2 + $0x8] sm:$0xff]  ;;  %v624_v42 = vpop.permute.xlu1 %623 }
 0x1a7   :  { %621 = vst.msk [vmem:[#allocation2 + $0x1d] sm:$0x7e] %vm548_vm0, %v619_v38  ;;  %v725_v37 = vpack.c.bf16 %v717_v35, %v716_v25 }
 0x1a8   :  { %626 = vst.msk [vmem:[#allocation2 + $0x1e] sm:$0x3f] %vm554_vm1, %v624_v42 }
 0x1a9   :  { %5757 = vmatmul.mubr.bf16.vlgmr.msra.gmra.mxu0 %v725_v37 }
 0x1aa   :  { %v610_v60 = vpop.permute.xlu0 %609  ;;  %v614_v17 = vpop.permute.xlu1 %613  ;;  %5760 = vmatprep.mubr.msk.bf16.mxu0 %vm6709_vm15, %v6706_v19 }
 0x1ab   :  { %612 = vst.msk [vmem:[#allocation2 + $0x18] sm:$0x3f] %vm554_vm1, %v610_v60 }
 0x1ac   :  { %616 = vst.msk [vmem:[#allocation2 + $0x17] sm:$0x7e] %vm559_vm2, %v614_v17  ;;  %v5810_v17 = vld [vmem:[#allocation13 + $0x78] sm:$0xff]  }
 0x1ad   :  { %5606 = vmatprep.subr.bf16.mxu1 %v5810_v17 }
 0x1ae   :  { %v600_v43 = vpop.permute.xlu0 %599  ;;  %v648_v44 = vpop.permute.xlu1 %647 }
 0x1af   :  { %602 = vst.msk [vmem:[#allocation2 + $0x11] sm:$0x7e] %vm559_vm2, %v600_v43  ;;  %v5811_v43 = vld [vmem:[#allocation13 + $0x38] sm:$0xff]  }
 0x1b0   :  { %650 = vst.msk [vmem:[#allocation2 + $0x29] sm:$0x7e] %vm548_vm0, %v648_v44  ;;  %5607 = vmatpush3.bf16.msra.mxu1 %v5811_v43 }
 0x1b2   :  { %v628_v33 = vpop.permute.xlu0 %627  ;;  %v653_v45 = vpop.permute.xlu1 %652 }
 0x1b3   :  { %630 = vst.msk [vmem:[#allocation2 + $0x1d] sm:$0x7e] %vm559_vm2, %v628_v33 }
 0x1b4   :  { %655 = vst.msk [vmem:[#allocation2 + $0x2a] sm:$0x3f] %vm554_vm1, %v653_v45 }
 0x1b6   :  { %v634_v7 = vpop.permute.xlu0 %633  ;;  %v657_v18 = vpop.permute.xlu1 %656  ;;  %v718_v59 = vld [vmem:[#allocation2 + $0x10] sm:$0xff] }
 0x1b7   :  { %636 = vst.msk [vmem:[#allocation2 + $0x23] sm:$0x7e] %vm548_vm0, %v634_v7 }
 0x1b8   :  { %659 = vst.msk [vmem:[#allocation2 + $0x29] sm:$0x7e] %vm559_vm2, %v657_v18 }
 0x1ba   :  { %v639_v52 = vpop.permute.xlu0 %638  ;;  %v719_v46 = vld [vmem:[#allocation2 + $0x18] sm:$0xff]  ;;  %v676_v47 = vpop.permute.xlu1 %675 }
 0x1bb   :  { %641 = vst.msk [vmem:[#allocation2 + $0x24] sm:$0x3f] %vm554_vm1, %v639_v52  ;;  %v726_v31 = vpack.c.bf16 %v719_v46, %v718_v59 }
 0x1bc   :  { %678 = vst.msk [vmem:[#allocation2 + $0x35] sm:$0x7e] %vm548_vm0, %v676_v47 }
 0x1bd   :  { %5761 = vmatmul.mubr.bf16.gmra.mxu0 %v726_v31 }
 0x1be   :  { %v643_v56 = vpop.permute.xlu0 %642  ;;  %v667_v48 = vpop.permute.xlu1 %666  ;;  %5764 = vmatprep.mubr.msk.bf16.mxu0 %vm6709_vm15, %v6706_v19 }
 0x1bf   :  { %645 = vst.msk [vmem:[#allocation2 + $0x23] sm:$0x7e] %vm559_vm2, %v643_v56 }
 0x1c2   :  { %v662_v51 = vpop.permute.xlu0 %661  ;;  %v695_v53 = vpop.permute.xlu1 %694 }
 0x1c3   :  { %664 = vst.msk [vmem:[#allocation2 + $0x2f] sm:$0x7e] %vm548_vm0, %v662_v51 }
 0x1c4   :  { %669 = vst.msk [vmem:[#allocation2 + $0x30] sm:$0x3f] %vm554_vm1, %v667_v48 }
 0x1c6   :  { %v690_v50 = vpop.permute.xlu0 %689  ;;  %v720_v32 = vld [vmem:[#allocation2 + $0x20] sm:$0xff]  ;;  %v721_v41 = vld [vmem:[#allocation2 + $0x28] sm:$0xff]  ;;  %v685_v54 = vpop.permute.xlu1 %684 }
 0x1c7   :  { %692 = vst.msk [vmem:[#allocation2 + $0x3b] sm:$0x7e] %vm548_vm0, %v690_v50  ;;  %v727_v55 = vpack.c.bf16 %v721_v41, %v720_v32  ;;  %v5812_v50 = vld [vmem:[#allocation13 + $0x70] sm:$0xff]  }
 0x1c8   :  { %697 = vst.msk [vmem:[#allocation2 + $0x3c] sm:$0x3f] %vm554_vm1, %v695_v53  ;;  %v5813_v32 = vld [vmem:[#allocation13 + $0x30] sm:$0xff]   ;;  %5608 = vmatprep.subr.bf16.mxu1 %v5812_v50 }
 0x1c9   :  { %5765 = vmatmul.mubr.bf16.gmra.mxu0 %v727_v55  ;;  %5609 = vmatpush3.bf16.msra.mxu1 %v5813_v32 }
 0x1ca   :  { %v681_v57 = vpop.permute.xlu0 %680  ;;  %v704_v58 = vpop.permute.xlu1 %703  ;;  %5768 = vmatprep.mubr.msk.bf16.mxu0 %vm6709_vm15, %v6706_v19 }
 0x1cb   :  { %683 = vst.msk [vmem:[#allocation2 + $0x36] sm:$0x3f] %vm554_vm1, %v681_v57 }
 0x1cc   :  { %706 = vst.msk [vmem:[#allocation2 + $0x41] sm:$0x7e] %vm548_vm0, %v704_v58  ;;  %vm1119_vm0 = vcmask 519169  }
 0x1cd   :  { %687 = vst.msk [vmem:[#allocation2 + $0x35] sm:$0x7e] %vm559_vm2, %v685_v54 }
 0x1ce   :  { %v671_v39 = vpop.permute.xlu0 %670  ;;  %v713_v0 = vpop.permute.xlu1 %712 }
 0x1cf   :  { %673 = vst.msk [vmem:[#allocation2 + $0x2f] sm:$0x7e] %vm559_vm2, %v671_v39  ;;  %v5814_v39 = vld [vmem:[#allocation13 + $0x68] sm:$0xff]  }
 0x1d0   :  { %5610 = vmatprep.subr.bf16.mxu1 %v5814_v39 }
 0x1d2   :  { %v699_v61 = vpop.permute.xlu0 %698 }
 0x1d3   :  { %701 = vst.msk [vmem:[#allocation2 + $0x3b] sm:$0x7e] %vm559_vm2, %v699_v61  ;;  %v5815_v61 = vld [vmem:[#allocation13 + $0x28] sm:$0xff]  }
 0x1d4   :  { %5611 = vmatpush3.bf16.msra.mxu1 %v5815_v61  ;;  %v5826_v61 = vld [vmem:[#allocation13 + $0xf8] sm:$0xff]  }
 0x1d6   :  { %v709_v63 = vpop.permute.xlu0 %708  ;;  %v722_v62 = vld [vmem:[#allocation2 + $0x30] sm:$0xff] }
 0x1d7   :  { %711 = vst.msk [vmem:[#allocation2 + $0x42] sm:$0x3f] %vm554_vm1, %v709_v63 }
 0x1d8   :  { %715 = vst.msk [vmem:[#allocation2 + $0x41] sm:$0x7e] %vm559_vm2, %v713_v0  ;;  %vm1194_vm2 = vcmask 522244  }
 0x1da   :  { %v723_v1 = vld [vmem:[#allocation2 + $0x38] sm:$0xff] }
 0x1db   :  { %v728_v3 = vpack.c.bf16 %v723_v1, %v722_v62 }
 0x1dd   :  { %5769 = vmatmul.mubr.bf16.gmra.mxu0 %v728_v3 }
 0x1de   :  { %5772 = vmatprep.mubr.msk.bf16.mxu0 %vm6709_vm15, %v6706_v19 }
 0x1df   :  { %v724_v4 = vld [vmem:[#allocation2 + $0x40] sm:$0xff] }
 0x1e0   :  { %v729_v5 = vpack.c.bf16 %v724_v4, %v724_v4 }
 0x1e5   :  { %5773 = vmatmul.mubr.bf16.gmra.mxu0 %v729_v5 }
 0x269   :  { %v835_v8 = vpop.f32.mrf.mxu0 }
 0x26a   :  { %v836_v11 = vadd.f32 %v7156_v6, %v835_v8 }
 0x26b   :  { %v5758_v13 = vpop.f32.mrf.mxu0 }
 0x26c   :  { %vm874_vm3 = vcmp.gt.f32.partialorder %v836_v11, 0.0  ;;  %v884_v14 = vmul.f32 %v7158_v9, %v836_v11  ;;  %v5817_v13 = vld [vmem:[#allocation13 + $0x20] sm:$0xff]  }
 0x26d   :  { %v838_v10 = vpop.f32.mrf.mxu0 }
 0x26e   :  { %v7162_v49 = vsel %vm874_vm3, %v836_v11, %v884_v14  ;;  %v839_v19 = vadd.f32 %v7156_v6, %v838_v10  ;;  %v5816_v11 = vld [vmem:[#allocation13 + $0x60] sm:$0xff]   ;;  %v5818_v14 = vld [vmem:[#allocation13 + $0x58] sm:$0xff]   ;;  %vm1128_vm3 = vcmask 1042432  }
 0x26f   :  { %v5759_v12 = vpop.f32.mrf.mxu0  ;;  %v914_v15 = vrot.slane %v7162_v49, 3  ;;  %v905_v16 = vrot.slane %v7162_v49, 1  ;;  %903 = vst.msk [vmem:[#allocation3] sm:$0x7] %vm902_vm4, %v7162_v49  ;;  %v911_v22 = vrot.slane %v7162_v49, 2  ;;  %v982_v30 = vrot.slane %v7162_v49, 4  ;;  %5612 = vmatprep.subr.bf16.mxu1 %v5816_v11 }
 0x270   :  { %vm875_vm5 = vcmp.gt.f32.partialorder %v839_v19, 0.0  ;;  %v885_v20 = vmul.f32 %v7158_v9, %v839_v19  ;;  %v921_v27 = vrot.slane %v7162_v49, 6  ;;  %5613 = vmatpush3.bf16.msra.mxu1 %v5817_v13 }
 0x271   :  { %915 = vrot.lane.b32.xlu0 %v914_v15, %s6690_s22  ;;  %906 = vrot.lane.b32.xlu1 %v905_v16, %s6690_s22  ;;  %913 = vst.msk [vmem:[#allocation3 + $0x8] sm:$0x7] %vm902_vm4, %v911_v22  ;;  %v5819_v22 = vld [vmem:[#allocation13 + $0x18] sm:$0xff]  }
 0x272   :  { %v7173_v29 = vsel %vm875_vm5, %v839_v19, %v885_v20  ;;  %5614 = vmatprep.subr.bf16.mxu1 %v5818_v14  ;;  %vm1256_vm5 = vcmask 523271  }
 0x273   :  { %v7178_v34 = vrot.slane %v7173_v29, 6  ;;  %v7181_v40 = vrot.slane %v7173_v29, 4  ;;  %v935_v36 = vrot.slane %v7173_v29, 1  ;;  %934 = vst.msk [vmem:[#allocation3 + $0x18] sm:$0x7] %vm902_vm4, %v7173_v29  ;;  %v943_v38 = vrot.slane %v7173_v29, 5 }
 0x274   :  { %1051 = vst.msk [vmem:[#allocation3 + $0x8] sm:$0xc0] %vm1040_vm6, %v7173_v29  ;;  %v976_v25 = vrot.slane %v7173_v29, 3  ;;  %v7211_v60 = vrot.slane %v7173_v29, 7  ;;  %5615 = vmatpush3.bf16.msra.mxu1 %v5819_v22 }
 0x275   :  { %991 = vrot.lane.b32.xlu1 %v7178_v34, %s6690_s22  ;;  %v983_v35 = vsel %vm981_vm7, %v982_v30, %v7181_v40  ;;  %942 = vst.msk [vmem:[#allocation3 + $0x20] sm:$0x7] %vm902_vm4, %v7181_v40  ;;  %v923_v42 = vsel %vm920_vm8, %v921_v27, %v7178_v34 }
 0x276   :  { %996 = vst.msk [vmem:[#allocation3 + $0x10] sm:$0x38] %vm979_vm9, %v935_v36  ;;  %984 = vrot.lane.b32.xlu0 %v983_v35, %s6690_s22  ;;  %990 = vst.msk [vmem:[#allocation3 + $0x8] sm:$0x38] %vm979_vm9, %v943_v38  ;;  %v977_v37 = vsel %vm975_vm10, %v914_v15, %v976_v25 }
 0x277   :  { %1041 = vst.msk [vmem:[#allocation3] sm:$0xc0] %vm1040_vm6, %v7178_v34 }
 0x278   :  { %1043 = vst.msk [vmem:[#allocation3 + $0x40] sm:$0x1] %vm1042_vm11, %v7178_v34 }
 0x279   :  { %925 = vst.msk [vmem:[#allocation3 + $0x10] sm:$0x7] %vm902_vm4, %v923_v42  ;;  %1044 = vrot.lane.b32.xlu1 %v7211_v60, %s6690_s22 }
 0x27a   :  { %980 = vst.msk [vmem:[#allocation3] sm:$0x38] %vm979_vm9, %v977_v37  ;;  %v5821_v37 = vld [vmem:[#allocation13 + $0x10] sm:$0xff]  }
 0x27d   :  { %936 = vrot.lane.b32.xlu1 %v935_v36, %s6690_s22  ;;  %v843_v44 = vpop.f32.mrf.mxu0 }
 0x27e   :  { %v844_v33 = vadd.f32 %v7156_v6, %v843_v44 }
 0x27f   :  { %v5762_v45 = vpop.f32.mrf.mxu0 }
 0x280   :  { %vm876_vm12 = vcmp.gt.f32.partialorder %v844_v33, 0.0  ;;  %v886_v7 = vmul.f32 %v7158_v9, %v844_v33 }
 0x281   :  { %v846_v18 = vpop.f32.mrf.mxu0 }
 0x282   :  { %v7219_v52 = vsel %vm876_vm12, %v844_v33, %v886_v7  ;;  %v847_v59 = vadd.f32 %v7156_v6, %v846_v18  ;;  %v5822_v18 = vld [vmem:[#allocation13 + $0x48] sm:$0xff]  }
 0x283   :  { %v5763_v46 = vpop.f32.mrf.mxu0  ;;  %v1016_v47 = vrot.slane %v7219_v52, 1  ;;  %v7224_v31 = vrot.slane %v7219_v52, 4  ;;  %v7227_v56 = vrot.slane %v7219_v52, 7  ;;  %1052 = vst.msk [vmem:[#allocation3 + $0x48] sm:$0x1] %vm1042_vm11, %v7219_v52  ;;  %v959_v51 = vrot.slane %v7219_v52, 2 }
 0x284   :  { %vm877_vm14 = vcmp.gt.f32.partialorder %v847_v59, 0.0  ;;  %v887_v48 = vmul.f32 %v7158_v9, %v847_v59  ;;  %v962_v53 = vrot.slane %v7219_v52, 3  ;;  %v949_v55 = vrot.slane %v7219_v52, 6  ;;  %v5824_v46 = vld [vmem:[#allocation13 + $0x40] sm:$0xff]  }
 0x285   :  { %1057 = vrot.lane.b32.xlu1 %v1016_v47, %s6690_s22  ;;  %v1054_v41 = vsel %vm1053_vm13, %v935_v36, %v1016_v47  ;;  %969 = vst.msk [vmem:[#allocation3 + $0x38] sm:$0x7] %vm902_vm4, %v7224_v31  ;;  %961 = vst.msk [vmem:[#allocation3 + $0x30] sm:$0x7] %vm902_vm4, %v959_v51 }
 0x286   :  { %1011 = vst.msk [vmem:[#allocation3 + $0x20] sm:$0x38] %vm979_vm9, %v7227_v56  ;;  %1018 = vst.msk [vmem:[#allocation3 + $0x28] sm:$0x38] %vm979_vm9, %v1016_v47  ;;  %v7245_v54 = vsel %vm877_vm14, %v847_v59, %v887_v48  ;;  %1055 = vrot.lane.b32.xlu0 %v1054_v41, %s6690_s22  ;;  %v1002_v57 = vsel %vm975_vm10, %v976_v25, %v962_v53  ;;  %v950_v63 = vsel %vm920_vm8, %v7178_v34, %v949_v55  ;;  %v5820_v34 = vld [vmem:[#allocation13 + $0x50] sm:$0xff]   ;;  %v5823_v59 = vld [vmem:[#allocation13 + $0x8] sm:$0xff]  }
 0x287   :  { %1063 = vst.msk [vmem:[#allocation3 + $0x10] sm:$0xc0] %vm1040_vm6, %v7224_v31  ;;  %v1024_v58 = vrot.slane %v7245_v54, 5  ;;  %1094 = vst.msk [vmem:[#allocation3 + $0x30] sm:$0xc0] %vm1040_vm6, %v7245_v54  ;;  %v1085_v0 = vrot.slane %v7245_v54, 4  ;;  %5616 = vmatprep.subr.bf16.mxu1 %v5820_v34 }
 0x288   :  { %1064 = vst.msk [vmem:[#allocation3 + $0x50] sm:$0x1] %vm1042_vm11, %v7224_v31  ;;  %1069 = vst.msk [vmem:[#allocation3 + $0x58] sm:$0x1] %vm1042_vm11, %v949_v55  ;;  %v1032_v62 = vrot.slane %v7245_v54, 7  ;;  %v1075_v1 = vrot.slane %v7245_v54, 2  ;;  %5617 = vmatpush3.bf16.msra.mxu1 %v5821_v37 }
 0x289   :  { %1004 = vst.msk [vmem:[#allocation3 + $0x18] sm:$0x38] %vm979_vm9, %v1002_v57  ;;  %v851_v3 = vpop.f32.mrf.mxu0  ;;  %1026 = vst.msk [vmem:[#allocation3 + $0x30] sm:$0x38] %vm979_vm9, %v1024_v58  ;;  %5618 = vmatprep.subr.bf16.mxu1 %v5822_v18  ;;  %v5825_v47 = vld [vmem:[#allocation13] sm:$0xff]   ;;  %vm1049_vm14 = vcmask 1040896  }
 0x28a   :  { %1068 = vst.msk [vmem:[#allocation3 + $0x18] sm:$0xc0] %vm1040_vm6, %v949_v55  ;;  %v852_v4 = vadd.f32 %v7156_v6, %v851_v3  ;;  %1087 = vst.msk [vmem:[#allocation3 + $0x28] sm:$0xc0] %vm1040_vm6, %v1085_v0 }
 0x28b   :  { %952 = vst.msk [vmem:[#allocation3 + $0x28] sm:$0x7] %vm902_vm4, %v950_v63  ;;  %v5766_v5 = vpop.f32.mrf.mxu0 }
 0x28c   :  { %1088 = vst.msk [vmem:[#allocation3 + $0x68] sm:$0x1] %vm1042_vm11, %v1085_v0  ;;  %1078 = vst.msk [vmem:[#allocation3 + $0x60] sm:$0x1] %vm1042_vm11, %v1075_v1  ;;  %vm878_vm15 = vcmp.gt.f32.partialorder %v852_v4, 0.0  ;;  %v888_v8 = vmul.f32 %v7158_v9, %v852_v4  ;;  %5619 = vmatpush3.bf16.msra.mxu1 %v5823_v59  ;;  %v970_v59 = vrot.slane %v7219_v52, 5 }
 0x28d   :  { %1034 = vst.msk [vmem:[#allocation3 + $0x38] sm:$0x38] %vm979_vm9, %v1032_v62  ;;  %v854_v10 = vpop.f32.mrf.mxu0  ;;  %5620 = vmatprep.subr.bf16.mxu1 %v5824_v46  ;;  %v997_v46 = vrot.slane %v7173_v29, 2 }
 0x28e   :  { %1077 = vst.msk [vmem:[#allocation3 + $0x20] sm:$0xc0] %vm1040_vm6, %v1075_v1  ;;  %v7277_v19 = vsel %vm878_vm15, %v852_v4, %v888_v8  ;;  %v855_v12 = vadd.f32 %v7156_v6, %v854_v10  ;;  %vm1125_vm15 = vcmask 1043969  }
 0x28f   :  { %v5767_v15 = vpop.f32.mrf.mxu0  ;;  %v1121_v16 = vrot.slane %v7277_v19, 4  ;;  %v1112_v20 = vrot.slane %v7277_v19, 3  ;;  %1095 = vst.msk [vmem:[#allocation3 + $0x70] sm:$0x1] %vm1042_vm11, %v7277_v19  ;;  %v1108_v36 = vrot.slane %v7277_v19, 2  ;;  %v1129_v17 = vrot.slane %v7277_v19, 5 }
 0x290   :  { %vm879_vm1 = vcmp.gt.f32.partialorder %v855_v12, 0.0  ;;  %v889_v30 = vmul.f32 %v7158_v9, %v855_v12  ;;  %v1134_v33 = vrot.slane %v7277_v19, 6  ;;  %5621 = vmatpush3.bf16.msra.mxu1 %v5825_v47 }
 0x291   :  { %1122 = vrot.lane.b32.xlu0 %v1121_v16, %s6690_s22  ;;  %1120 = vst.msk [vmem:[#allocation3 + $0x40] sm:$0xe] %vm1119_vm0, %v1112_v20  ;;  %5634 = vmatprep.subr.bf16.mxu1 %v5826_v61  ;;  %v1079_v61 = vrot.slane %v7245_v54, 3 }
 0x292   :  { %v7290_v27 = vsel %vm879_vm1, %v855_v12, %v889_v30  ;;  %1110 = vst.msk [vmem:[#allocation3 + $0x38] sm:$0xc0] %vm1040_vm6, %v1108_v36  ;;  %vm1258_vm6 = vcmask 517120   ;;  %v1005_v12 = vsel %vm981_vm7, %v7181_v40, %v7224_v31  ;;  %vm926_vm7 = vcmask 1040384  }
 0x293   :  { %1111 = vst.msk [vmem:[#allocation3 + $0x78] sm:$0x1] %vm1042_vm11, %v1108_v36  ;;  %v1196_v25 = vrot.slane %v7290_v27, 7  ;;  %v1141_v35 = vrot.slane %v7290_v27, 1  ;;  %v1135_v42 = vrot.slane %v7290_v27, 6  ;;  %v1130_v43 = vrot.slane %v7290_v27, 5 }
 0x294   :  { %1202 = vst.msk [vmem:[#allocation3 + $0x48] sm:$0x70] %vm1194_vm2, %v7290_v27  ;;  %v1149_v44 = vrot.slane %v7290_v27, 3  ;;  %vm1220_vm11 = vcmask 1045504   ;;  %v1152_v37 = vrot.slane %v7290_v27, 4  ;;  %v1144_v47 = vrot.slane %v7290_v27, 2 }
 0x295   :  { %1197 = vrot.lane.b32.xlu0 %v1196_v25, %s6690_s22  ;;  %1203 = vrot.lane.b32.xlu1 %v1141_v35, %s6690_s22  ;;  %1143 = vst.msk [vmem:[#allocation3 + $0x50] sm:$0xe] %vm1119_vm0, %v1141_v35  ;;  %v1131_v45 = vsel %vm1128_vm3, %v1129_v17, %v1130_v43  ;;  %v1136_v7 = vsel %vm920_vm8, %v1134_v33, %v1135_v42  ;;  %v927_v25 = vrot.slane %v7162_v49, 7  ;;  %v5842_v27 = vld [vmem:[#allocation13 + $0x170] sm:$0xff]   ;;  %vm1260_vm1 = vcmask 1048071  }
 0x296   :  { %1195 = vst.msk [vmem:[#allocation3 + $0x40] sm:$0x70] %vm1194_vm2, %v1135_v42 }
 0x297   :  { %1151 = vst.msk [vmem:[#allocation3 + $0x58] sm:$0xe] %vm1119_vm0, %v1149_v44  ;;  %1133 = vst.msk [vmem:[#allocation3 + $0x48] sm:$0xe] %vm1119_vm0, %v1131_v45  ;;  %v929_v44 = vsel %vm926_vm7, %v927_v25, %v7211_v60 }
 0x299   :  { %1137 = vrot.lane.b32.xlu0 %v1136_v7, %s6690_s22 }
 0x29d   :  { %v859_v48 = vpop.f32.mrf.mxu0 }
 0x29e   :  { %v860_v50 = vadd.f32 %v7156_v6, %v859_v48  ;;  %v5837_v48 = vld [vmem:[#allocation13 + $0x178] sm:$0xff]  }
 0x29f   :  { %v5770_v32 = vpop.f32.mrf.mxu0  ;;  %5662 = vmatprep.subr.bf16.mxu0 %v5837_v48 }
 0x2a0   :  { %vm880_vm4 = vcmp.gt.f32.partialorder %v860_v50, 0.0  ;;  %v890_v41 = vmul.f32 %v7158_v9, %v860_v50  ;;  %v5839_v32 = vld [vmem:[#allocation13 + $0x138] sm:$0xff]  }
 0x2a1   :  { %v862_v55 = vpop.f32.mrf.mxu0  ;;  %5663 = vmatpush3.bf16.msra.mxu0 %v5839_v32  ;;  %v5830_v32 = vld [vmem:[#allocation13 + $0xe8] sm:$0xff]  }
 0x2a2   :  { %v7314_v57 = vsel %vm880_vm4, %v860_v50, %v890_v41  ;;  %v863_v39 = vadd.f32 %v7156_v6, %v862_v55  ;;  %v954_v50 = vsel %vm926_vm7, %v7211_v60, %v7227_v56  ;;  %v5843_v41 = vld [vmem:[#allocation13 + $0x130] sm:$0xff]   ;;  %5664 = vmatprep.subr.bf16.mxu0 %v5842_v27  ;;  %v5846_v60 = vld [vmem:[#allocation13 + $0x168] sm:$0xff]   ;;  %v5854_v55 = vld [vmem:[#allocation13 + $0x158] sm:$0xff]  }
 0x2a3   :  { %v5771_v63 = vpop.f32.mrf.mxu0  ;;  %v1207_v0 = vrot.slane %v7314_v57, 4  ;;  %v1168_v62 = vrot.slane %v7314_v57, 2  ;;  %v7320_v1 = vrot.slane %v7314_v57, 7  ;;  %v7324_v4 = vrot.slane %v7314_v57, 3 }
 0x2a4   :  { %vm881_vm9 = vcmp.gt.f32.partialorder %v863_v39, 0.0  ;;  %v891_v3 = vmul.f32 %v7158_v9, %v863_v39  ;;  %v1179_v5 = vrot.slane %v7314_v57, 6  ;;  %v1165_v11 = vrot.slane %v7314_v57, 1 }
 0x2a5   :  { %1267 = vrot.lane.b32.xlu0 %v1207_v0, %s6690_s22  ;;  %1209 = vst.msk [vmem:[#allocation3 + $0x50] sm:$0x70] %vm1194_vm2, %v1207_v0  ;;  %1169 = vrot.lane.b32.xlu1 %v1168_v62, %s6690_s22  ;;  %v867_v8 = vpop.f32.mrf.mxu0  ;;  %v1098_v63 = vrot.slane %v7277_v19, 1  ;;  %v5858_v0 = vld [vmem:[#allocation13 + $0x150] sm:$0xff]  }
 0x2a6   :  { %1160 = vst.msk [vmem:[#allocation3 + $0x60] sm:$0xe] %vm1119_vm0, %v7320_v1  ;;  %v7335_v13 = vsel %vm881_vm9, %v863_v39, %v891_v3  ;;  %v868_v14 = vadd.f32 %v7156_v6, %v867_v8  ;;  %v1174_v6 = vrot.slane %v7314_v57, 5  ;;  %1167 = vst.msk [vmem:[#allocation3 + $0x68] sm:$0xe] %vm1119_vm0, %v1165_v11  ;;  %5665 = vmatpush3.bf16.msra.mxu0 %v5843_v41  ;;  %v5856_v39 = vld [vmem:[#allocation13 + $0x118] sm:$0xff]  }
 0x2a7   :  { %1274 = vst.msk [vmem:[#allocation3 + $0x50] sm:$0x80] %vm1256_vm5, %v7320_v1  ;;  %1265 = vst.msk [vmem:[#allocation3 + $0x48] sm:$0x80] %vm1256_vm5, %v7324_v4  ;;  %v5774_v10 = vpop.f32.mrf.mxu0  ;;  %v7352_v15 = vrot.slane %v7335_v13, 2  ;;  %v7355_v16 = vrot.slane %v7335_v13, 5  ;;  %5666 = vmatprep.subr.bf16.mxu0 %v5846_v60 }
 0x2a8   :  { %1215 = vst.msk [vmem:[#allocation3 + $0x58] sm:$0x70] %vm1194_vm2, %v1179_v5  ;;  %1239 = vst.msk [vmem:[#allocation3 + $0x70] sm:$0x70] %vm1194_vm2, %v7335_v13  ;;  %vm882_vm12 = vcmp.gt.f32.partialorder %v868_v14, 0.0  ;;  %v892_v22 = vmul.f32 %v7158_v9, %v868_v14  ;;  %v7362_v30 = vrot.slane %v7335_v13, 1 }
 0x2a9   :  { %1266 = vst.msk [vmem:[#allocation3 + $0x88] sm:$0x3] %vm1258_vm6, %v7324_v4  ;;  %1259 = vst.msk [vmem:[#allocation3 + $0x80] sm:$0x3] %vm1258_vm6, %v1165_v11  ;;  %v1186_v40 = vrot.slane %v7335_v13, 7  ;;  %1006 = vrot.lane.b32.xlu0 %v1005_v12, %s6690_s22  ;;  %1070 = vrot.lane.b32.xlu1 %v7227_v56, %s6690_s22  ;;  %v870_v31 = vpop.f32.mrf.mxu0  ;;  %v1232_v9 = vrot.slane %v7335_v13, 4  ;;  %v1222_v34 = vsel %vm1220_vm11, %v1168_v62, %v7352_v15 }
 0x2aa   :  { %1257 = vst.msk [vmem:[#allocation3 + $0x40] sm:$0x80] %vm1256_vm5, %v1165_v11  ;;  %1287 = vst.msk [vmem:[#allocation3 + $0x60] sm:$0x80] %vm1256_vm5, %v7355_v16  ;;  %v7375_v36 = vsel %vm882_vm12, %v868_v14, %v892_v22  ;;  %v1176_v49 = vsel %vm1128_vm3, %v1174_v6, %v7355_v16  ;;  %v5847_v56 = vld [vmem:[#allocation13 + $0x128] sm:$0xff]   ;;  %v5860_v62 = vld [vmem:[#allocation13 + $0x110] sm:$0xff]  }
 0x2ab   :  { %1288 = vst.msk [vmem:[#allocation3 + $0xa0] sm:$0x3] %vm1258_vm6, %v7355_v16  ;;  %1280 = vst.msk [vmem:[#allocation3 + $0x98] sm:$0x3] %vm1258_vm6, %v7362_v30  ;;  %v1272_v35 = vsel %vm926_vm7, %v7320_v1, %v1186_v40  ;;  %v5775_v42 = vpop.f32.mrf.mxu0  ;;  %v7393_v17 = vrot.slane %v7375_v36, 3  ;;  %v1246_v43 = vrot.slane %v7375_v36, 2  ;;  %5667 = vmatpush3.bf16.msra.mxu0 %v5847_v56 }
 0x2ac   :  { %1279 = vst.msk [vmem:[#allocation3 + $0x58] sm:$0x80] %vm1256_vm5, %v7362_v30  ;;  %1297 = vst.msk [vmem:[#allocation3 + $0x68] sm:$0x80] %vm1256_vm5, %v1186_v40  ;;  %v1313_v33 = vrot.slane %v7375_v36, 5  ;;  %v1294_v45 = vrot.slane %v7375_v36, 7 }
 0x2ad   :  { %1188 = vst.msk [vmem:[#allocation3 + $0x78] sm:$0xe] %vm1119_vm0, %v1186_v40  ;;  %1178 = vst.msk [vmem:[#allocation3 + $0x70] sm:$0xe] %vm1119_vm0, %v1176_v49  ;;  %1153 = vrot.lane.b32.xlu0 %v1152_v37, %s6690_s22  ;;  %930 = vrot.lane.b32.xlu1 %v929_v44, %s6690_s22  ;;  %v1247_v7 = vsel %vm1220_vm11, %v7352_v15, %v1246_v43  ;;  %v5864_v3 = vld [vmem:[#allocation13 + $0x108] sm:$0xff]   ;;  %v5866_v8 = vld [vmem:[#allocation13 + $0x140] sm:$0xff]  }
 0x2ae   :  { %1224 = vst.msk [vmem:[#allocation3 + $0x60] sm:$0x70] %vm1194_vm2, %v1222_v34  ;;  %1234 = vst.msk [vmem:[#allocation3 + $0x68] sm:$0x70] %vm1194_vm2, %v1232_v9  ;;  %v1295_v18 = vsel %vm926_vm7, %v1186_v40, %v1294_v45  ;;  %v5868_v11 = vld [vmem:[#allocation13 + $0x100] sm:$0xff]   ;;  %v1180_v19 = vrot.slane %v7335_v13, 6 }
 0x2af   :  { %1275 = vst.msk [vmem:[#allocation3 + $0x90] sm:$0x3] %vm1258_vm6, %v1272_v35  ;;  %1306 = vst.msk [vmem:[#allocation3 + $0xb0] sm:$0x3] %vm1258_vm6, %v7393_v17  ;;  %vm1200_vm0 = vcmask 1047044   ;;  %v5831_v56 = vld [vmem:[#allocation13 + $0xa8] sm:$0xff]  }
 0x2b0   :  { %1305 = vst.msk [vmem:[#allocation3 + $0x70] sm:$0x80] %vm1256_vm5, %v7393_v17  ;;  %1315 = vst.msk [vmem:[#allocation3 + $0x78] sm:$0x80] %vm1256_vm5, %v1313_v33 }
 0x2b1   :  { %1249 = vst.msk [vmem:[#allocation3 + $0x78] sm:$0x70] %vm1194_vm2, %v1247_v7  ;;  %971 = vrot.lane.b32.xlu0 %v970_v59, %s6690_s22  ;;  %998 = vrot.lane.b32.xlu1 %v997_v46, %s6690_s22  ;;  %vm1262_vm2 = vcmask 1041920   ;;  %v5828_v59 = vld [vmem:[#allocation13 + $0xf0] sm:$0xff]  }
 0x2b2   :  { %1316 = vst.msk [vmem:[#allocation3 + $0xb8] sm:$0x3] %vm1258_vm6, %v1313_v33  ;;  %1298 = vst.msk [vmem:[#allocation3 + $0xa8] sm:$0x3] %vm1258_vm6, %v1295_v18  ;;  %v5827_v18 = vld [vmem:[#allocation13 + $0xb8] sm:$0xff]   ;;  %vm5106_vm6 = vcmask 25600  }
 0x2b5   :  { %1145 = vrot.lane.b32.xlu0 %v1144_v47, %s6690_s22  ;;  %1161 = vrot.lane.b32.xlu1 %v7314_v57, %s6690_s22  ;;  %v1307_v57 = vrot.slane %v7375_v36, 4 }
 0x2b9   :  { %955 = vrot.lane.b32.xlu0 %v954_v50, %s6690_s22  ;;  %1019 = vrot.lane.b32.xlu1 %v959_v51, %s6690_s22  ;;  %v5850_v51 = vld [vmem:[#allocation13 + $0x160] sm:$0xff]   ;;  %v5829_v50 = vld [vmem:[#allocation13 + $0xb0] sm:$0xff]  }
 0x2ba   :  { %5668 = vmatprep.subr.bf16.mxu0 %v5850_v51 }
 0x2bd   :  { %1089 = vrot.lane.b32.xlu0 %v1024_v58, %s6690_s22  ;;  %1216 = vrot.lane.b32.xlu1 %v7320_v1, %s6690_s22  ;;  %v5852_v58 = vld [vmem:[#allocation13 + $0x120] sm:$0xff]   ;;  %v1097_v1 = vrot.slane %v7245_v54, 1 }
 0x2be   :  { %5669 = vmatpush3.bf16.msra.mxu0 %v5852_v58  ;;  %v5832_v58 = vld [vmem:[#allocation13 + $0xe0] sm:$0xff]  }
 0x2bf   :  { %5670 = vmatprep.subr.bf16.mxu0 %v5854_v55  ;;  %v1099_v29 = vsel %vm1053_vm13, %v1097_v1, %v1098_v63  ;;  %vm909_vm13 = vcmask 1042944   ;;  %v5835_v1 = vld [vmem:[#allocation13 + $0x98] sm:$0xff]  }
 0x2c1   :  { %1210 = vrot.lane.b32.xlu0 %v1174_v6, %s6690_s22  ;;  %1189 = vrot.lane.b32.xlu1 %v7335_v13, %s6690_s22 }
 0x2c2   :  { %5671 = vmatpush3.bf16.msra.mxu0 %v5856_v39 }
 0x2c3   :  { %5672 = vmatprep.subr.bf16.mxu0 %v5858_v0 }
 0x2c5   :  { %1012 = vrot.lane.b32.xlu1 %v7219_v52, %s6690_s22  ;;  %1281 = vrot.lane.b32.xlu0 %v7352_v15, %s6690_s22  ;;  %v1027_v52 = vrot.slane %v7245_v54, 6 }
 0x2c6   :  { %5673 = vmatpush3.bf16.msra.mxu0 %v5860_v62 }
 0x2c9   :  { %1035 = vrot.lane.b32.xlu1 %v7245_v54, %s6690_s22  ;;  %944 = vrot.lane.b32.xlu0 %v943_v38, %s6690_s22  ;;  %v5862_v38 = vld [vmem:[#allocation13 + $0x148] sm:$0xff]   ;;  %v1181_v54 = vsel %vm920_vm8, %v1179_v5, %v1180_v19  ;;  %vm987_vm8 = vcmask 1046019  }
 0x2ca   :  { %5674 = vmatprep.subr.bf16.mxu0 %v5862_v38 }
 0x2cb   :  { %5675 = vmatpush3.bf16.msra.mxu0 %v5864_v3 }
 0x2cc   :  { %5676 = vmatprep.subr.bf16.mxu0 %v5866_v8 }
 0x2cd   :  { %963 = vrot.lane.b32.xlu1 %v962_v53, %s6690_s22  ;;  %1080 = vrot.lane.b32.xlu0 %v1079_v61, %s6690_s22  ;;  %v1226_v53 = vrot.slane %v7335_v13, 3  ;;  %v5833_v61 = vld [vmem:[#allocation13 + $0xa0] sm:$0xff]  }
 0x2cf   :  { %v1227_v14 = vsel %vm975_vm10, %v7324_v4, %v1226_v53  ;;  %5677 = vmatpush3.bf16.msra.mxu0 %v5868_v11  ;;  %v1251_v4 = vsel %vm975_vm10, %v1226_v53, %v7393_v17  ;;  %vm1047_vm10 = vcmask 1048070   ;;  %v5840_v53 = vld [vmem:[#allocation13 + $0xc8] sm:$0xff]  }
 0x2d1   :  { %1100 = vrot.lane.b32.xlu1 %v1099_v29, %s6690_s22  ;;  %1113 = vrot.lane.b32.xlu0 %v1112_v20, %s6690_s22  ;;  %v1317_v20 = vrot.slane %v7375_v36, 6  ;;  %v5836_v29 = vld [vmem:[#allocation13 + $0xd0] sm:$0xff]  }
 0x2d5   :  { %1028 = vrot.lane.b32.xlu0 %v1027_v52, %s6690_s22  ;;  %1235 = vrot.lane.b32.xlu1 %v7355_v16, %s6690_s22  ;;  %v5838_v52 = vld [vmem:[#allocation13 + $0x90] sm:$0xff]  }
 0x2d9   :  { %1102 = vrot.lane.b32.xlu0 %v1098_v63, %s6690_s22  ;;  %1228 = vrot.lane.b32.xlu1 %v1227_v14, %s6690_s22  ;;  %v5834_v63 = vld [vmem:[#allocation13 + $0xd8] sm:$0xff]   ;;  %v5841_v14 = vld [vmem:[#allocation13 + $0x88] sm:$0xff]  }
 0x2dd   :  { %1289 = vrot.lane.b32.xlu0 %v1180_v19, %s6690_s22  ;;  %1182 = vrot.lane.b32.xlu1 %v1181_v54, %s6690_s22  ;;  %v5844_v19 = vld [vmem:[#allocation13 + $0xc0] sm:$0xff]  }
 0x2e1   :  { %1318 = vrot.lane.b32.xlu0 %v1317_v20, %s6690_s22  ;;  %1252 = vrot.lane.b32.xlu1 %v1251_v4, %s6690_s22  ;;  %v5845_v4 = vld [vmem:[#allocation13 + $0x80] sm:$0xff]  }
 0x2e3   :  { %v907_v13 = vpop.permute.xlu1 %906  ;;  %v916_v10 = vpop.permute.xlu0 %915 }
 0x2e4   :  { %910 = vst.msk [vmem:[#allocation3] sm:$0x7] %vm909_vm13, %v907_v13  ;;  %918 = vst.msk [vmem:[#allocation3 + $0x8] sm:$0x7] %vm909_vm13, %v916_v10  ;;  %v5848_v13 = vld [vmem:[#allocation13 + $0x1f8] sm:$0xff]  }
 0x2e5   :  { %1241 = vrot.lane.b32.xlu0 %v7362_v30, %s6690_s22  ;;  %1308 = vrot.lane.b32.xlu1 %v1307_v57, %s6690_s22 }
 0x2e7   :  { %v992_v5 = vpop.permute.xlu1 %991 }
 0x2e8   :  { %994 = vst.msk [vmem:[#allocation3 + $0x8] sm:$0x38] %vm987_vm8, %v992_v5  ;;  %v985_v12 = vpop.permute.xlu0 %984 }
 0x2e9   :  { %988 = vst.msk [vmem:[#allocation3] sm:$0x38] %vm987_vm8, %v985_v12  ;;  %1299 = vrot.lane.b32.xlu0 %v7375_v36, %s6690_s22  ;;  %s5205_s22 = sld [smem:[#allocation5 + $0x2]] }
 0x2eb   :  { %v1045_v6 = vpop.permute.xlu1 %1044 }
 0x2ec   :  { %1048 = vst.msk [vmem:[#allocation3] sm:$0xc0] %vm1047_vm10, %v1045_v6 }
 0x2ed   :  { %1050 = vst.msk [vmem:[#allocation3 + $0x40] sm:$0x1] %vm1049_vm14, %v1045_v6 }
 0x2ef   :  { %v937_v15 = vpop.permute.xlu1 %936 }
 0x2f0   :  { %939 = vst.msk [vmem:[#allocation3 + $0x18] sm:$0x7] %vm909_vm13, %v937_v15 }
 0x2f3   :  { %v1323_v42 = vld [vmem:[#allocation3] sm:$0xff] }
 0x2f7   :  { %v1058_v16 = vpop.permute.xlu1 %1057 }
 0x2f8   :  { %1062 = vst.msk [vmem:[#allocation3 + $0x48] sm:$0x1] %vm1049_vm14, %v1058_v16  ;;  %v1056_v22 = vpop.permute.xlu0 %1055 }
 0x2f9   :  { %1061 = vst.msk [vmem:[#allocation3 + $0x8] sm:$0xc0] %vm1047_vm10, %v1056_v22 }
 0x300   :  { %v1324_v49 = vld [vmem:[#allocation3 + $0x8] sm:$0xff] }
 0x303   :  { %v1123_v30 = vpop.permute.xlu0 %1122 }
 0x304   :  { %1126 = vst.msk [vmem:[#allocation3 + $0x40] sm:$0xe] %vm1125_vm15, %v1123_v30  ;;  %v5849_v30 = vld [vmem:[#allocation13 + $0x1b8] sm:$0xff]  }
 0x307   :  { %v1204_v40 = vpop.permute.xlu1 %1203  ;;  %v1198_v31 = vpop.permute.xlu0 %1197 }
 0x308   :  { %1206 = vst.msk [vmem:[#allocation3 + $0x48] sm:$0x70] %vm1200_vm0, %v1204_v40  ;;  %1201 = vst.msk [vmem:[#allocation3 + $0x40] sm:$0x70] %vm1200_vm0, %v1198_v31  ;;  %v5851_v31 = vld [vmem:[#allocation13 + $0x1f0] sm:$0xff]  }
 0x30b   :  { %v1138_v9 = vpop.permute.xlu0 %1137 }
 0x30c   :  { %1140 = vst.msk [vmem:[#allocation3 + $0x48] sm:$0xe] %vm1125_vm15, %v1138_v9 }
 0x317   :  { %v1170_v34 = vpop.permute.xlu1 %1169  ;;  %v1268_v36 = vpop.permute.xlu0 %1267 }
 0x318   :  { %1172 = vst.msk [vmem:[#allocation3 + $0x68] sm:$0xe] %vm1125_vm15, %v1170_v34 }
 0x319   :  { %1261 = vst.msk [vmem:[#allocation3 + $0x40] sm:$0x80] %vm1260_vm1, %v1170_v34  ;;  %1270 = vst.msk [vmem:[#allocation3 + $0x48] sm:$0x80] %vm1260_vm1, %v1268_v36 }
 0x31a   :  { %1263 = vst.msk [vmem:[#allocation3 + $0x80] sm:$0x3] %vm1262_vm2, %v1170_v34  ;;  %1271 = vst.msk [vmem:[#allocation3 + $0x88] sm:$0x3] %vm1262_vm2, %v1268_v36 }
 0x31b   :  { %v1071_v25 = vpop.permute.xlu1 %1070  ;;  %v1007_v35 = vpop.permute.xlu0 %1006 }
 0x31c   :  { %1073 = vst.msk [vmem:[#allocation3 + $0x18] sm:$0xc0] %vm1047_vm10, %v1071_v25 }
 0x31d   :  { %1074 = vst.msk [vmem:[#allocation3 + $0x58] sm:$0x1] %vm1049_vm14, %v1071_v25  ;;  %v5853_v25 = vld [vmem:[#allocation13 + $0x1b0] sm:$0xff]  }
 0x31e   :  { %1009 = vst.msk [vmem:[#allocation3 + $0x18] sm:$0x38] %vm987_vm8, %v1007_v35  ;;  %v5855_v35 = vld [vmem:[#allocation13 + $0x1e8] sm:$0xff]  }
 0x31f   :  { %v931_v37 = vpop.permute.xlu1 %930  ;;  %v1154_v17 = vpop.permute.xlu0 %1153 }
 0x320   :  { %v1332_v43 = vld [vmem:[#allocation3 + $0x48] sm:$0xff]  ;;  %v1331_v44 = vld [vmem:[#allocation3 + $0x40] sm:$0xff]  ;;  %933 = vst.msk [vmem:[#allocation3 + $0x10] sm:$0x7] %vm909_vm13, %v931_v37 }
 0x321   :  { %v1340_v33 = vld [vmem:[#allocation3 + $0x88] sm:$0x3]  ;;  %1156 = vst.msk [vmem:[#allocation3 + $0x58] sm:$0xe] %vm1125_vm15, %v1154_v17  ;;  %v1348_v45 = vpack.c.bf16 %v1332_v43, %v1324_v49  ;;  %v1347_v7 = vpack.c.bf16 %v1331_v44, %v1323_v42  ;;  %v1339_v27 = vld [vmem:[#allocation3 + $0x80] sm:$0x3] }
 0x322   :  { %v1356_v46 = vpack.c.bf16 %v1340_v33, %v1340_v33  ;;  %v1355_v51 = vpack.c.bf16 %v1339_v27, %v1339_v27  ;;  %v5857_v17 = vld [vmem:[#allocation13 + $0x1a8] sm:$0xff]   ;;  %v5859_v44 = vld [vmem:[#allocation13 + $0x1e0] sm:$0xff]   ;;  %v5867_v27 = vld [vmem:[#allocation13 + $0x1d0] sm:$0xff]  }
 0x323   :  { %1914 = vmatprep.mubr.bf16.mxu1 %v1348_v45  ;;  %v999_v47 = vpop.permute.xlu1 %998  ;;  %v972_v48 = vpop.permute.xlu0 %971 }
 0x324   :  { %1915 = vmatmul.mubr.bf16.vlgmr.msra.gmra.mxu1 %v1347_v7  ;;  %1001 = vst.msk [vmem:[#allocation3 + $0x10] sm:$0x38] %vm987_vm8, %v999_v47  ;;  %v5861_v7 = vld [vmem:[#allocation13 + $0x1a0] sm:$0xff]  }
 0x325   :  { %5635 = vmatpush3.bf16.msra.mxu1 %v5827_v18  ;;  %974 = vst.msk [vmem:[#allocation3 + $0x38] sm:$0x7] %vm909_vm13, %v972_v48  ;;  %1922 = vmatprep.mubr.bf16.mxu1 %v1356_v46  ;;  %v1326_v12 = vld [vmem:[#allocation3 + $0x18] sm:$0xff] }
 0x326   :  { %1065 = vst.msk [vmem:[#allocation3 + $0x10] sm:$0xc0] %vm1047_vm10, %v972_v48  ;;  %5636 = vmatprep.subr.bf16.mxu1 %v5828_v59  ;;  %v5863_v18 = vld [vmem:[#allocation13 + $0x1d8] sm:$0xff]  }
 0x327   :  { %1066 = vst.msk [vmem:[#allocation3 + $0x50] sm:$0x1] %vm1049_vm14, %v972_v48  ;;  %v1162_v41 = vpop.permute.xlu1 %1161  ;;  %v1146_v60 = vpop.permute.xlu0 %1145 }
 0x328   :  { %1164 = vst.msk [vmem:[#allocation3 + $0x60] sm:$0xe] %vm1125_vm15, %v1162_v41  ;;  %1148 = vst.msk [vmem:[#allocation3 + $0x50] sm:$0xe] %vm1125_vm15, %v1146_v60 }
 0x329   :  { %1276 = vst.msk [vmem:[#allocation3 + $0x50] sm:$0x80] %vm1260_vm1, %v1162_v41  ;;  %5637 = vmatpush3.bf16.msra.mxu1 %v5829_v50 }
 0x32a   :  { %5638 = vmatprep.subr.bf16.mxu1 %v5830_v32  ;;  %v5865_v32 = vld [vmem:[#allocation13 + $0x198] sm:$0xff]  }
 0x32b   :  { %v1020_v55 = vpop.permute.xlu1 %1019  ;;  %v956_v39 = vpop.permute.xlu0 %955 }
 0x32c   :  { %1923 = vmatmul.mubr.bf16.gmra.mxu1 %v1355_v51  ;;  %1022 = vst.msk [vmem:[#allocation3 + $0x28] sm:$0x38] %vm987_vm8, %v1020_v55  ;;  %v5870_v51 = vld [vmem:[#allocation13 + $0x1c8] sm:$0xff]  }
 0x32d   :  { %5639 = vmatpush3.bf16.msra.mxu1 %v5831_v56  ;;  %958 = vst.msk [vmem:[#allocation3 + $0x28] sm:$0x7] %vm909_vm13, %v956_v39  ;;  %v1325_v22 = vld [vmem:[#allocation3 + $0x10] sm:$0xff] }
 0x32e   :  { %5640 = vmatprep.subr.bf16.mxu1 %v5832_v58  ;;  %v5869_v56 = vld [vmem:[#allocation13 + $0x190] sm:$0xff]  }
 0x32f   :  { %v1217_v0 = vpop.permute.xlu1 %1216  ;;  %v1090_v62 = vpop.permute.xlu0 %1089 }
 0x330   :  { %1219 = vst.msk [vmem:[#allocation3 + $0x58] sm:$0x70] %vm1200_vm0, %v1217_v0  ;;  %v5871_v0 = vld [vmem:[#allocation13 + $0x188] sm:$0xff]  }
 0x331   :  { %5641 = vmatpush3.bf16.msra.mxu1 %v5833_v61  ;;  %1092 = vst.msk [vmem:[#allocation3 + $0x28] sm:$0xc0] %vm1047_vm10, %v1090_v62 }
 0x332   :  { %1093 = vst.msk [vmem:[#allocation3 + $0x68] sm:$0x1] %vm1049_vm14, %v1090_v62  ;;  %5642 = vmatprep.subr.bf16.mxu1 %v5834_v63  ;;  %v5872_v62 = vld [vmem:[#allocation13 + $0x1c0] sm:$0xff]  }
 0x333   :  { %v1190_v38 = vpop.permute.xlu1 %1189  ;;  %v1211_v3 = vpop.permute.xlu0 %1210 }
 0x334   :  { %1192 = vst.msk [vmem:[#allocation3 + $0x78] sm:$0xe] %vm1125_vm15, %v1190_v38 }
 0x335   :  { %1277 = vst.msk [vmem:[#allocation3 + $0x90] sm:$0x3] %vm1262_vm2, %v1190_v38  ;;  %5643 = vmatpush3.bf16.msra.mxu1 %v5835_v1 }
 0x336   :  { %1302 = vst.msk [vmem:[#allocation3 + $0x68] sm:$0x80] %vm1260_vm1, %v1190_v38  ;;  %5644 = vmatprep.subr.bf16.mxu1 %v5836_v29 }
 0x337   :  { %1213 = vst.msk [vmem:[#allocation3 + $0x50] sm:$0x70] %vm1200_vm0, %v1211_v3  ;;  %v1013_v8 = vpop.permute.xlu1 %1012  ;;  %v1282_v11 = vpop.permute.xlu0 %1281 }
 0x338   :  { %1015 = vst.msk [vmem:[#allocation3 + $0x20] sm:$0x38] %vm987_vm8, %v1013_v8  ;;  %v1328_v47 = vld [vmem:[#allocation3 + $0x28] sm:$0xff] }
 0x339   :  { %5645 = vmatpush3.bf16.msra.mxu1 %v5838_v52  ;;  %1284 = vst.msk [vmem:[#allocation3 + $0x58] sm:$0x80] %vm1260_vm1, %v1282_v11  ;;  %v5873_v52 = vld [vmem:[#allocation13 + $0x180] sm:$0xff]  }
 0x33a   :  { %1285 = vst.msk [vmem:[#allocation3 + $0x98] sm:$0x3] %vm1262_vm2, %v1282_v11  ;;  %5646 = vmatprep.subr.bf16.mxu1 %v5840_v53 }
 0x33b   :  { %v1036_v54 = vpop.permute.xlu1 %1035  ;;  %v945_v20 = vpop.permute.xlu0 %944 }
 0x33c   :  { %1038 = vst.msk [vmem:[#allocation3 + $0x38] sm:$0x38] %vm987_vm8, %v1036_v54  ;;  %v1341_v49 = vld [vmem:[#allocation3 + $0x90] sm:$0x3] }
 0x33d   :  { %5647 = vmatpush3.bf16.msra.mxu1 %v5841_v14  ;;  %947 = vst.msk [vmem:[#allocation3 + $0x20] sm:$0x7] %vm909_vm13, %v945_v20  ;;  %v1357_v43 = vpack.c.bf16 %v1341_v49, %v1341_v49  ;;  %v5897_v49 = vld [vmem:[#allocation16 + $0x284] ss:$16 sps:$4 sm:$0xff]  }
 0x33e   :  { %5648 = vmatprep.subr.bf16.mxu1 %v5844_v19  ;;  %v1333_v10 = vld [vmem:[#allocation3 + $0x50] sm:$0xff] }
 0x33f   :  { %v964_v57 = vpop.permute.xlu1 %963  ;;  %v1081_v5 = vpop.permute.xlu0 %1080  ;;  %v1349_v40 = vpack.c.bf16 %v1333_v10, %v1325_v22  ;;  %v5882_v22 = vld [vmem:[#allocation16 + $0xc4] ss:$16 sps:$4 sm:$0xff]  }
 0x340   :  { %v1334_v6 = vld [vmem:[#allocation3 + $0x58] sm:$0xff]  ;;  %966 = vst.msk [vmem:[#allocation3 + $0x30] sm:$0x7] %vm909_vm13, %v964_v57 }
 0x341   :  { %v1342_v15 = vld [vmem:[#allocation3 + $0x98] sm:$0x3]  ;;  %5649 = vmatpush3.bf16.msra.mxu1 %v5845_v4  ;;  %1083 = vst.msk [vmem:[#allocation3 + $0x20] sm:$0xc0] %vm1047_vm10, %v1081_v5  ;;  %v1350_v16 = vpack.c.bf16 %v1334_v6, %v1326_v12  ;;  %v5876_v12 = vld [vmem:[#allocation16 + $0xe4] ss:$16 sps:$4 sm:$0xff]  }
 0x342   :  { %1084 = vst.msk [vmem:[#allocation3 + $0x60] sm:$0x1] %vm1049_vm14, %v1081_v5  ;;  %5690 = vmatprep.subr.bf16.mxu1 %v5848_v13  ;;  %v1358_v9 = vpack.c.bf16 %v1342_v15, %v1342_v15  ;;  %v5874_v5 = vld [vmem:[#allocation16 + $0xe0] ss:$16 sps:$4 sm:$0xff]   ;;  %3995 = vmatprep.subr.bf16.mxu0 %v5876_v12  ;;  %v5879_v15 = vld [vmem:[#allocation16 + $0x2e4] ss:$16 sps:$4 sm:$0xff]  }
 0x343   :  { %1962 = vmatprep.mubr.bf16.mxu1 %v1350_v16  ;;  %v1101_v34 = vpop.permute.xlu1 %1100  ;;  %v1114_v36 = vpop.permute.xlu0 %1113  ;;  %v5877_v6 = vld [vmem:[#allocation16 + $0x2e0] ss:$16 sps:$4 sm:$0xff]   ;;  %v5966_v12 = vld [vmem:[#allocation16 + $0x104] ss:$16 sps:$4 sm:$0xff]  }
 0x344   :  { %1963 = vmatmul.mubr.bf16.vlgmr.msra.gmra.mxu1 %v1349_v40  ;;  %1106 = vst.msk [vmem:[#allocation3 + $0x30] sm:$0xc0] %vm1047_vm10, %v1101_v34  ;;  %1116 = vst.msk [vmem:[#allocation3 + $0x38] sm:$0xc0] %vm1047_vm10, %v1114_v36  ;;  %v5880_v16 = vld [vmem:[#allocation16 + $0xc0] ss:$16 sps:$4 sm:$0xff]  }
 0x345   :  { %5691 = vmatpush3.bf16.msra.mxu1 %v5849_v30  ;;  %1117 = vst.msk [vmem:[#allocation3 + $0x78] sm:$0x1] %vm1049_vm14, %v1114_v36  ;;  %1970 = vmatprep.mubr.bf16.mxu1 %v1358_v9  ;;  %v5883_v30 = vld [vmem:[#allocation16 + $0x2c0] ss:$16 sps:$4 sm:$0xff]   ;;  %v5885_v40 = vld [vmem:[#allocation16 + $0x2c4] ss:$16 sps:$4 sm:$0xff]  }
 0x346   :  { %5692 = vmatprep.subr.bf16.mxu1 %v5851_v31  ;;  %v5886_v31 = vld [vmem:[#allocation16 + $0xa0] ss:$16 sps:$4 sm:$0xff]   ;;  %v5888_v9 = vld [vmem:[#allocation16 + $0xa4] ss:$16 sps:$4 sm:$0xff]  }
 0x347   :  { %v1236_v42 = vpop.permute.xlu1 %1235  ;;  %v1029_v37 = vpop.permute.xlu0 %1028  ;;  %v5889_v34 = vld [vmem:[#allocation16 + $0x2a0] ss:$16 sps:$4 sm:$0xff]   ;;  %v5891_v36 = vld [vmem:[#allocation16 + $0x2a4] ss:$16 sps:$4 sm:$0xff]  }
 0x348   :  { %1238 = vst.msk [vmem:[#allocation3 + $0x68] sm:$0x70] %vm1200_vm0, %v1236_v42  ;;  %v1327_v39 = vld [vmem:[#allocation3 + $0x20] sm:$0xff] }
 0x349   :  { %5693 = vmatpush3.bf16.msra.mxu1 %v5853_v25  ;;  %1031 = vst.msk [vmem:[#allocation3 + $0x30] sm:$0x38] %vm987_vm8, %v1029_v37  ;;  %v5892_v25 = vld [vmem:[#allocation16 + $0x80] ss:$16 sps:$4 sm:$0xff]   ;;  %v5900_v42 = vld [vmem:[#allocation16 + $0x64] ss:$16 sps:$4 sm:$0xff]  }
 0x34a   :  { %5694 = vmatprep.subr.bf16.mxu1 %v5855_v35  ;;  %v5894_v35 = vld [vmem:[#allocation16 + $0x84] ss:$16 sps:$4 sm:$0xff]   ;;  %v5895_v37 = vld [vmem:[#allocation16 + $0x280] ss:$16 sps:$4 sm:$0xff]  }
 0x34b   :  { %v1229_v33 = vpop.permute.xlu1 %1228  ;;  %v1103_v45 = vpop.permute.xlu0 %1102  ;;  %v1330_v29 = vld [vmem:[#allocation3 + $0x38] sm:$0xff] }
 0x34c   :  { %1971 = vmatmul.mubr.bf16.gmra.mxu1 %v1357_v43  ;;  %1231 = vst.msk [vmem:[#allocation3 + $0x60] sm:$0x70] %vm1200_vm0, %v1229_v33  ;;  %v5903_v43 = vld [vmem:[#allocation16 + $0x264] ss:$16 sps:$4 sm:$0xff]   ;;  %v5901_v33 = vld [vmem:[#allocation16 + $0x260] ss:$16 sps:$4 sm:$0xff]  }
 0x34d   :  { %5695 = vmatpush3.bf16.msra.mxu1 %v5857_v17  ;;  %1107 = vst.msk [vmem:[#allocation3 + $0x70] sm:$0x1] %vm1049_vm14, %v1103_v45  ;;  %v5898_v17 = vld [vmem:[#allocation16 + $0x60] ss:$16 sps:$4 sm:$0xff]  }
 0x34e   :  { %5696 = vmatprep.subr.bf16.mxu1 %v5859_v44  ;;  %v5906_v44 = vld [vmem:[#allocation16 + $0x44] ss:$16 sps:$4 sm:$0xff]   ;;  %v5904_v45 = vld [vmem:[#allocation16 + $0x40] ss:$16 sps:$4 sm:$0xff]  }
 0x34f   :  { %v1183_v59 = vpop.permute.xlu1 %1182  ;;  %v1290_v46 = vpop.permute.xlu0 %1289  ;;  %v1336_v48 = vld [vmem:[#allocation3 + $0x68] sm:$0xff] }
 0x350   :  { %1185 = vst.msk [vmem:[#allocation3 + $0x70] sm:$0xe] %vm1125_vm15, %v1183_v59  ;;  %v1352_v50 = vpack.c.bf16 %v1336_v48, %v1328_v47  ;;  %v1329_v53 = vld [vmem:[#allocation3 + $0x30] sm:$0xff]  ;;  %v5910_v59 = vld [vmem:[#allocation16 + $0x20] ss:$16 sps:$4 sm:$0xff]  }
 0x351   :  { %5697 = vmatpush3.bf16.msra.mxu1 %v5861_v7  ;;  %1292 = vst.msk [vmem:[#allocation3 + $0x60] sm:$0x80] %vm1260_vm1, %v1290_v46  ;;  %v5909_v7 = vld [vmem:[#allocation16 + $0x244] ss:$16 sps:$4 sm:$0xff]   ;;  %v5913_v47 = vld [vmem:[#allocation16 + $0x220] ss:$16 sps:$4 sm:$0xff]  }
 0x352   :  { %1293 = vst.msk [vmem:[#allocation3 + $0xa0] sm:$0x3] %vm1262_vm2, %v1290_v46  ;;  %5698 = vmatprep.subr.bf16.mxu1 %v5863_v18  ;;  %2010 = vmatprep.mubr.bf16.mxu0 %v1352_v50  ;;  %v5907_v18 = vld [vmem:[#allocation16 + $0x240] ss:$16 sps:$4 sm:$0xff]   ;;  %v5912_v46 = vld [vmem:[#allocation16 + $0x24] ss:$16 sps:$4 sm:$0xff]  }
 0x353   :  { %v1253_v41 = vpop.permute.xlu1 %1252  ;;  %v1319_v60 = vpop.permute.xlu0 %1318  ;;  %v5915_v48 = vld [vmem:[#allocation16 + $0x224] ss:$16 sps:$4 sm:$0xff]   ;;  %v5916_v50 = vld [vmem:[#allocation16] ss:$16 sps:$4 sm:$0xff]  }
 0x354   :  { %1255 = vst.msk [vmem:[#allocation3 + $0x78] sm:$0x70] %vm1200_vm0, %v1253_v41  ;;  %v5921_v41 = vld [vmem:[#allocation16 + $0x204] ss:$16 sps:$4 sm:$0xff]  }
 0x355   :  { %5699 = vmatpush3.bf16.msra.mxu1 %v5865_v32  ;;  %1321 = vst.msk [vmem:[#allocation3 + $0x78] sm:$0x80] %vm1260_vm1, %v1319_v60  ;;  %v5918_v32 = vld [vmem:[#allocation16 + $0x4] ss:$16 sps:$4 sm:$0xff]  }
 0x356   :  { %1322 = vst.msk [vmem:[#allocation3 + $0xb8] sm:$0x3] %vm1262_vm2, %v1319_v60  ;;  %5700 = vmatprep.subr.bf16.mxu1 %v5867_v27  ;;  %v5919_v27 = vld [vmem:[#allocation16 + $0x200] ss:$16 sps:$4 sm:$0xff]   ;;  %v5924_v60 = vld [vmem:[#allocation16 + $0x1e4] ss:$16 sps:$4 sm:$0xff]  }
 0x357   :  { %v1309_v58 = vpop.permute.xlu1 %1308  ;;  %v1242_v55 = vpop.permute.xlu0 %1241 }
 0x358   :  { %v1335_v61 = vld [vmem:[#allocation3 + $0x60] sm:$0xff]  ;;  %1311 = vst.msk [vmem:[#allocation3 + $0x70] sm:$0x80] %vm1260_vm1, %v1309_v58 }
 0x359   :  { %1312 = vst.msk [vmem:[#allocation3 + $0xb0] sm:$0x3] %vm1262_vm2, %v1309_v58  ;;  %5701 = vmatpush3.bf16.msra.mxu1 %v5869_v56  ;;  %v1351_v63 = vpack.c.bf16 %v1335_v61, %v1327_v39  ;;  %v1343_v54 = vld [vmem:[#allocation3 + $0xa0] sm:$0x3]  ;;  %v5922_v56 = vld [vmem:[#allocation16 + $0x1e0] ss:$16 sps:$4 sm:$0xff]  }
 0x35a   :  { %1244 = vst.msk [vmem:[#allocation3 + $0x70] sm:$0x70] %vm1200_vm0, %v1242_v55  ;;  %5702 = vmatprep.subr.bf16.mxu1 %v5870_v51  ;;  %v1359_v13 = vpack.c.bf16 %v1343_v54, %v1343_v54  ;;  %v5927_v51 = vld [vmem:[#allocation16 + $0x3e4] ss:$16 sps:$4 sm:$0xff]   ;;  %v5925_v58 = vld [vmem:[#allocation16 + $0x3e0] ss:$16 sps:$4 sm:$0xff]  }
 0x35b   :  { %2011 = vmatmul.mubr.bf16.vlgmr.msra.gmra.mxu0 %v1351_v63  ;;  %v1300_v1 = vpop.permute.xlu0 %1299  ;;  %v5930_v55 = vld [vmem:[#allocation16 + $0x1c4] ss:$16 sps:$4 sm:$0xff]   ;;  %v5928_v39 = vld [vmem:[#allocation16 + $0x1c0] ss:$16 sps:$4 sm:$0xff]  }
 0x35c   :  { %v1338_v38 = vld [vmem:[#allocation3 + $0x78] sm:$0xff]  ;;  %1303 = vst.msk [vmem:[#allocation3 + $0xa8] sm:$0x3] %vm1262_vm2, %v1300_v1  ;;  %3996 = vmatpush1.bf16.msra.mxu0 %v5874_v5  ;;  %v5933_v61 = vld [vmem:[#allocation16 + $0x3c4] ss:$16 sps:$4 sm:$0xff]  }
 0x35d   :  { %5703 = vmatpush3.bf16.msra.mxu1 %v5871_v0  ;;  %v1354_v3 = vpack.c.bf16 %v1338_v38, %v1330_v29  ;;  %v1346_v11 = vld [vmem:[#allocation3 + $0xb8] sm:$0x3]  ;;  %3997 = vmatprep.subr.bf16.mxu0 %v5882_v22  ;;  %v5931_v63 = vld [vmem:[#allocation16 + $0x3c0] ss:$16 sps:$4 sm:$0xff]   ;;  %v5936_v0 = vld [vmem:[#allocation16 + $0x1a4] ss:$16 sps:$4 sm:$0xff]  }
 0x35e   :  { %5704 = vmatprep.subr.bf16.mxu1 %v5872_v62  ;;  %v1362_v19 = vpack.c.bf16 %v1346_v11, %v1346_v11  ;;  %v5934_v62 = vld [vmem:[#allocation16 + $0x1a0] ss:$16 sps:$4 sm:$0xff]   ;;  %v5939_v1 = vld [vmem:[#allocation16 + $0x3a4] ss:$16 sps:$4 sm:$0xff]  }
 0x35f   :  { %2058 = vmatprep.mubr.bf16.mxu1 %v1354_v3  ;;  %v5937_v29 = vld [vmem:[#allocation16 + $0x3a0] ss:$16 sps:$4 sm:$0xff]   ;;  %v5942_v38 = vld [vmem:[#allocation16 + $0x184] ss:$16 sps:$4 sm:$0xff]  }
 0x360   :  { %v1345_v10 = vld [vmem:[#allocation3 + $0xb0] sm:$0x3]  ;;  %3998 = vmatpush1.bf16.msra.mxu0 %v5880_v16  ;;  %v5940_v3 = vld [vmem:[#allocation16 + $0x180] ss:$16 sps:$4 sm:$0xff]  }
 0x361   :  { %v1337_v8 = vld [vmem:[#allocation3 + $0x70] sm:$0xff]  ;;  %5705 = vmatpush3.bf16.msra.mxu1 %v5873_v52  ;;  %v1361_v57 = vpack.c.bf16 %v1345_v10, %v1345_v10  ;;  %3999 = vmatprep.subr.bf16.mxu0 %v5888_v9  ;;  %v5955_v10 = vld [vmem:[#allocation16 + $0x340] ss:$16 sps:$4 sm:$0xff]  }
 0x362   :  { %v1353_v14 = vpack.c.bf16 %v1337_v8, %v1329_v53  ;;  %4036 = vmatprep.subr.bf16.mxu1 %v5879_v15  ;;  %v5945_v52 = vld [vmem:[#allocation16 + $0x384] ss:$16 sps:$4 sm:$0xff]   ;;  %v5943_v53 = vld [vmem:[#allocation16 + $0x380] ss:$16 sps:$4 sm:$0xff]  }
 0x363   :  { %v1344_v20 = vld [vmem:[#allocation3 + $0xa8] sm:$0x3]  ;;  %v5946_v8 = vld [vmem:[#allocation16 + $0x160] ss:$16 sps:$4 sm:$0xff]   ;;  %v5948_v11 = vld [vmem:[#allocation16 + $0x164] ss:$16 sps:$4 sm:$0xff]  }
 0x364   :  { %2059 = vmatmul.mubr.bf16.vlgmr.msra.gmra.mxu1 %v1353_v14  ;;  %v1360_v4 = vpack.c.bf16 %v1344_v20, %v1344_v20  ;;  %4000 = vmatpush1.bf16.msra.mxu0 %v5886_v31  ;;  %v5949_v14 = vld [vmem:[#allocation16 + $0x360] ss:$16 sps:$4 sm:$0xff]   ;;  %v5954_v54 = vld [vmem:[#allocation16 + $0x144] ss:$16 sps:$4 sm:$0xff]  }
 0x365   :  { %2066 = vmatprep.mubr.bf16.mxu1 %v1362_v19  ;;  %4037 = vmatpush1.bf16.msra.mxu1 %v5877_v6  ;;  %v5951_v19 = vld [vmem:[#allocation16 + $0x364] ss:$16 sps:$4 sm:$0xff]   ;;  %v5958_v5 = vld [vmem:[#allocation16 + $0x120] ss:$16 sps:$4 sm:$0xff]  }
 0x366   :  { %2018 = vmatprep.mubr.bf16.mxu0 %v1360_v4  ;;  %4038 = vmatprep.subr.bf16.mxu1 %v5885_v40  ;;  %v5957_v20 = vld [vmem:[#allocation16 + $0x344] ss:$16 sps:$4 sm:$0xff]   ;;  %v5952_v4 = vld [vmem:[#allocation16 + $0x140] ss:$16 sps:$4 sm:$0xff]  }
 0x367   :  { %2019 = vmatmul.mubr.bf16.gmra.mxu0 %v1359_v13  ;;  %4001 = vmatprep.subr.bf16.mxu0 %v5894_v35  ;;  %v5960_v13 = vld [vmem:[#allocation16 + $0x124] ss:$16 sps:$4 sm:$0xff]   ;;  %v5961_v6 = vld [vmem:[#allocation16 + $0x320] ss:$16 sps:$4 sm:$0xff]  }
 0x368   :  { %4002 = vmatpush1.bf16.msra.mxu0 %v5892_v25  ;;  %v5969_v15 = vld [vmem:[#allocation16 + $0x304] ss:$16 sps:$4 sm:$0xff]   ;;  %v5964_v16 = vld [vmem:[#allocation16 + $0x100] ss:$16 sps:$4 sm:$0xff]  }
 0x369   :  { %4039 = vmatpush1.bf16.msra.mxu1 %v5883_v30  ;;  %4003 = vmatprep.subr.bf16.mxu0 %v5900_v42  ;;  %v5972_v22 = vld [vmem:[#allocation16 + $0x4e4] ss:$16 sps:$4 sm:$0xff]   ;;  %v5967_v30 = vld [vmem:[#allocation16 + $0x300] ss:$16 sps:$4 sm:$0xff]  }
 0x36a   :  { %4040 = vmatprep.subr.bf16.mxu1 %v5891_v36  ;;  %v5976_v40 = vld [vmem:[#allocation16 + $0x6e4] ss:$16 sps:$4 sm:$0xff]  }
 0x36c   :  { %2067 = vmatmul.mubr.bf16.gmra.mxu1 %v1361_v57  ;;  %4004 = vmatpush1.bf16.msra.mxu0 %v5898_v17  ;;  %v5963_v57 = vld [vmem:[#allocation16 + $0x324] ss:$16 sps:$4 sm:$0xff]  }
 0x36d   :  { %4041 = vmatpush1.bf16.msra.mxu1 %v5889_v34  ;;  %4005 = vmatprep.subr.bf16.mxu0 %v5906_v44 }
 0x36e   :  { %4042 = vmatprep.subr.bf16.mxu1 %v5897_v49 }
 0x370   :  { %4006 = vmatpush1.bf16.msra.mxu0 %v5904_v45 }
 0x371   :  { %4043 = vmatpush1.bf16.msra.mxu1 %v5895_v37  ;;  %4007 = vmatprep.subr.bf16.mxu0 %v5912_v46 }
 0x372   :  { %4044 = vmatprep.subr.bf16.mxu1 %v5903_v43 }
 0x374   :  { %4008 = vmatpush1.bf16.msra.mxu0 %v5910_v59 }
 0x375   :  { %4045 = vmatpush1.bf16.msra.mxu1 %v5901_v33  ;;  %4009 = vmatprep.subr.bf16.mxu0 %v5918_v32 }
 0x376   :  { %4046 = vmatprep.subr.bf16.mxu1 %v5909_v7 }
 0x378   :  { %4010 = vmatpush1.bf16.msra.mxu0 %v5916_v50  ;;  %v5140_v50 = vld [vmem:[#allocation15] ss:$0 sm:$0xff] }
 0x379   :  { %4047 = vmatpush1.bf16.msra.mxu1 %v5907_v18  ;;  %4011 = vmatprep.subr.bf16.mxu0 %v5924_v60 }
 0x37a   :  { %4048 = vmatprep.subr.bf16.mxu1 %v5915_v48 }
 0x37c   :  { %4012 = vmatpush2.bf16.msra.mxu0 %v5922_v56 }
 0x37d   :  { %4049 = vmatpush1.bf16.msra.mxu1 %v5913_v47  ;;  %4013 = vmatprep.subr.bf16.mxu0 %v5930_v55 }
 0x37e   :  { %4050 = vmatprep.subr.bf16.mxu1 %v5921_v41  ;;  %v6710_v41 = vmov 1983009808  }
 0x37f   :  { %v2088_v60 = vunpack.c.l.s4 %v6710_v41 }
 0x380   :  { %4014 = vmatpush2.bf16.msra.mxu0 %v5928_v39 }
 0x381   :  { %4051 = vmatpush1.bf16.msra.mxu1 %v5919_v27  ;;  %4015 = vmatprep.subr.bf16.mxu0 %v5936_v0 }
 0x382   :  { %4052 = vmatprep.subr.bf16.mxu1 %v5927_v51 }
 0x384   :  { %4016 = vmatpush2.bf16.msra.mxu0 %v5934_v62 }
 0x385   :  { %4053 = vmatpush2.bf16.msra.mxu1 %v5925_v58  ;;  %4017 = vmatprep.subr.bf16.mxu0 %v5942_v38  ;;  %v2089_v38 = vunpack.c.0.s8 %v2088_v60 }
 0x386   :  { %4054 = vmatprep.subr.bf16.mxu1 %v5933_v61 }
 0x388   :  { %4018 = vmatpush2.bf16.msra.mxu0 %v5940_v3 }
 0x389   :  { %4055 = vmatpush2.bf16.msra.mxu1 %v5931_v63  ;;  %4019 = vmatprep.subr.bf16.mxu0 %v5948_v11  ;;  %v2078_v11 = vstv %s5205_s22 }
 0x38a   :  { %4056 = vmatprep.subr.bf16.mxu1 %v5939_v1 }
 0x38c   :  { %4020 = vmatpush2.bf16.msra.mxu0 %v5946_v8 }
 0x38d   :  { %4057 = vmatpush2.bf16.msra.mxu1 %v5937_v29  ;;  %4021 = vmatprep.subr.bf16.mxu0 %v5954_v54 }
 0x38e   :  { %4058 = vmatprep.subr.bf16.mxu1 %v5945_v52 }
 0x390   :  { %4022 = vmatpush2.bf16.msra.mxu0 %v5952_v4 }
 0x391   :  { %4059 = vmatpush2.bf16.msra.mxu1 %v5943_v53  ;;  %4023 = vmatprep.subr.bf16.mxu0 %v5960_v13  ;;  %v7553_v13 = vsub.s32 %v2089_v38, %v6881_v21 }
 0x392   :  { %4060 = vmatprep.subr.bf16.mxu1 %v5951_v19 }
 0x394   :  { %4024 = vmatpush2.bf16.msra.mxu0 %v5958_v5 }
 0x395   :  { %4061 = vmatpush2.bf16.msra.mxu1 %v5949_v14  ;;  %4025 = vmatprep.subr.bf16.mxu0 %v5966_v12 }
 0x396   :  { %4062 = vmatprep.subr.bf16.mxu1 %v5957_v20 }
 0x398   :  { %4026 = vmatpush2.bf16.msra.mxu0 %v5964_v16 }
 0x399   :  { %4063 = vmatpush2.bf16.msra.mxu1 %v5955_v10  ;;  %4077 = vmatprep.subr.bf16.mxu0 %v5972_v22 }
 0x39a   :  { %4064 = vmatprep.subr.bf16.mxu1 %v5963_v57 }
 0x39d   :  { %4065 = vmatpush2.bf16.msra.mxu1 %v5961_v6 }
 0x39e   :  { %4066 = vmatprep.subr.bf16.mxu1 %v5969_v15 }
 0x3a1   :  { %4067 = vmatpush2.bf16.msra.mxu1 %v5967_v30 }
 0x3a2   :  { %4118 = vmatprep.subr.bf16.mxu1 %v5976_v40 }
 0x3e4   :  { %v5622_v31 = vpop.f32.mrf.mxu1 }
 0x3e6   :  { %v5623_v9 = vpop.f32.mrf.mxu1 }
 0x3e7   :  { %v5624_v47 = vadd.f32 %v5623_v9, %v5622_v31 }
 0x3e8   :  { %v5625_v34 = vpop.f32.mrf.mxu1 }
 0x3e9   :  { %v1917_v56 = vadd.f32 %v5624_v47, %v5140_v50 }
 0x3ea   :  { %v5626_v36 = vpop.f32.mrf.mxu1 }
 0x3eb   :  { %v5627_v27 = vadd.f32 %v5626_v36, %v5625_v34 }
 0x3ec   :  { %v5628_v25 = vpop.f32.mrf.mxu1 }
 0x3ed   :  { %v1920_v0 = vadd.f32 %v5627_v27, %v5140_v50 }
 0x3ee   :  { %v5629_v35 = vpop.f32.mrf.mxu1 }
 0x3ef   :  { %v5630_v55 = vadd.f32 %v5629_v35, %v5628_v25 }
 0x3f0   :  { %v5631_v49 = vpop.f32.mrf.mxu1 }
 0x3f1   :  { %v1925_v53 = vadd.f32 %v5630_v55, %v5140_v50 }
 0x3f2   :  { %v5632_v42 = vpop.f32.mrf.mxu1 }
 0x404   :  { %v5650_v37 = vpop.f32.mrf.mxu1 }
 0x406   :  { %v5651_v17 = vpop.f32.mrf.mxu1 }
 0x407   :  { %v5652_v32 = vadd.f32 %v5651_v17, %v5650_v37 }
 0x408   :  { %v5653_v43 = vpop.f32.mrf.mxu1 }
 0x409   :  { %v1965_v63 = vadd.f32 %v5652_v32, %v1917_v56 }
 0x40a   :  { %v5654_v44 = vpop.f32.mrf.mxu1 }
 0x40b   :  { %v5655_v39 = vadd.f32 %v5654_v44, %v5653_v43 }
 0x40c   :  { %v5656_v33 = vpop.f32.mrf.mxu1 }
 0x40d   :  { %v1968_v8 = vadd.f32 %v5655_v39, %v1920_v0 }
 0x40e   :  { %v5657_v45 = vpop.f32.mrf.mxu1 }
 0x40f   :  { %v5658_v62 = vadd.f32 %v5657_v45, %v5656_v33 }
 0x410   :  { %v5659_v7 = vpop.f32.mrf.mxu1 }
 0x411   :  { %v1973_v20 = vadd.f32 %v5658_v62, %v1925_v53  ;;  %v5970_v53 = vld [vmem:[#allocation16 + $0x4e0] ss:$16 sps:$4 sm:$0xff]  }
 0x412   :  { %v5660_v18 = vpop.f32.mrf.mxu1 }
 0x41b   :  { %v5678_v59 = vpop.f32.mrf.mxu0 }
 0x41d   :  { %v5679_v46 = vpop.f32.mrf.mxu0 }
 0x41e   :  { %v5680_v51 = vadd.f32 %v5679_v46, %v5678_v59 }
 0x41f   :  { %v5681_v48 = vpop.f32.mrf.mxu0 }
 0x420   :  { %v2013_v3 = vadd.f32 %v5680_v51, %v1965_v63 }
 0x421   :  { %v5682_v58 = vpop.f32.mrf.mxu0 }
 0x422   :  { %v5683_v1 = vadd.f32 %v5682_v58, %v5681_v48 }
 0x424   :  { %v5706_v61 = vpop.f32.mrf.mxu1  ;;  %v2016_v4 = vadd.f32 %v5683_v1, %v1968_v8 }
 0x426   :  { %v5707_v29 = vpop.f32.mrf.mxu1 }
 0x427   :  { %v5708_v52 = vadd.f32 %v5707_v29, %v5706_v61  ;;  %v5684_v19 = vpop.f32.mrf.mxu0 }
 0x428   :  { %v5709_v14 = vpop.f32.mrf.mxu1 }
 0x429   :  { %v2061_v54 = vadd.f32 %v5708_v52, %v2013_v3  ;;  %v5685_v57 = vpop.f32.mrf.mxu0 }
 0x42a   :  { %v5710_v10 = vpop.f32.mrf.mxu1  ;;  %v5686_v6 = vadd.f32 %v5685_v57, %v5684_v19 }
 0x42b   :  { %vm2075_vm3 = vcmp.gt.f32.partialorder %v2061_v54, 0.0  ;;  %v2079_v5 = vmul.f32 %v2078_v11, %v2061_v54  ;;  %v5711_v12 = vadd.f32 %v5710_v10, %v5709_v14  ;;  %v5687_v16 = vpop.f32.mrf.mxu0 }
 0x42c   :  { %v5712_v15 = vpop.f32.mrf.mxu1  ;;  %v2021_v40 = vadd.f32 %v5686_v6, %v1973_v20  ;;  %v5974_v20 = vld [vmem:[#allocation16 + $0x6e0] ss:$16 sps:$4 sm:$0xff]  }
 0x42d   :  { %v2082_v22 = vsel %vm2075_vm3, %v2061_v54, %v2079_v5  ;;  %v2064_v30 = vadd.f32 %v5711_v12, %v2016_v4  ;;  %v5688_v36 = vpop.f32.mrf.mxu0  ;;  %v5979_v4 = vld [vmem:[#allocation16 + $0x4c4] ss:$16 sps:$4 sm:$0xff]   ;;  %v5981_v16 = vld [vmem:[#allocation16 + $0x6c0] ss:$16 sps:$4 sm:$0xff]  }
 0x42e   :  { %2085 = vst [vmem:[#allocation4] sm:$0x1] %v2082_v22  ;;  %v2093_v31 = vrot.slane %v2082_v22, %v7553_v13  ;;  %v2105_v9 = vcombine.high %v2082_v22, %v2082_v22  ;;  %v5713_v34 = vpop.f32.mrf.mxu1  ;;  %v5983_v12 = vld [vmem:[#allocation16 + $0x6c4] ss:$16 sps:$4 sm:$0xff]  }
 0x42f   :  { %vm2076_vm4 = vcmp.gt.f32.partialorder %v2064_v30, 0.0  ;;  %v2080_v25 = vmul.f32 %v2078_v11, %v2064_v30  ;;  %v5714_v35 = vadd.f32 %v5713_v34, %v5712_v15  ;;  %v5986_v15 = vld [vmem:[#allocation16 + $0x4a4] ss:$16 sps:$4 sm:$0xff]   ;;  %v5990_v34 = vld [vmem:[#allocation16 + $0x480] ss:$16 sps:$4 sm:$0xff]  }
 0x430   :  { %v5206_v49 = vrot.slane %v2093_v31, 9  ;;  %v2098_v42 = vcombine.high %v2093_v31, %v2093_v31  ;;  %v2112_v37 = vrot.slane %v2105_v9, %v7553_v13  ;;  %5208 = vst.sshfl [vmem:[#allocation4 + $0x8] sm:$0x1 pattern:$0x76325410] %v2105_v9  ;;  %v5715_v17 = vpop.f32.mrf.mxu1 }
 0x431   :  { %v2083_v43 = vsel %vm2076_vm4, %v2064_v30, %v2080_v25  ;;  %v2069_v44 = vadd.f32 %v5714_v35, %v2021_v40  ;;  %v5989_v22 = vld [vmem:[#allocation16 + $0x6a4] ss:$16 sps:$4 sm:$0xff]   ;;  %v5984_v30 = vld [vmem:[#allocation16 + $0x4a0] ss:$16 sps:$4 sm:$0xff]  }
 0x432   :  { %2097 = vst [vmem:[#allocation4 + $0x2] sm:$0x1] %v5206_v49  ;;  %2100 = vst [vmem:[#allocation4 + $0x4] sm:$0x1] %v2098_v42  ;;  %v5207_v33 = vrot.slane %v2098_v42, 9  ;;  %v5209_v45 = vrot.slane %v2112_v37, 9  ;;  %v2119_v7 = vcombine.high %v2112_v37, %v2112_v37  ;;  %v2134_v18 = vrot.slane %v2083_v43, %v7553_v13  ;;  %v5716_v59 = vpop.f32.mrf.mxu1 }
 0x433   :  { %2126 = vst [vmem:[#allocation4 + $0x10] sm:$0x1] %v2083_v43  ;;  %v2146_v46 = vcombine.high %v2083_v43, %v2083_v43  ;;  %vm2077_vm5 = vcmp.gt.f32.partialorder %v2069_v44, 0.0  ;;  %v2081_v47 = vmul.f32 %v2078_v11, %v2069_v44  ;;  %v5992_v40 = vld [vmem:[#allocation16 + $0x484] ss:$16 sps:$4 sm:$0xff]  }
 0x434   :  { %2104 = vst [vmem:[#allocation4 + $0x6] sm:$0x1] %v5207_v33  ;;  %2118 = vst [vmem:[#allocation4 + $0xa] sm:$0x1] %v5209_v45  ;;  %v5210_v48 = vrot.slane %v2119_v7, 9  ;;  %v5211_v50 = vrot.slane %v2134_v18, 9  ;;  %v2139_v32 = vcombine.high %v2134_v18, %v2134_v18 }
 0x435   :  { %2121 = vst [vmem:[#allocation4 + $0xc] sm:$0x1] %v2119_v7  ;;  %v2153_v27 = vrot.slane %v2146_v46, %v7553_v13  ;;  %5213 = vst.sshfl [vmem:[#allocation4 + $0x7] sm:$0x1 pattern:$0x76325410] %v2146_v46  ;;  %v2084_v41 = vsel %vm2077_vm5, %v2069_v44, %v2081_v47 }
 0x436   :  { %2125 = vst [vmem:[#allocation4 + $0xe] sm:$0x1] %v5210_v48  ;;  %2138 = vst [vmem:[#allocation4 + $0x1] sm:$0x1] %v5211_v50  ;;  %v5212_v60 = vrot.slane %v2139_v32, 9  ;;  %v2175_v56 = vrot.slane %v2084_v41, %v7553_v13 }
 0x437   :  { %2141 = vst [vmem:[#allocation4 + $0x3] sm:$0x1] %v2139_v32  ;;  %2167 = vst [vmem:[#allocation4 + $0xf] sm:$0x1] %v2084_v41  ;;  %v5214_v51 = vrot.slane %v2153_v27, 9  ;;  %v2160_v58 = vcombine.high %v2153_v27, %v2153_v27 }
 0x438   :  { %2145 = vst [vmem:[#allocation4 + $0x5] sm:$0x1] %v5212_v60  ;;  %v5216_v55 = vrot.slane %v2175_v56, 9  ;;  %v5987_v31 = vld [vmem:[#allocation16 + $0x6a0] ss:$16 sps:$4 sm:$0xff]  }
 0x439   :  { %2159 = vst [vmem:[#allocation4 + $0x9] sm:$0x1] %v5214_v51  ;;  %2162 = vst [vmem:[#allocation4 + $0xb] sm:$0x1] %v2160_v58  ;;  %v5215_v39 = vrot.slane %v2160_v58, 9 }
 0x43a   :  { %2179 = vst [vmem:[#allocation4 + $0x11] sm:$0x1] %v5216_v55  ;;  %v5995_v9 = vld [vmem:[#allocation16 + $0x684] ss:$16 sps:$4 sm:$0xff]   ;;  %v5993_v25 = vld [vmem:[#allocation16 + $0x680] ss:$16 sps:$4 sm:$0xff]  }
 0x43b   :  { %2166 = vst [vmem:[#allocation4 + $0xd] sm:$0x1] %v5215_v39  ;;  %v5998_v36 = vld [vmem:[#allocation16 + $0x464] ss:$16 sps:$4 sm:$0xff]   ;;  %v5996_v49 = vld [vmem:[#allocation16 + $0x460] ss:$16 sps:$4 sm:$0xff]  }
 0x43c   :  { %v6001_v35 = vld [vmem:[#allocation16 + $0x664] ss:$16 sps:$4 sm:$0xff]   ;;  %v5999_v37 = vld [vmem:[#allocation16 + $0x660] ss:$16 sps:$4 sm:$0xff]  }
 0x43d   :  { %v6004_v42 = vld [vmem:[#allocation16 + $0x444] ss:$16 sps:$4 sm:$0xff]   ;;  %v6002_v43 = vld [vmem:[#allocation16 + $0x440] ss:$16 sps:$4 sm:$0xff]  }
 0x43e   :  { %v6007_v17 = vld [vmem:[#allocation16 + $0x644] ss:$16 sps:$4 sm:$0xff]   ;;  %v6005_v33 = vld [vmem:[#allocation16 + $0x640] ss:$16 sps:$4 sm:$0xff]  }
 0x43f   :  { %v2180_v61 = vld [vmem:[#allocation4] sm:$0xff]  ;;  %v6008_v7 = vld [vmem:[#allocation16 + $0x420] ss:$16 sps:$4 sm:$0xff]  }
 0x440   :  { %v2193_v63 = vrot.slane %v2180_v61, %v7553_v13  ;;  %v2186_v0 = vcombine.high %v2180_v61, %v2180_v61  ;;  %v6010_v44 = vld [vmem:[#allocation16 + $0x424] ss:$16 sps:$4 sm:$0xff]   ;;  %v6011_v59 = vld [vmem:[#allocation16 + $0x620] ss:$16 sps:$4 sm:$0xff]  }
 0x441   :  { %v6013_v45 = vld [vmem:[#allocation16 + $0x624] ss:$16 sps:$4 sm:$0xff]   ;;  %v6014_v47 = vld [vmem:[#allocation16 + $0x400] ss:$16 sps:$4 sm:$0xff]  }
 0x442   :  { %v2201_v62 = vcombine.high %v2193_v63, %v2193_v63  ;;  %v2200_v1 = vrot.slane %v2186_v0, %v7553_v13  ;;  %v2181_v29 = vld [vmem:[#allocation4 + $0x8] sm:$0xff]  ;;  %v7567_v11 = vpack.c.bf16 %v2193_v63, %v2193_v63  ;;  %v6016_v18 = vld [vmem:[#allocation16 + $0x404] ss:$16 sps:$4 sm:$0xff]  }
 0x443   :  { %v7563_v38 = vrot.slane %v2181_v29, %v7553_v13  ;;  %v2203_v3 = vcombine.high %v2181_v29, %v2181_v29  ;;  %v6019_v46 = vld [vmem:[#allocation16 + $0x604] ss:$16 sps:$4 sm:$0xff]   ;;  %v6017_v50 = vld [vmem:[#allocation16 + $0x600] ss:$16 sps:$4 sm:$0xff]  }
 0x444   :  { %v7565_v52 = vpack.c.bf16 %v2201_v62, %v2201_v62  ;;  %v2202_v8 = vcombine.high %v2200_v1, %v2200_v1  ;;  %v7578_v10 = vpack.c.bf16 %v2200_v1, %v2200_v1  ;;  %v6022_v48 = vld [vmem:[#allocation16 + $0x5e4] ss:$16 sps:$4 sm:$0xff]   ;;  %v6020_v27 = vld [vmem:[#allocation16 + $0x5e0] ss:$16 sps:$4 sm:$0xff]  }
 0x445   :  { %v2218_v14 = vcombine.high %v7563_v38, %v7563_v38  ;;  %v7572_v19 = vrot.slane %v2203_v3, %v7553_v13  ;;  %v5977_v13 = vld [vmem:[#allocation16 + $0x4c0] ss:$16 sps:$4 sm:$0xff]   ;;  %v6025_v32 = vld [vmem:[#allocation16 + $0x7e4] ss:$16 sps:$4 sm:$0xff]  }
 0x446   :  { %4027 = vmatprep.mubr.bf16.mxu0 %v7565_v52  ;;  %v7575_v54 = vpack.c.bf16 %v2202_v8, %v2202_v8  ;;  %v6028_v41 = vld [vmem:[#allocation16 + $0x5c4] ss:$16 sps:$4 sm:$0xff]   ;;  %v6023_v60 = vld [vmem:[#allocation16 + $0x7e0] ss:$16 sps:$4 sm:$0xff]  }
 0x447   :  { %4028 = vmatmul.mubr.bf16.vlgmr.msra.gmra.mxu0 %v7567_v11  ;;  %v7580_v57 = vpack.c.bf16 %v2218_v14, %v2218_v14  ;;  %v2219_v5 = vcombine.high %v7572_v19, %v7572_v19  ;;  %v6031_v56 = vld [vmem:[#allocation16 + $0x7c4] ss:$16 sps:$4 sm:$0xff]   ;;  %v6026_v51 = vld [vmem:[#allocation16 + $0x5c0] ss:$16 sps:$4 sm:$0xff]  }
 0x448   :  { %4078 = vmatpush1.bf16.msra.mxu0 %v5970_v53  ;;  %4068 = vmatprep.mubr.bf16.mxu1 %v7575_v54  ;;  %v6034_v58 = vld [vmem:[#allocation16 + $0x5a4] ss:$16 sps:$4 sm:$0xff]   ;;  %v6029_v55 = vld [vmem:[#allocation16 + $0x7c0] ss:$16 sps:$4 sm:$0xff]  }
 0x449   :  { %4109 = vmatprep.mubr.bf16.mxu0 %v7580_v57  ;;  %4069 = vmatmul.mubr.bf16.vlgmr.msra.gmra.mxu1 %v7578_v10  ;;  %v7587_v6 = vpack.c.bf16 %v2219_v5, %v2219_v5  ;;  %v6037_v39 = vld [vmem:[#allocation16 + $0x7a4] ss:$16 sps:$4 sm:$0xff]   ;;  %v6032_v61 = vld [vmem:[#allocation16 + $0x5a0] ss:$16 sps:$4 sm:$0xff]  }
 0x44a   :  { %4119 = vmatpush1.bf16.msra.mxu1 %v5974_v20  ;;  %4079 = vmatprep.subr.bf16.mxu0 %v5979_v4  ;;  %v6040_v63 = vld [vmem:[#allocation16 + $0x584] ss:$16 sps:$4 sm:$0xff]   ;;  %v6035_v0 = vld [vmem:[#allocation16 + $0x7a0] ss:$16 sps:$4 sm:$0xff]  }
 0x44b   :  { %4150 = vmatprep.mubr.bf16.mxu1 %v7587_v6  ;;  %4120 = vmatprep.subr.bf16.mxu1 %v5983_v12  ;;  %v6043_v62 = vld [vmem:[#allocation16 + $0x784] ss:$16 sps:$4 sm:$0xff]   ;;  %v6038_v1 = vld [vmem:[#allocation16 + $0x580] ss:$16 sps:$4 sm:$0xff]  }
 0x44c   :  { %4080 = vmatpush1.bf16.msra.mxu0 %v5977_v13  ;;  %v6046_v29 = vld [vmem:[#allocation16 + $0x564] ss:$16 sps:$4 sm:$0xff]   ;;  %v6041_v3 = vld [vmem:[#allocation16 + $0x780] ss:$16 sps:$4 sm:$0xff]  }
 0x44d   :  { %4081 = vmatprep.subr.bf16.mxu0 %v5986_v15  ;;  %v6049_v53 = vld [vmem:[#allocation16 + $0x764] ss:$16 sps:$4 sm:$0xff]   ;;  %v6044_v8 = vld [vmem:[#allocation16 + $0x560] ss:$16 sps:$4 sm:$0xff]  }
 0x44e   :  { %4121 = vmatpush1.bf16.msra.mxu1 %v5981_v16  ;;  %v6052_v14 = vld [vmem:[#allocation16 + $0x544] ss:$16 sps:$4 sm:$0xff]   ;;  %v6047_v20 = vld [vmem:[#allocation16 + $0x760] ss:$16 sps:$4 sm:$0xff]  }
 0x44f   :  { %4122 = vmatprep.subr.bf16.mxu1 %v5989_v22  ;;  %v6055_v4 = vld [vmem:[#allocation16 + $0x744] ss:$16 sps:$4 sm:$0xff]   ;;  %v6050_v5 = vld [vmem:[#allocation16 + $0x540] ss:$16 sps:$4 sm:$0xff]  }
 0x450   :  { %4082 = vmatpush1.bf16.msra.mxu0 %v5984_v30  ;;  %v6058_v12 = vld [vmem:[#allocation16 + $0x524] ss:$16 sps:$4 sm:$0xff]   ;;  %v6053_v13 = vld [vmem:[#allocation16 + $0x740] ss:$16 sps:$4 sm:$0xff]  }
 0x451   :  { %4083 = vmatprep.subr.bf16.mxu0 %v5992_v40  ;;  %v6061_v15 = vld [vmem:[#allocation16 + $0x724] ss:$16 sps:$4 sm:$0xff]   ;;  %v6056_v16 = vld [vmem:[#allocation16 + $0x520] ss:$16 sps:$4 sm:$0xff]  }
 0x452   :  { %4123 = vmatpush1.bf16.msra.mxu1 %v5987_v31  ;;  %v6064_v22 = vld [vmem:[#allocation16 + $0x504] ss:$16 sps:$4 sm:$0xff]   ;;  %v6059_v30 = vld [vmem:[#allocation16 + $0x720] ss:$16 sps:$4 sm:$0xff]  }
 0x453   :  { %4124 = vmatprep.subr.bf16.mxu1 %v5995_v9  ;;  %v6067_v40 = vld [vmem:[#allocation16 + $0x704] ss:$16 sps:$4 sm:$0xff]   ;;  %v6062_v31 = vld [vmem:[#allocation16 + $0x500] ss:$16 sps:$4 sm:$0xff]  }
 0x454   :  { %4084 = vmatpush1.bf16.msra.mxu0 %v5990_v34  ;;  %v6070_v9 = vld [vmem:[#allocation16 + $0x8e4] ss:$16 sps:$4 sm:$0xff]   ;;  %v6065_v34 = vld [vmem:[#allocation16 + $0x700] ss:$16 sps:$4 sm:$0xff]  }
 0x455   :  { %4085 = vmatprep.subr.bf16.mxu0 %v5998_v36  ;;  %v6073_v36 = vld [vmem:[#allocation16 + $0xec] ss:$16 sps:$4 sm:$0xff]  }
 0x456   :  { %4125 = vmatpush1.bf16.msra.mxu1 %v5993_v25  ;;  %v6068_v25 = vld [vmem:[#allocation16 + $0x8e0] ss:$16 sps:$4 sm:$0xff]  }
 0x457   :  { %4126 = vmatprep.subr.bf16.mxu1 %v6001_v35  ;;  %v7592_v35 = vpack.c.bf16 %v7563_v38, %v7563_v38  ;;  %v6082_v38 = vld [vmem:[#allocation16 + $0x8a4] ss:$16 sps:$4 sm:$0xff]  }
 0x458   :  { %4086 = vmatpush1.bf16.msra.mxu0 %v5996_v49  ;;  %v6076_v49 = vld [vmem:[#allocation16 + $0x8c4] ss:$16 sps:$4 sm:$0xff]  }
 0x459   :  { %4087 = vmatprep.subr.bf16.mxu0 %v6004_v42  ;;  %v6071_v42 = vld [vmem:[#allocation16 + $0xe8] ss:$16 sps:$4 sm:$0xff]  }
 0x45a   :  { %4127 = vmatpush1.bf16.msra.mxu1 %v5999_v37  ;;  %v7597_v37 = vpack.c.bf16 %v7572_v19, %v7572_v19  ;;  %v6088_v19 = vld [vmem:[#allocation16 + $0x884] ss:$16 sps:$4 sm:$0xff]  }
 0x45b   :  { %4128 = vmatprep.subr.bf16.mxu1 %v6007_v17  ;;  %v6079_v17 = vld [vmem:[#allocation16 + $0xcc] ss:$16 sps:$4 sm:$0xff]  }
 0x45c   :  { %4088 = vmatpush1.bf16.msra.mxu0 %v6002_v43  ;;  %v6074_v43 = vld [vmem:[#allocation16 + $0x8c0] ss:$16 sps:$4 sm:$0xff]  }
 0x45d   :  { %4089 = vmatprep.subr.bf16.mxu0 %v6010_v44  ;;  %v6077_v44 = vld [vmem:[#allocation16 + $0xc8] ss:$16 sps:$4 sm:$0xff]  }
 0x45e   :  { %4129 = vmatpush1.bf16.msra.mxu1 %v6005_v33  ;;  %v6085_v33 = vld [vmem:[#allocation16 + $0xac] ss:$16 sps:$4 sm:$0xff]  }
 0x45f   :  { %4130 = vmatprep.subr.bf16.mxu1 %v6013_v45  ;;  %v6080_v45 = vld [vmem:[#allocation16 + $0x8a0] ss:$16 sps:$4 sm:$0xff]  }
 0x460   :  { %4090 = vmatpush1.bf16.msra.mxu0 %v6008_v7  ;;  %v6083_v7 = vld [vmem:[#allocation16 + $0xa8] ss:$16 sps:$4 sm:$0xff]  }
 0x461   :  { %4091 = vmatprep.subr.bf16.mxu0 %v6016_v18  ;;  %v6091_v18 = vld [vmem:[#allocation16 + $0x8c] ss:$16 sps:$4 sm:$0xff]  }
 0x462   :  { %4131 = vmatpush1.bf16.msra.mxu1 %v6011_v59  ;;  %v6086_v59 = vld [vmem:[#allocation16 + $0x880] ss:$16 sps:$4 sm:$0xff]  }
 0x463   :  { %4132 = vmatprep.subr.bf16.mxu1 %v6019_v46  ;;  %v6094_v46 = vld [vmem:[#allocation16 + $0x864] ss:$16 sps:$4 sm:$0xff]  }
 0x464   :  { %4092 = vmatpush1.bf16.msra.mxu0 %v6014_v47  ;;  %v6089_v47 = vld [vmem:[#allocation16 + $0x88] ss:$16 sps:$4 sm:$0xff]  }
 0x465   :  { %4093 = vmatprep.subr.bf16.mxu0 %v6022_v48  ;;  %v6097_v48 = vld [vmem:[#allocation16 + $0x6c] ss:$16 sps:$4 sm:$0xff]  }
 0x466   :  { %4133 = vmatpush1.bf16.msra.mxu1 %v6017_v50  ;;  %v6100_v50 = vld [vmem:[#allocation16 + $0x844] ss:$16 sps:$4 sm:$0xff]  }
 0x467   :  { %4134 = vmatprep.subr.bf16.mxu1 %v6025_v32  ;;  %v6095_v32 = vld [vmem:[#allocation16 + $0x68] ss:$16 sps:$4 sm:$0xff]  }
 0x468   :  { %4094 = vmatpush2.bf16.msra.mxu0 %v6020_v27  ;;  %v6103_v27 = vld [vmem:[#allocation16 + $0x4c] ss:$16 sps:$4 sm:$0xff]  }
 0x469   :  { %4095 = vmatprep.subr.bf16.mxu0 %v6028_v41  ;;  %v6098_v41 = vld [vmem:[#allocation16 + $0x840] ss:$16 sps:$4 sm:$0xff]  }
 0x46a   :  { %4135 = vmatpush2.bf16.msra.mxu1 %v6023_v60  ;;  %v6106_v60 = vld [vmem:[#allocation16 + $0x824] ss:$16 sps:$4 sm:$0xff]  }
 0x46b   :  { %4136 = vmatprep.subr.bf16.mxu1 %v6031_v56  ;;  %v6101_v56 = vld [vmem:[#allocation16 + $0x48] ss:$16 sps:$4 sm:$0xff]  }
 0x46c   :  { %4096 = vmatpush2.bf16.msra.mxu0 %v6026_v51  ;;  %v6109_v51 = vld [vmem:[#allocation16 + $0x2c] ss:$16 sps:$4 sm:$0xff]  }
 0x46d   :  { %4097 = vmatprep.subr.bf16.mxu0 %v6034_v58  ;;  %v6104_v58 = vld [vmem:[#allocation16 + $0x820] ss:$16 sps:$4 sm:$0xff]  }
 0x46e   :  { %4137 = vmatpush2.bf16.msra.mxu1 %v6029_v55  ;;  %v6112_v55 = vld [vmem:[#allocation16 + $0x804] ss:$16 sps:$4 sm:$0xff]  }
 0x46f   :  { %4138 = vmatprep.subr.bf16.mxu1 %v6037_v39  ;;  %v6107_v39 = vld [vmem:[#allocation16 + $0x28] ss:$16 sps:$4 sm:$0xff]  }
 0x470   :  { %4098 = vmatpush2.bf16.msra.mxu0 %v6032_v61  ;;  %v6115_v61 = vld [vmem:[#allocation16 + $0xc] ss:$16 sps:$4 sm:$0xff]  }
 0x471   :  { %4099 = vmatprep.subr.bf16.mxu0 %v6040_v63  ;;  %v6110_v63 = vld [vmem:[#allocation16 + $0x800] ss:$16 sps:$4 sm:$0xff]  }
 0x472   :  { %4139 = vmatpush2.bf16.msra.mxu1 %v6035_v0  ;;  %v6118_v0 = vld [vmem:[#allocation16 + $0x2ec] ss:$16 sps:$4 sm:$0xff]  }
 0x473   :  { %4140 = vmatprep.subr.bf16.mxu1 %v6043_v62  ;;  %v6113_v62 = vld [vmem:[#allocation16 + $0x8] ss:$16 sps:$4 sm:$0xff]  }
 0x474   :  { %4100 = vmatpush2.bf16.msra.mxu0 %v6038_v1  ;;  %v5217_v1 = vld.sshfl [vmem:[#allocation4 + $0x10] sm:$0x3 pattern:$0x76325410] }
 0x475   :  { %4101 = vmatprep.subr.bf16.mxu0 %v6046_v29  ;;  %v6121_v29 = vld [vmem:[#allocation16 + $0x1ec] ss:$16 sps:$4 sm:$0xff]  }
 0x476   :  { %4141 = vmatpush2.bf16.msra.mxu1 %v6041_v3  ;;  %v6116_v3 = vld [vmem:[#allocation16 + $0x2e8] ss:$16 sps:$4 sm:$0xff]  }
 0x477   :  { %4142 = vmatprep.subr.bf16.mxu1 %v6049_v53  ;;  %v7602_v53 = vpack.c.bf16 %v5217_v1, %v5217_v1  ;;  %v6199_v1 = vld [vmem:[#allocation16 + $0x44c] ss:$16 sps:$4 sm:$0xff]  }
 0x478   :  { %4102 = vmatpush2.bf16.msra.mxu0 %v6044_v8  ;;  %v6124_v8 = vld [vmem:[#allocation16 + $0x2cc] ss:$16 sps:$4 sm:$0xff]  }
 0x479   :  { %4103 = vmatprep.subr.bf16.mxu0 %v6052_v14  ;;  %v6119_v14 = vld [vmem:[#allocation16 + $0x1e8] ss:$16 sps:$4 sm:$0xff]  }
 0x47a   :  { %4143 = vmatpush2.bf16.msra.mxu1 %v6047_v20  ;;  %v6127_v20 = vld [vmem:[#allocation16 + $0x1cc] ss:$16 sps:$4 sm:$0xff]  }
 0x47b   :  { %4144 = vmatprep.subr.bf16.mxu1 %v6055_v4  ;;  %v6122_v4 = vld [vmem:[#allocation16 + $0x2c8] ss:$16 sps:$4 sm:$0xff]  }
 0x47c   :  { %4104 = vmatpush2.bf16.msra.mxu0 %v6050_v5  ;;  %v6130_v5 = vld [vmem:[#allocation16 + $0x2ac] ss:$16 sps:$4 sm:$0xff]  }
 0x47d   :  { %4105 = vmatprep.subr.bf16.mxu0 %v6058_v12  ;;  %v6125_v12 = vld [vmem:[#allocation16 + $0x1c8] ss:$16 sps:$4 sm:$0xff]  }
 0x47e   :  { %4145 = vmatpush2.bf16.msra.mxu1 %v6053_v13  ;;  %v6133_v13 = vld [vmem:[#allocation16 + $0x1ac] ss:$16 sps:$4 sm:$0xff]  }
 0x47f   :  { %4146 = vmatprep.subr.bf16.mxu1 %v6061_v15  ;;  %v6128_v15 = vld [vmem:[#allocation16 + $0x2a8] ss:$16 sps:$4 sm:$0xff]  }
 0x480   :  { %4106 = vmatpush2.bf16.msra.mxu0 %v6056_v16  ;;  %v6136_v16 = vld [vmem:[#allocation16 + $0x28c] ss:$16 sps:$4 sm:$0xff]  }
 0x481   :  { %4107 = vmatprep.subr.bf16.mxu0 %v6064_v22  ;;  %v6131_v22 = vld [vmem:[#allocation16 + $0x1a8] ss:$16 sps:$4 sm:$0xff]  }
 0x482   :  { %4147 = vmatpush2.bf16.msra.mxu1 %v6059_v30  ;;  %v6139_v30 = vld [vmem:[#allocation16 + $0x18c] ss:$16 sps:$4 sm:$0xff]  }
 0x483   :  { %4148 = vmatprep.subr.bf16.mxu1 %v6067_v40  ;;  %v6134_v40 = vld [vmem:[#allocation16 + $0x288] ss:$16 sps:$4 sm:$0xff]  }
 0x484   :  { %4108 = vmatpush2.bf16.msra.mxu0 %v6062_v31  ;;  %v6142_v31 = vld [vmem:[#allocation16 + $0x26c] ss:$16 sps:$4 sm:$0xff]  }
 0x485   :  { %4159 = vmatprep.subr.bf16.mxu0 %v6070_v9  ;;  %v6145_v9 = vld [vmem:[#allocation16 + $0x16c] ss:$16 sps:$4 sm:$0xff]  }
 0x486   :  { %4149 = vmatpush2.bf16.msra.mxu1 %v6065_v34  ;;  %v6140_v34 = vld [vmem:[#allocation16 + $0x268] ss:$16 sps:$4 sm:$0xff]  }
 0x487   :  { %4110 = vmatmul.mubr.bf16.vlgmr.msra.gmra.mxu0 %v7592_v35  ;;  %4200 = vmatprep.subr.bf16.mxu1 %v6073_v36  ;;  %v6148_v36 = vld [vmem:[#allocation16 + $0x24c] ss:$16 sps:$4 sm:$0xff]  }
 0x488   :  { %4160 = vmatpush1.bf16.msra.mxu0 %v6068_v25  ;;  %4191 = vmatprep.mubr.bf16.mxu0 %v6705_v2  ;;  %v6143_v25 = vld [vmem:[#allocation16 + $0x168] ss:$16 sps:$4 sm:$0xff]  }
 0x489   :  { %4151 = vmatmul.mubr.bf16.vlgmr.msra.gmra.mxu1 %v7597_v37  ;;  %4161 = vmatprep.subr.bf16.mxu0 %v6076_v49  ;;  %v6151_v49 = vld [vmem:[#allocation16 + $0x14c] ss:$16 sps:$4 sm:$0xff]  }
 0x48a   :  { %4201 = vmatpush1.bf16.msra.mxu1 %v6071_v42  ;;  %4232 = vmatprep.mubr.bf16.mxu1 %v7565_v52  ;;  %v6092_v52 = vld [vmem:[#allocation16 + $0x860] ss:$16 sps:$4 sm:$0xff]   ;;  %v6146_v42 = vld [vmem:[#allocation16 + $0x248] ss:$16 sps:$4 sm:$0xff]  }
 0x48b   :  { %4202 = vmatprep.subr.bf16.mxu1 %v6079_v17  ;;  %v6154_v17 = vld [vmem:[#allocation16 + $0x22c] ss:$16 sps:$4 sm:$0xff]  }
 0x48c   :  { %4162 = vmatpush1.bf16.msra.mxu0 %v6074_v43  ;;  %v6149_v43 = vld [vmem:[#allocation16 + $0x148] ss:$16 sps:$4 sm:$0xff]  }
 0x48d   :  { %4163 = vmatprep.subr.bf16.mxu0 %v6082_v38  ;;  %v6157_v38 = vld [vmem:[#allocation16 + $0x12c] ss:$16 sps:$4 sm:$0xff]  }
 0x48e   :  { %4203 = vmatpush1.bf16.msra.mxu1 %v6077_v44  ;;  %v6152_v44 = vld [vmem:[#allocation16 + $0x228] ss:$16 sps:$4 sm:$0xff]  }
 0x48f   :  { %4204 = vmatprep.subr.bf16.mxu1 %v6085_v33  ;;  %v6160_v33 = vld [vmem:[#allocation16 + $0x20c] ss:$16 sps:$4 sm:$0xff]  }
 0x490   :  { %4164 = vmatpush1.bf16.msra.mxu0 %v6080_v45  ;;  %v6155_v45 = vld [vmem:[#allocation16 + $0x128] ss:$16 sps:$4 sm:$0xff]  }
 0x491   :  { %4165 = vmatprep.subr.bf16.mxu0 %v6088_v19  ;;  %v6163_v19 = vld [vmem:[#allocation16 + $0x10c] ss:$16 sps:$4 sm:$0xff]  }
 0x492   :  { %4205 = vmatpush1.bf16.msra.mxu1 %v6083_v7  ;;  %v6158_v7 = vld [vmem:[#allocation16 + $0x208] ss:$16 sps:$4 sm:$0xff]  }
 0x493   :  { %4206 = vmatprep.subr.bf16.mxu1 %v6091_v18  ;;  %v6166_v18 = vld [vmem:[#allocation16 + $0x3ec] ss:$16 sps:$4 sm:$0xff]  }
 0x494   :  { %4166 = vmatpush1.bf16.msra.mxu0 %v6086_v59  ;;  %v6161_v59 = vld [vmem:[#allocation16 + $0x108] ss:$16 sps:$4 sm:$0xff]  }
 0x495   :  { %4167 = vmatprep.subr.bf16.mxu0 %v6094_v46  ;;  %v6169_v46 = vld [vmem:[#allocation16 + $0x4ec] ss:$16 sps:$4 sm:$0xff]  }
 0x496   :  { %4207 = vmatpush1.bf16.msra.mxu1 %v6089_v47  ;;  %v6164_v47 = vld [vmem:[#allocation16 + $0x3e8] ss:$16 sps:$4 sm:$0xff]  }
 0x497   :  { %4208 = vmatprep.subr.bf16.mxu1 %v6097_v48  ;;  %v6172_v48 = vld [vmem:[#allocation16 + $0x3cc] ss:$16 sps:$4 sm:$0xff]  }
 0x498   :  { %4168 = vmatpush1.bf16.msra.mxu0 %v6092_v52  ;;  %v6167_v52 = vld [vmem:[#allocation16 + $0x4e8] ss:$16 sps:$4 sm:$0xff]  }
 0x499   :  { %4169 = vmatprep.subr.bf16.mxu0 %v6100_v50  ;;  %v6175_v50 = vld [vmem:[#allocation16 + $0x4cc] ss:$16 sps:$4 sm:$0xff]  }
 0x49a   :  { %4209 = vmatpush1.bf16.msra.mxu1 %v6095_v32  ;;  %v6170_v32 = vld [vmem:[#allocation16 + $0x3c8] ss:$16 sps:$4 sm:$0xff]  }
 0x49b   :  { %4210 = vmatprep.subr.bf16.mxu1 %v6103_v27  ;;  %v6178_v27 = vld [vmem:[#allocation16 + $0x3ac] ss:$16 sps:$4 sm:$0xff]  }
 0x49c   :  { %4170 = vmatpush1.bf16.msra.mxu0 %v6098_v41  ;;  %v6173_v41 = vld [vmem:[#allocation16 + $0x4c8] ss:$16 sps:$4 sm:$0xff]  }
 0x49d   :  { %4171 = vmatprep.subr.bf16.mxu0 %v6106_v60  ;;  %v6181_v60 = vld [vmem:[#allocation16 + $0x4ac] ss:$16 sps:$4 sm:$0xff]  }
 0x49e   :  { %4211 = vmatpush1.bf16.msra.mxu1 %v6101_v56  ;;  %v6176_v56 = vld [vmem:[#allocation16 + $0x3a8] ss:$16 sps:$4 sm:$0xff]  }
 0x49f   :  { %4212 = vmatprep.subr.bf16.mxu1 %v6109_v51  ;;  %v6184_v51 = vld [vmem:[#allocation16 + $0x38c] ss:$16 sps:$4 sm:$0xff]  }
 0x4a0   :  { %4172 = vmatpush1.bf16.msra.mxu0 %v6104_v58  ;;  %v6179_v58 = vld [vmem:[#allocation16 + $0x4a8] ss:$16 sps:$4 sm:$0xff]  }
 0x4a1   :  { %4173 = vmatprep.subr.bf16.mxu0 %v6112_v55  ;;  %v6187_v55 = vld [vmem:[#allocation16 + $0x48c] ss:$16 sps:$4 sm:$0xff]  }
 0x4a2   :  { %4213 = vmatpush1.bf16.msra.mxu1 %v6107_v39  ;;  %v6182_v39 = vld [vmem:[#allocation16 + $0x388] ss:$16 sps:$4 sm:$0xff]  }
 0x4a3   :  { %4214 = vmatprep.subr.bf16.mxu1 %v6115_v61  ;;  %v6185_v61 = vld [vmem:[#allocation16 + $0x488] ss:$16 sps:$4 sm:$0xff]  }
 0x4a4   :  { %4174 = vmatpush1.bf16.msra.mxu0 %v6110_v63  ;;  %v6193_v63 = vld [vmem:[#allocation16 + $0x46c] ss:$16 sps:$4 sm:$0xff]  }
 0x4a5   :  { %4241 = vmatprep.subr.bf16.mxu0 %v6118_v0  ;;  %v6196_v0 = vld [vmem:[#allocation16 + $0x34c] ss:$16 sps:$4 sm:$0xff]  }
 0x4a6   :  { %4215 = vmatpush1.bf16.msra.mxu1 %v6113_v62  ;;  %v6191_v62 = vld [vmem:[#allocation16 + $0x468] ss:$16 sps:$4 sm:$0xff]  }
 0x4a7   :  { %4192 = vmatmul.mubr.bf16.vlgmr.msra.gmra.mxu0 %v7602_v53  ;;  %4216 = vmatprep.subr.bf16.mxu1 %v6121_v29  ;;  %v6194_v29 = vld [vmem:[#allocation16 + $0x348] ss:$16 sps:$4 sm:$0xff]  }
 0x4a8   :  { %4242 = vmatpush1.bf16.msra.mxu0 %v6116_v3  ;;  %4273 = vmatprep.mubr.bf16.mxu0 %v7575_v54  ;;  %v6137_v54 = vld [vmem:[#allocation16 + $0x188] ss:$16 sps:$4 sm:$0xff]   ;;  %v6202_v3 = vld [vmem:[#allocation16 + $0x32c] ss:$16 sps:$4 sm:$0xff]  }
 0x4a9   :  { %4243 = vmatprep.subr.bf16.mxu0 %v6124_v8  ;;  %v6197_v8 = vld [vmem:[#allocation16 + $0x448] ss:$16 sps:$4 sm:$0xff]  }
 0x4aa   :  { %4217 = vmatpush2.bf16.msra.mxu1 %v6119_v14  ;;  %v6205_v14 = vld [vmem:[#allocation16 + $0x42c] ss:$16 sps:$4 sm:$0xff]  }
 0x4ab   :  { %4218 = vmatprep.subr.bf16.mxu1 %v6127_v20  ;;  %v6200_v20 = vld [vmem:[#allocation16 + $0x328] ss:$16 sps:$4 sm:$0xff]  }
 0x4ac   :  { %4244 = vmatpush1.bf16.msra.mxu0 %v6122_v4  ;;  %v6208_v4 = vld [vmem:[#allocation16 + $0x30c] ss:$16 sps:$4 sm:$0xff]  }
 0x4ad   :  { %4245 = vmatprep.subr.bf16.mxu0 %v6130_v5  ;;  %v6203_v5 = vld [vmem:[#allocation16 + $0x428] ss:$16 sps:$4 sm:$0xff]  }
 0x4ae   :  { %4219 = vmatpush2.bf16.msra.mxu1 %v6125_v12  ;;  %v6211_v12 = vld [vmem:[#allocation16 + $0x40c] ss:$16 sps:$4 sm:$0xff]  }
 0x4af   :  { %4220 = vmatprep.subr.bf16.mxu1 %v6133_v13  ;;  %v6206_v13 = vld [vmem:[#allocation16 + $0x308] ss:$16 sps:$4 sm:$0xff]  }
 0x4b0   :  { %4246 = vmatpush1.bf16.msra.mxu0 %v6128_v15  ;;  %v6214_v15 = vld [vmem:[#allocation16 + $0x6ec] ss:$16 sps:$4 sm:$0xff]  }
 0x4b1   :  { %4247 = vmatprep.subr.bf16.mxu0 %v6136_v16  ;;  %v6209_v16 = vld [vmem:[#allocation16 + $0x408] ss:$16 sps:$4 sm:$0xff]  }
 0x4b2   :  { %4221 = vmatpush2.bf16.msra.mxu1 %v6131_v22  ;;  %v6217_v22 = vld [vmem:[#allocation16 + $0x5ec] ss:$16 sps:$4 sm:$0xff]  }
 0x4b3   :  { %4222 = vmatprep.subr.bf16.mxu1 %v6139_v30  ;;  %v6212_v30 = vld [vmem:[#allocation16 + $0x6e8] ss:$16 sps:$4 sm:$0xff]  }
 0x4b4   :  { %4248 = vmatpush1.bf16.msra.mxu0 %v6134_v40  ;;  %v6220_v40 = vld [vmem:[#allocation16 + $0x6cc] ss:$16 sps:$4 sm:$0xff]  }
 0x4b5   :  { %4249 = vmatprep.subr.bf16.mxu0 %v6142_v31  ;;  %v6215_v31 = vld [vmem:[#allocation16 + $0x5e8] ss:$16 sps:$4 sm:$0xff]  }
 0x4b6   :  { %4223 = vmatpush2.bf16.msra.mxu1 %v6137_v54  ;;  %v6223_v54 = vld [vmem:[#allocation16 + $0x5cc] ss:$16 sps:$4 sm:$0xff]  }
 0x4b7   :  { %4224 = vmatprep.subr.bf16.mxu1 %v6145_v9  ;;  %v6218_v9 = vld [vmem:[#allocation16 + $0x6c8] ss:$16 sps:$4 sm:$0xff]  }
 0x4b8   :  { %4250 = vmatpush1.bf16.msra.mxu0 %v6140_v34  ;;  %v6226_v34 = vld [vmem:[#allocation16 + $0x6ac] ss:$16 sps:$4 sm:$0xff]  }
 0x4b9   :  { %4251 = vmatprep.subr.bf16.mxu0 %v6148_v36  ;;  %v6221_v36 = vld [vmem:[#allocation16 + $0x5c8] ss:$16 sps:$4 sm:$0xff]  }
 0x4ba   :  { %4225 = vmatpush2.bf16.msra.mxu1 %v6143_v25  ;;  %v6229_v25 = vld [vmem:[#allocation16 + $0x5ac] ss:$16 sps:$4 sm:$0xff]  }
 0x4bb   :  { %4226 = vmatprep.subr.bf16.mxu1 %v6151_v49  ;;  %v6224_v49 = vld [vmem:[#allocation16 + $0x6a8] ss:$16 sps:$4 sm:$0xff]  }
 0x4bc   :  { %4252 = vmatpush1.bf16.msra.mxu0 %v6146_v42  ;;  %v6232_v42 = vld [vmem:[#allocation16 + $0x68c] ss:$16 sps:$4 sm:$0xff]  }
 0x4bd   :  { %4253 = vmatprep.subr.bf16.mxu0 %v6154_v17  ;;  %v6227_v17 = vld [vmem:[#allocation16 + $0x5a8] ss:$16 sps:$4 sm:$0xff]  }
 0x4be   :  { %4227 = vmatpush2.bf16.msra.mxu1 %v6149_v43  ;;  %v6230_v43 = vld [vmem:[#allocation16 + $0x688] ss:$16 sps:$4 sm:$0xff]  }
 0x4bf   :  { %4228 = vmatprep.subr.bf16.mxu1 %v6157_v38  ;;  %v6238_v38 = vld [vmem:[#allocation16 + $0x66c] ss:$16 sps:$4 sm:$0xff]  }
 0x4c0   :  { %4254 = vmatpush1.bf16.msra.mxu0 %v6152_v44  ;;  %v6241_v44 = vld [vmem:[#allocation16 + $0x56c] ss:$16 sps:$4 sm:$0xff]  }
 0x4c1   :  { %4255 = vmatprep.subr.bf16.mxu0 %v6160_v33  ;;  %v6236_v33 = vld [vmem:[#allocation16 + $0x668] ss:$16 sps:$4 sm:$0xff]  }
 0x4c2   :  { %4229 = vmatpush2.bf16.msra.mxu1 %v6155_v45  ;;  %v6244_v45 = vld [vmem:[#allocation16 + $0x64c] ss:$16 sps:$4 sm:$0xff]  }
 0x4c3   :  { %4230 = vmatprep.subr.bf16.mxu1 %v6163_v19  ;;  %v6239_v19 = vld [vmem:[#allocation16 + $0x568] ss:$16 sps:$4 sm:$0xff]  }
 0x4c4   :  { %4256 = vmatpush1.bf16.msra.mxu0 %v6158_v7  ;;  %v6247_v7 = vld [vmem:[#allocation16 + $0x54c] ss:$16 sps:$4 sm:$0xff]  }
 0x4c5   :  { %4257 = vmatprep.subr.bf16.mxu0 %v6166_v18  ;;  %v6242_v18 = vld [vmem:[#allocation16 + $0x648] ss:$16 sps:$4 sm:$0xff]  }
 0x4c6   :  { %4231 = vmatpush2.bf16.msra.mxu1 %v6161_v59  ;;  %v6250_v59 = vld [vmem:[#allocation16 + $0x62c] ss:$16 sps:$4 sm:$0xff]  }
 0x4c7   :  { %4282 = vmatprep.subr.bf16.mxu1 %v6169_v46  ;;  %v6245_v46 = vld [vmem:[#allocation16 + $0x548] ss:$16 sps:$4 sm:$0xff]  }
 0x4c8   :  { %4258 = vmatpush2.bf16.msra.mxu0 %v6164_v47  ;;  %v6253_v47 = vld [vmem:[#allocation16 + $0x52c] ss:$16 sps:$4 sm:$0xff]  }
 0x4c9   :  { %4233 = vmatmul.mubr.bf16.vlgmr.msra.gmra.mxu1 %v7567_v11  ;;  %4259 = vmatprep.subr.bf16.mxu0 %v6172_v48  ;;  %v6190_v11 = vld [vmem:[#allocation16 + $0x36c] ss:$16 sps:$4 sm:$0xff]   ;;  %v6248_v48 = vld [vmem:[#allocation16 + $0x628] ss:$16 sps:$4 sm:$0xff]  }
 0x4ca   :  { %4283 = vmatpush1.bf16.msra.mxu1 %v6167_v52  ;;  %4314 = vmatprep.mubr.bf16.mxu1 %v7580_v57  ;;  %v6188_v57 = vld [vmem:[#allocation16 + $0x368] ss:$16 sps:$4 sm:$0xff]   ;;  %v6256_v52 = vld [vmem:[#allocation16 + $0x60c] ss:$16 sps:$4 sm:$0xff]  }
 0x4cb   :  { %4284 = vmatprep.subr.bf16.mxu1 %v6175_v50  ;;  %v6251_v50 = vld [vmem:[#allocation16 + $0x528] ss:$16 sps:$4 sm:$0xff]  }
 0x4cc   :  { %4260 = vmatpush2.bf16.msra.mxu0 %v6170_v32  ;;  %v6259_v32 = vld [vmem:[#allocation16 + $0x50c] ss:$16 sps:$4 sm:$0xff]  }
 0x4cd   :  { %4261 = vmatprep.subr.bf16.mxu0 %v6178_v27  ;;  %v6254_v27 = vld [vmem:[#allocation16 + $0x608] ss:$16 sps:$4 sm:$0xff]  }
 0x4ce   :  { %4285 = vmatpush1.bf16.msra.mxu1 %v6173_v41  ;;  %v6262_v41 = vld [vmem:[#allocation16 + $0x7ec] ss:$16 sps:$4 sm:$0xff]  }
 0x4cf   :  { %4286 = vmatprep.subr.bf16.mxu1 %v6181_v60  ;;  %v7610_v60 = vld [vmem:[#allocation18] sm:$0xf] }
 0x4d0   :  { %4262 = vmatpush2.bf16.msra.mxu0 %v6176_v56  ;;  %v6257_v56 = vld [vmem:[#allocation16 + $0x508] ss:$16 sps:$4 sm:$0xff]  }
 0x4d1   :  { %4263 = vmatprep.subr.bf16.mxu0 %v6184_v51  ;;  %v6265_v51 = vld [vmem:[#allocation16 + $0x8ec] ss:$16 sps:$4 sm:$0xff]  }
 0x4d2   :  { %4287 = vmatpush1.bf16.msra.mxu1 %v6179_v58  ;;  %v6260_v58 = vld [vmem:[#allocation16 + $0x7e8] ss:$16 sps:$4 sm:$0xff]  }
 0x4d3   :  { %4288 = vmatprep.subr.bf16.mxu1 %v6187_v55  ;;  %v2538_v55 = vrot.slane %v7610_v60, %v6887_v24 }
 0x4d4   :  { %4264 = vmatpush2.bf16.msra.mxu0 %v6182_v39  ;;  %v6268_v39 = vld [vmem:[#allocation16 + $0x7cc] ss:$16 sps:$4 sm:$0xff]  }
 0x4d5   :  { %4265 = vmatprep.subr.bf16.mxu0 %v6190_v11  ;;  %v6263_v11 = vld [vmem:[#allocation16 + $0x8e8] ss:$16 sps:$4 sm:$0xff]  }
 0x4d6   :  { %4289 = vmatpush1.bf16.msra.mxu1 %v6185_v61  ;;  %v2542_v61 = vrot.slane %v7610_v60, %v6884_v23 }
 0x4d7   :  { %4290 = vmatprep.subr.bf16.mxu1 %v6193_v63 }
 0x4d8   :  { %4266 = vmatpush2.bf16.msra.mxu0 %v6188_v57  ;;  %v6271_v57 = vld [vmem:[#allocation16 + $0x8cc] ss:$16 sps:$4 sm:$0xff]  }
 0x4d9   :  { %4267 = vmatprep.subr.bf16.mxu0 %v6196_v0 }
 0x4da   :  { %4291 = vmatpush1.bf16.msra.mxu1 %v6191_v62  ;;  %v6266_v62 = vld [vmem:[#allocation16 + $0x7c8] ss:$16 sps:$4 sm:$0xff]  }
 0x4db   :  { %4292 = vmatprep.subr.bf16.mxu1 %v6199_v1 }
 0x4dc   :  { %4268 = vmatpush2.bf16.msra.mxu0 %v6194_v29 }
 0x4dd   :  { %4269 = vmatprep.subr.bf16.mxu0 %v6202_v3  ;;  %v6274_v3 = vld [vmem:[#allocation16 + $0x7ac] ss:$16 sps:$4 sm:$0xff]  }
 0x4de   :  { %4293 = vmatpush1.bf16.msra.mxu1 %v6197_v8 }
 0x4df   :  { %4294 = vmatprep.subr.bf16.mxu1 %v6205_v14 }
 0x4e0   :  { %4270 = vmatpush2.bf16.msra.mxu0 %v6200_v20  ;;  %v6269_v20 = vld [vmem:[#allocation16 + $0x8c8] ss:$16 sps:$4 sm:$0xff]  }
 0x4e1   :  { %4271 = vmatprep.subr.bf16.mxu0 %v6208_v4 }
 0x4e2   :  { %4295 = vmatpush1.bf16.msra.mxu1 %v6203_v5 }
 0x4e3   :  { %4296 = vmatprep.subr.bf16.mxu1 %v6211_v12  ;;  %v6277_v12 = vld [vmem:[#allocation16 + $0x8ac] ss:$16 sps:$4 sm:$0xff]  }
 0x4e4   :  { %4272 = vmatpush2.bf16.msra.mxu0 %v6206_v13 }
 0x4e5   :  { %4323 = vmatprep.subr.bf16.mxu0 %v6214_v15  ;;  %v6272_v15 = vld [vmem:[#allocation16 + $0x7a8] ss:$16 sps:$4 sm:$0xff]  }
 0x4e6   :  { %4297 = vmatpush1.bf16.msra.mxu1 %v6209_v16 }
 0x4e7   :  { %4274 = vmatmul.mubr.bf16.vlgmr.msra.gmra.mxu0 %v7578_v10  ;;  %4298 = vmatprep.subr.bf16.mxu1 %v6217_v22  ;;  %v6235_v10 = vld [vmem:[#allocation16 + $0x58c] ss:$16 sps:$4 sm:$0xff]  }
 0x4e8   :  { %4324 = vmatpush1.bf16.msra.mxu0 %v6212_v30  ;;  %4355 = vmatprep.mubr.bf16.mxu0 %v7587_v6  ;;  %v6233_v6 = vld [vmem:[#allocation16 + $0x588] ss:$16 sps:$4 sm:$0xff]   ;;  %v6280_v22 = vld [vmem:[#allocation16 + $0x78c] ss:$16 sps:$4 sm:$0xff]  }
 0x4e9   :  { %4325 = vmatprep.subr.bf16.mxu0 %v6220_v40  ;;  %v6275_v30 = vld [vmem:[#allocation16 + $0x8a8] ss:$16 sps:$4 sm:$0xff]  }
 0x4ea   :  { %4299 = vmatpush2.bf16.msra.mxu1 %v6215_v31  ;;  %v6283_v31 = vld [vmem:[#allocation16 + $0x88c] ss:$16 sps:$4 sm:$0xff]  }
 0x4eb   :  { %4300 = vmatprep.subr.bf16.mxu1 %v6223_v54  ;;  %v6278_v54 = vld [vmem:[#allocation16 + $0x788] ss:$16 sps:$4 sm:$0xff]  }
 0x4ec   :  { %4326 = vmatpush1.bf16.msra.mxu0 %v6218_v9  ;;  %v6281_v9 = vld [vmem:[#allocation16 + $0x888] ss:$16 sps:$4 sm:$0xff]  }
 0x4ed   :  { %4327 = vmatprep.subr.bf16.mxu0 %v6226_v34  ;;  %v6289_v34 = vld [vmem:[#allocation16 + $0x86c] ss:$16 sps:$4 sm:$0xff]  }
 0x4ee   :  { %4301 = vmatpush2.bf16.msra.mxu1 %v6221_v36  ;;  %v6284_v36 = vld [vmem:[#allocation16 + $0x768] ss:$16 sps:$4 sm:$0xff]  }
 0x4ef   :  { %4302 = vmatprep.subr.bf16.mxu1 %v6229_v25  ;;  %v6292_v25 = vld [vmem:[#allocation16 + $0x74c] ss:$16 sps:$4 sm:$0xff]  }
 0x4f0   :  { %4328 = vmatpush1.bf16.msra.mxu0 %v6224_v49  ;;  %v6287_v49 = vld [vmem:[#allocation16 + $0x868] ss:$16 sps:$4 sm:$0xff]  }
 0x4f1   :  { %4329 = vmatprep.subr.bf16.mxu0 %v6232_v42  ;;  %v6295_v42 = vld [vmem:[#allocation16 + $0x84c] ss:$16 sps:$4 sm:$0xff]  }
 0x4f2   :  { %4303 = vmatpush2.bf16.msra.mxu1 %v6227_v17  ;;  %v6290_v17 = vld [vmem:[#allocation16 + $0x748] ss:$16 sps:$4 sm:$0xff]  }
 0x4f3   :  { %4304 = vmatprep.subr.bf16.mxu1 %v6235_v10  ;;  %v6298_v10 = vld [vmem:[#allocation16 + $0x72c] ss:$16 sps:$4 sm:$0xff]  }
 0x4f4   :  { %4330 = vmatpush1.bf16.msra.mxu0 %v6230_v43  ;;  %v6293_v43 = vld [vmem:[#allocation16 + $0x848] ss:$16 sps:$4 sm:$0xff]  }
 0x4f5   :  { %4331 = vmatprep.subr.bf16.mxu0 %v6238_v38  ;;  %v6301_v38 = vld [vmem:[#allocation16 + $0x82c] ss:$16 sps:$4 sm:$0xff]  }
 0x4f6   :  { %4305 = vmatpush2.bf16.msra.mxu1 %v6233_v6  ;;  %v6296_v6 = vld [vmem:[#allocation16 + $0x728] ss:$16 sps:$4 sm:$0xff]  }
 0x4f7   :  { %4306 = vmatprep.subr.bf16.mxu1 %v6241_v44  ;;  %v6304_v44 = vld [vmem:[#allocation16 + $0x70c] ss:$16 sps:$4 sm:$0xff]  }
 0x4f8   :  { %4332 = vmatpush1.bf16.msra.mxu0 %v6236_v33  ;;  %v6299_v33 = vld [vmem:[#allocation16 + $0x828] ss:$16 sps:$4 sm:$0xff]  }
 0x4f9   :  { %4333 = vmatprep.subr.bf16.mxu0 %v6244_v45  ;;  %v6307_v45 = vld [vmem:[#allocation16 + $0x80c] ss:$16 sps:$4 sm:$0xff]  }
 0x4fa   :  { %4307 = vmatpush2.bf16.msra.mxu1 %v6239_v19  ;;  %v6302_v19 = vld [vmem:[#allocation16 + $0x708] ss:$16 sps:$4 sm:$0xff]  }
 0x4fb   :  { %4308 = vmatprep.subr.bf16.mxu1 %v6247_v7  ;;  %v6310_v7 = vld [vmem:[#allocation19 + $0x74] ss:$8 sps:$4 sm:$0xff]  }
 0x4fc   :  { %4334 = vmatpush1.bf16.msra.mxu0 %v6242_v18  ;;  %v6305_v18 = vld [vmem:[#allocation16 + $0x808] ss:$16 sps:$4 sm:$0xff]  }
 0x4fd   :  { %4335 = vmatprep.subr.bf16.mxu0 %v6250_v59  ;;  %v6308_v59 = vld [vmem:[#allocation19 + $0x70] ss:$8 sps:$4 sm:$0xff]  }
 0x4fe   :  { %4309 = vmatpush2.bf16.msra.mxu1 %v6245_v46  ;;  %v6313_v46 = vld [vmem:[#allocation19 + $0x64] ss:$8 sps:$4 sm:$0xff]  }
 0x4ff   :  { %4310 = vmatprep.subr.bf16.mxu1 %v6253_v47  ;;  %v6311_v47 = vld [vmem:[#allocation19 + $0x60] ss:$8 sps:$4 sm:$0xff]  }
 0x500   :  { %4336 = vmatpush1.bf16.msra.mxu0 %v6248_v48  ;;  %v6316_v48 = vld [vmem:[#allocation19 + $0x54] ss:$8 sps:$4 sm:$0xff]  }
 0x501   :  { %4337 = vmatprep.subr.bf16.mxu0 %v6256_v52  ;;  %v6314_v52 = vld [vmem:[#allocation19 + $0x50] ss:$8 sps:$4 sm:$0xff]  }
 0x502   :  { %4311 = vmatpush2.bf16.msra.mxu1 %v6251_v50  ;;  %v6319_v50 = vld [vmem:[#allocation19 + $0x44] ss:$8 sps:$4 sm:$0xff]  }
 0x503   :  { %4312 = vmatprep.subr.bf16.mxu1 %v6259_v32  ;;  %v6317_v32 = vld [vmem:[#allocation19 + $0x40] ss:$8 sps:$4 sm:$0xff]  }
 0x504   :  { %4338 = vmatpush1.bf16.msra.mxu0 %v6254_v27  ;;  %v6322_v27 = vld [vmem:[#allocation19 + $0x34] ss:$8 sps:$4 sm:$0xff]  }
 0x505   :  { %4339 = vmatprep.subr.bf16.mxu0 %v6262_v41  ;;  %v6320_v41 = vld [vmem:[#allocation19 + $0x30] ss:$8 sps:$4 sm:$0xff]  }
 0x506   :  { %4313 = vmatpush2.bf16.msra.mxu1 %v6257_v56  ;;  %v6325_v56 = vld [vmem:[#allocation19 + $0x24] ss:$8 sps:$4 sm:$0xff]  }
 0x507   :  { %v4029_v63 = vpop.f32.mrf.mxu0  ;;  %4364 = vmatprep.subr.bf16.mxu1 %v6265_v51  ;;  %v6328_v51 = vld [vmem:[#allocation19 + $0x14] ss:$8 sps:$4 sm:$0xff]  }
 0x508   :  { %v4030_v0 = vadd.f32 %v4029_v63, %v2538_v55  ;;  %4340 = vmatpush2.bf16.msra.mxu0 %v6260_v58  ;;  %v6331_v58 = vld [vmem:[#allocation19 + $0x4] ss:$8 sps:$4 sm:$0xff]   ;;  %v6329_v55 = vld [vmem:[#allocation19] ss:$8 sps:$4 sm:$0xff]  }
 0x509   :  { %4315 = vmatmul.mubr.bf16.vlgmr.msra.gmra.mxu1 %v7592_v35  ;;  %v4031_v1 = vpop.f32.mrf.mxu0  ;;  %v4070_v29 = vpop.f32.mrf.mxu1  ;;  %4341 = vmatprep.subr.bf16.mxu0 %v6268_v39  ;;  %v6334_v39 = vld [vmem:[#allocation19 + $0xf4] ss:$8 sps:$4 sm:$0xff]  }
 0x50a   :  { %v4032_v8 = vadd.f32 %v4031_v1, %v2542_v61  ;;  %v7617_v14 = vadd.f32 %v4070_v29, %v4030_v0  ;;  %4365 = vmatpush1.bf16.msra.mxu1 %v6263_v11  ;;  %4396 = vmatprep.mubr.bf16.mxu1 %v6705_v2  ;;  %v6286_v2 = vld [vmem:[#allocation16 + $0x76c] ss:$16 sps:$4 sm:$0xff]   ;;  %v6337_v61 = vld [vmem:[#allocation19 + $0xe4] ss:$8 sps:$4 sm:$0xff]   ;;  %v6340_v1 = vld [vmem:[#allocation19 + $0xd4] ss:$8 sps:$4 sm:$0xff]  }
 0x50b   :  { %v4033_v4 = vpop.f32.mrf.mxu0  ;;  %v4072_v5 = vpop.f32.mrf.mxu1  ;;  %4366 = vmatprep.subr.bf16.mxu1 %v6271_v57  ;;  %v6332_v11 = vld [vmem:[#allocation19 + $0xf0] ss:$8 sps:$4 sm:$0xff]   ;;  %v6335_v57 = vld [vmem:[#allocation19 + $0xe0] ss:$8 sps:$4 sm:$0xff]  }
 0x50c   :  { %v7620_v13 = vadd.f32 %v4072_v5, %v4032_v8  ;;  %4342 = vmatpush2.bf16.msra.mxu0 %v6266_v62  ;;  %v6338_v8 = vld [vmem:[#allocation19 + $0xd0] ss:$8 sps:$4 sm:$0xff]   ;;  %v6343_v5 = vld [vmem:[#allocation19 + $0xc4] ss:$8 sps:$4 sm:$0xff]  }
 0x50d   :  { %v4034_v35 = vpop.f32.mrf.mxu0  ;;  %v4074_v16 = vpop.f32.mrf.mxu1  ;;  %4343 = vmatprep.subr.bf16.mxu0 %v6274_v3 }
 0x50e   :  { %4367 = vmatpush1.bf16.msra.mxu1 %v6269_v20  ;;  %v6358_v35 = vld [vmem:[#allocation19 + $0x174] ss:$8 sps:$4 sm:$0xff]   ;;  %v6341_v16 = vld [vmem:[#allocation19 + $0xc0] ss:$8 sps:$4 sm:$0xff]  }
 0x50f   :  { %v4075_v40 = vpop.f32.mrf.mxu1  ;;  %4368 = vmatprep.subr.bf16.mxu1 %v6277_v12 }
 0x510   :  { %4344 = vmatpush2.bf16.msra.mxu0 %v6272_v15  ;;  %v6356_v15 = vld [vmem:[#allocation19 + $0x170] ss:$8 sps:$4 sm:$0xff]   ;;  %v6359_v40 = vld [vmem:[#allocation19 + $0x160] ss:$8 sps:$4 sm:$0xff]  }
 0x511   :  { %4345 = vmatprep.subr.bf16.mxu0 %v6280_v22  ;;  %v6361_v22 = vld [vmem:[#allocation19 + $0x164] ss:$8 sps:$4 sm:$0xff]  }
 0x512   :  { %4369 = vmatpush1.bf16.msra.mxu1 %v6275_v30  ;;  %v6346_v30 = vld [vmem:[#allocation19 + $0xb4] ss:$8 sps:$4 sm:$0xff]  }
 0x513   :  { %4370 = vmatprep.subr.bf16.mxu1 %v6283_v31  ;;  %v6364_v31 = vld [vmem:[#allocation19 + $0x154] ss:$8 sps:$4 sm:$0xff]  }
 0x514   :  { %4346 = vmatpush2.bf16.msra.mxu0 %v6278_v54  ;;  %v6344_v54 = vld [vmem:[#allocation19 + $0xb0] ss:$8 sps:$4 sm:$0xff]  }
 0x515   :  { %4347 = vmatprep.subr.bf16.mxu0 %v6286_v2  ;;  %v6349_v2 = vld [vmem:[#allocation19 + $0xa4] ss:$8 sps:$4 sm:$0xff]  }
 0x516   :  { %4371 = vmatpush1.bf16.msra.mxu1 %v6281_v9  ;;  %v6362_v9 = vld [vmem:[#allocation19 + $0x150] ss:$8 sps:$4 sm:$0xff]  }
 0x517   :  { %4372 = vmatprep.subr.bf16.mxu1 %v6289_v34  ;;  %v6367_v34 = vld [vmem:[#allocation19 + $0x144] ss:$8 sps:$4 sm:$0xff]  }
 0x518   :  { %4348 = vmatpush2.bf16.msra.mxu0 %v6284_v36  ;;  %v6347_v36 = vld [vmem:[#allocation19 + $0xa0] ss:$8 sps:$4 sm:$0xff]  }
 0x519   :  { %4349 = vmatprep.subr.bf16.mxu0 %v6292_v25  ;;  %v6352_v25 = vld [vmem:[#allocation19 + $0x94] ss:$8 sps:$4 sm:$0xff]  }
 0x51a   :  { %4373 = vmatpush1.bf16.msra.mxu1 %v6287_v49  ;;  %v6365_v49 = vld [vmem:[#allocation19 + $0x140] ss:$8 sps:$4 sm:$0xff]  }
 0x51b   :  { %4374 = vmatprep.subr.bf16.mxu1 %v6295_v42  ;;  %v6370_v42 = vld [vmem:[#allocation19 + $0x134] ss:$8 sps:$4 sm:$0xff]  }
 0x51c   :  { %4350 = vmatpush2.bf16.msra.mxu0 %v6290_v17  ;;  %v6350_v17 = vld [vmem:[#allocation19 + $0x90] ss:$8 sps:$4 sm:$0xff]  }
 0x51d   :  { %4351 = vmatprep.subr.bf16.mxu0 %v6298_v10  ;;  %v6355_v10 = vld [vmem:[#allocation19 + $0x84] ss:$8 sps:$4 sm:$0xff]  }
 0x51e   :  { %4375 = vmatpush1.bf16.msra.mxu1 %v6293_v43  ;;  %v6368_v43 = vld [vmem:[#allocation19 + $0x130] ss:$8 sps:$4 sm:$0xff]  }
 0x51f   :  { %4376 = vmatprep.subr.bf16.mxu1 %v6301_v38  ;;  %v6353_v38 = vld [vmem:[#allocation19 + $0x80] ss:$8 sps:$4 sm:$0xff]  }
 0x520   :  { %4352 = vmatpush2.bf16.msra.mxu0 %v6296_v6 }
 0x521   :  { %4353 = vmatprep.subr.bf16.mxu0 %v6304_v44 }
 0x522   :  { %4377 = vmatpush1.bf16.msra.mxu1 %v6299_v33 }
 0x523   :  { %4378 = vmatprep.subr.bf16.mxu1 %v6307_v45 }
 0x524   :  { %4354 = vmatpush2.bf16.msra.mxu0 %v6302_v19 }
 0x525   :  { %4833 = vmatprep.subr.bf16.mxu0 %v6310_v7 }
 0x526   :  { %4379 = vmatpush1.bf16.msra.mxu1 %v6305_v18  ;;  %v6371_v18 = vld [vmem:[#allocation19 + $0x120] ss:$8 sps:$4 sm:$0xff]  }
 0x527   :  { %4356 = vmatmul.mubr.bf16.vlgmr.msra.gmra.mxu0 %v7597_v37  ;;  %v6323_v37 = vld [vmem:[#allocation19 + $0x20] ss:$8 sps:$4 sm:$0xff]   ;;  %4874 = vmatprep.subr.bf16.mxu1 %v6358_v35 }
 0x528   :  { %4834 = vmatpush1.bf16.msra.mxu0 %v6308_v59  ;;  %v6373_v59 = vld [vmem:[#allocation19 + $0x124] ss:$8 sps:$4 sm:$0xff]  }
 0x529   :  { %4397 = vmatmul.mubr.bf16.vlgmr.msra.gmra.mxu1 %v7602_v53  ;;  %4835 = vmatprep.subr.bf16.mxu0 %v6313_v46  ;;  %v6326_v53 = vld [vmem:[#allocation19 + $0x10] ss:$8 sps:$4 sm:$0xff]  }
 0x52a   :  { %4875 = vmatpush1.bf16.msra.mxu1 %v6356_v15  ;;  %v6395_v15 = vld [vmem:[#allocation19 + $0x1a0] ss:$8 sps:$4 sm:$0xff]  }
 0x52b   :  { %4876 = vmatprep.subr.bf16.mxu1 %v6361_v22 }
 0x52c   :  { %4836 = vmatpush1.bf16.msra.mxu0 %v6311_v47 }
 0x52d   :  { %4837 = vmatprep.subr.bf16.mxu0 %v6316_v48 }
 0x52e   :  { %4877 = vmatpush1.bf16.msra.mxu1 %v6359_v40  ;;  %v6400_v40 = vld [vmem:[#allocation19 + $0x194] ss:$8 sps:$4 sm:$0xff]  }
 0x52f   :  { %4878 = vmatprep.subr.bf16.mxu1 %v6364_v31  ;;  %v6398_v31 = vld [vmem:[#allocation19 + $0x190] ss:$8 sps:$4 sm:$0xff]  }
 0x530   :  { %4838 = vmatpush1.bf16.msra.mxu0 %v6314_v52 }
 0x531   :  { %4839 = vmatprep.subr.bf16.mxu0 %v6319_v50 }
 0x532   :  { %4879 = vmatpush1.bf16.msra.mxu1 %v6362_v9 }
 0x533   :  { %4880 = vmatprep.subr.bf16.mxu1 %v6367_v34 }
 0x534   :  { %4840 = vmatpush1.bf16.msra.mxu0 %v6317_v32 }
 0x535   :  { %4841 = vmatprep.subr.bf16.mxu0 %v6322_v27  ;;  %v6374_v27 = vld [vmem:[#allocation19 + $0x110] ss:$8 sps:$4 sm:$0xff]  }
 0x536   :  { %4881 = vmatpush1.bf16.msra.mxu1 %v6365_v49 }
 0x537   :  { %4882 = vmatprep.subr.bf16.mxu1 %v6370_v42 }
 0x538   :  { %4842 = vmatpush1.bf16.msra.mxu0 %v6320_v41  ;;  %v6377_v41 = vld [vmem:[#allocation19 + $0x100] ss:$8 sps:$4 sm:$0xff]  }
 0x539   :  { %4843 = vmatprep.subr.bf16.mxu0 %v6325_v56  ;;  %v6382_v56 = vld [vmem:[#allocation19 + $0x1f4] ss:$8 sps:$4 sm:$0xff]  }
 0x53a   :  { %4883 = vmatpush1.bf16.msra.mxu1 %v6368_v43  ;;  %v2546_v43 = vrot.slane %v7610_v60, %v373_v28 }
 0x53b   :  { %4884 = vmatprep.subr.bf16.mxu1 %v6373_v59 }
 0x53c   :  { %4844 = vmatpush1.bf16.msra.mxu0 %v6323_v37  ;;  %v6380_v37 = vld [vmem:[#allocation19 + $0x1f0] ss:$8 sps:$4 sm:$0xff]  }
 0x53d   :  { %4845 = vmatprep.subr.bf16.mxu0 %v6328_v51 }
 0x53e   :  { %4885 = vmatpush1.bf16.msra.mxu1 %v6371_v18 }
 0x540   :  { %4846 = vmatpush1.bf16.msra.mxu0 %v6326_v53 }
 0x541   :  { %4847 = vmatprep.subr.bf16.mxu0 %v6331_v58 }
 0x544   :  { %4848 = vmatpush1.bf16.msra.mxu0 %v6329_v55  ;;  %v6385_v55 = vld [vmem:[#allocation19 + $0x1e4] ss:$8 sps:$4 sm:$0xff]  }
 0x545   :  { %4849 = vmatprep.subr.bf16.mxu0 %v6334_v39 }
 0x547   :  { %v4111_v63 = vpop.f32.mrf.mxu0 }
 0x548   :  { %4850 = vmatpush2.bf16.msra.mxu0 %v6332_v11  ;;  %v4112_v6 = vadd.f32 %v4111_v63, %v7617_v14  ;;  %v6376_v14 = vld [vmem:[#allocation19 + $0x114] ss:$8 sps:$4 sm:$0xff]   ;;  %v6383_v11 = vld [vmem:[#allocation19 + $0x1e0] ss:$8 sps:$4 sm:$0xff]   ;;  %v6386_v63 = vld [vmem:[#allocation19 + $0x1d0] ss:$8 sps:$4 sm:$0xff]  }
 0x549   :  { %v4113_v0 = vpop.f32.mrf.mxu0  ;;  %v4152_v62 = vpop.f32.mrf.mxu1  ;;  %4851 = vmatprep.subr.bf16.mxu0 %v6337_v61  ;;  %4886 = vmatprep.subr.bf16.mxu1 %v6376_v14  ;;  %v6388_v61 = vld [vmem:[#allocation19 + $0x1d4] ss:$8 sps:$4 sm:$0xff]  }
 0x54a   :  { %v4114_v44 = vadd.f32 %v4113_v0, %v7620_v13  ;;  %v4153_v33 = vadd.f32 %v4152_v62, %v4112_v6  ;;  %4887 = vmatpush1.bf16.msra.mxu1 %v6374_v27  ;;  %v6379_v13 = vld [vmem:[#allocation19 + $0x104] ss:$8 sps:$4 sm:$0xff]   ;;  %v6389_v0 = vld [vmem:[#allocation19 + $0x1c0] ss:$8 sps:$4 sm:$0xff]   ;;  %v6394_v62 = vld [vmem:[#allocation19 + $0x1b4] ss:$8 sps:$4 sm:$0xff]  }
 0x54b   :  { %v4115_v29 = vpop.f32.mrf.mxu0  ;;  %v4154_v3 = vpop.f32.mrf.mxu1  ;;  %4888 = vmatprep.subr.bf16.mxu1 %v6379_v13 }
 0x54c   :  { %4852 = vmatpush2.bf16.msra.mxu0 %v6335_v57  ;;  %v4155_v19 = vadd.f32 %v4154_v3, %v4114_v44  ;;  %v6391_v57 = vld [vmem:[#allocation19 + $0x1c4] ss:$8 sps:$4 sm:$0xff]  }
 0x54d   :  { %v4116_v20 = vpop.f32.mrf.mxu0  ;;  %v4156_v4 = vpop.f32.mrf.mxu1  ;;  %4853 = vmatprep.subr.bf16.mxu0 %v6340_v1  ;;  %v6392_v1 = vld [vmem:[#allocation19 + $0x1b0] ss:$8 sps:$4 sm:$0xff]  }
 0x54e   :  { %4889 = vmatpush1.bf16.msra.mxu1 %v6377_v41 }
 0x54f   :  { %v4157_v12 = vpop.f32.mrf.mxu1  ;;  %4890 = vmatprep.subr.bf16.mxu1 %v6382_v56 }
 0x550   :  { %4854 = vmatpush2.bf16.msra.mxu0 %v6338_v8 }
 0x551   :  { %4855 = vmatprep.subr.bf16.mxu0 %v6343_v5  ;;  %v6397_v5 = vld [vmem:[#allocation19 + $0x1a4] ss:$8 sps:$4 sm:$0xff]  }
 0x552   :  { %4891 = vmatpush2.bf16.msra.mxu1 %v6380_v37 }
 0x553   :  { %4892 = vmatprep.subr.bf16.mxu1 %v6385_v55 }
 0x554   :  { %4856 = vmatpush2.bf16.msra.mxu0 %v6341_v16 }
 0x555   :  { %4857 = vmatprep.subr.bf16.mxu0 %v6346_v30 }
 0x556   :  { %4893 = vmatpush2.bf16.msra.mxu1 %v6383_v11 }
 0x557   :  { %4894 = vmatprep.subr.bf16.mxu1 %v6388_v61 }
 0x558   :  { %4858 = vmatpush2.bf16.msra.mxu0 %v6344_v54  ;;  %v6403_v54 = vld [vmem:[#allocation19 + $0x184] ss:$8 sps:$4 sm:$0xff]  }
 0x559   :  { %4859 = vmatprep.subr.bf16.mxu0 %v6349_v2  ;;  %v6401_v2 = vld [vmem:[#allocation19 + $0x180] ss:$8 sps:$4 sm:$0xff]  }
 0x55a   :  { %4895 = vmatpush2.bf16.msra.mxu1 %v6386_v63 }
 0x55b   :  { %4896 = vmatprep.subr.bf16.mxu1 %v6391_v57 }
 0x55c   :  { %4860 = vmatpush2.bf16.msra.mxu0 %v6347_v36 }
 0x55d   :  { %4861 = vmatprep.subr.bf16.mxu0 %v6352_v25 }
 0x55e   :  { %4897 = vmatpush2.bf16.msra.mxu1 %v6389_v0 }
 0x55f   :  { %4898 = vmatprep.subr.bf16.mxu1 %v6394_v62  ;;  %v6404_v62 = vld [vmem:[%s7697_s12 + $0x78] sm:$0xff]  }
 0x560   :  { %4862 = vmatpush2.bf16.msra.mxu0 %v6350_v17 }
 0x561   :  { %4863 = vmatprep.subr.bf16.mxu0 %v6355_v10 }
 0x562   :  { %4899 = vmatpush2.bf16.msra.mxu1 %v6392_v1  ;;  %v6405_v1 = vld [vmem:[%s7697_s12 + $0x38] sm:$0xff]  }
 0x563   :  { %4900 = vmatprep.subr.bf16.mxu1 %v6397_v5  ;;  %v6411_v5 = vld [vmem:[%s7697_s12 + $0x20] sm:$0xff]  }
 0x564   :  { %4864 = vmatpush2.bf16.msra.mxu0 %v6353_v38  ;;  %v2550_v38 = vrot.slane %v7610_v60, %v405_v26 }
 0x565   :  { %5718 = vmatprep.subr.bf16.mxu0 %v6404_v62 }
 0x566   :  { %4901 = vmatpush2.bf16.msra.mxu1 %v6395_v15  ;;  %v6413_v15 = vld [vmem:[%s7697_s12 + $0x18] sm:$0xff]  }
 0x567   :  { %v4193_v45 = vpop.f32.mrf.mxu0  ;;  %4902 = vmatprep.subr.bf16.mxu1 %v6400_v40  ;;  %v6418_v40 = vld [vmem:[%s7697_s12 + $0x40] sm:$0xff]  }
 0x568   :  { %v4194_v7 = vadd.f32 %v4193_v45, %v4153_v33 }
 0x569   :  { %v4195_v46 = vpop.f32.mrf.mxu0 }
 0x56a   :  { %v5506_v47 = vmul.f32 -1.442695, %v4194_v7  ;;  %v4196_v48 = vadd.f32 %v4195_v46, %v4155_v19  ;;  %4903 = vmatpush2.bf16.msra.mxu1 %v6398_v31  ;;  %v6419_v31 = vld [vmem:[%s7697_s12] sm:$0xff]  }
 0x56b   :  { %v4197_v52 = vpop.f32.mrf.mxu0  ;;  %4904 = vmatprep.subr.bf16.mxu1 %v6403_v54  ;;  %v4501_v54 = vld [vmem:[#allocation21] sm:$0x3] }
 0x56c   :  { %6420 = vpow2.f32 %v5506_v47  ;;  %v5507_v50 = vmul.f32 -1.442695, %v4196_v48 }
 0x56d   :  { %v4198_v32 = vpop.f32.mrf.mxu0 }
 0x56e   :  { %6422 = vpow2.f32 %v5507_v50  ;;  %4905 = vmatpush2.bf16.msra.mxu1 %v6401_v2  ;;  %v4506_v2 = vrot.slane %v4501_v54, %v6887_v24 }
 0x579   :  { %v6421_v51 = vpop.eup %6420 }
 0x57a   :  { %v4417_v53 = vadd.f32 1.0, %v6421_v51 }
 0x57b   :  { %v6423_v58 = vpop.eup %6422 }
 0x57c   :  { %6424 = vrcp.f32 %v4417_v53  ;;  %v4418_v39 = vadd.f32 1.0, %v6423_v58 }
 0x57e   :  { %6426 = vrcp.f32 %v4418_v39 }
 0x589   :  { %v6425_v29 = vpop.eup %6424  ;;  %v4234_v3 = vpop.f32.mrf.mxu1 }
 0x58a   :  { %v4429_v20 = vmul.f32 %v6425_v29, %v4194_v7  ;;  %v4235_v6 = vadd.f32 %v4234_v3, %v2546_v43  ;;  %v6406_v29 = vld [vmem:[%s7697_s12 + $0x70] sm:$0xff]  }
 0x58b   :  { %v6427_v8 = vpop.eup %6426  ;;  %v4236_v4 = vpop.f32.mrf.mxu1  ;;  %v6407_v3 = vld [vmem:[%s7697_s12 + $0x30] sm:$0xff]  }
 0x58c   :  { %v4430_v12 = vmul.f32 %v6427_v8, %v4196_v48  ;;  %v4433_v22 = vpack.c.bf16 %v4429_v20, %v4429_v20  ;;  %v4237_v44 = vadd.f32 %v4236_v4, %v2550_v38  ;;  %v6408_v8 = vld [vmem:[%s7697_s12 + $0x68] sm:$0xff]   ;;  %v6410_v4 = vld [vmem:[%s7697_s12 + $0x60] sm:$0xff]  }
 0x58d   :  { %v4238_v35 = vpop.f32.mrf.mxu1  ;;  %v6409_v20 = vld [vmem:[%s7697_s12 + $0x28] sm:$0xff]  }
 0x58e   :  { %v4434_v16 = vpack.c.bf16 %v4430_v12, %v4430_v12  ;;  %v6412_v12 = vld [vmem:[%s7697_s12 + $0x58] sm:$0xff]   ;;  %v6414_v35 = vld [vmem:[%s7697_s12 + $0x50] sm:$0xff]  }
 0x58f   :  { %v4239_v30 = vpop.f32.mrf.mxu1 }
 0x590   :  { %4865 = vmatprep.mubr.bf16.mxu0 %v4434_v16  ;;  %v6415_v16 = vld [vmem:[%s7697_s12 + $0x10] sm:$0xff]   ;;  %v6417_v30 = vld [vmem:[%s7697_s12 + $0x8] sm:$0xff]  }
 0x591   :  { %4866 = vmatmul.mubr.bf16.vlgmr.msra.gmra.mxu0 %v4433_v22  ;;  %v6416_v22 = vld [vmem:[%s7697_s12 + $0x48] sm:$0xff]   ;;  %s6711_s12 = smov [#allocation24]  }
 0x592   :  { %5719 = vmatpush3.bf16.msra.mxu0 %v6405_v1  ;;  %s5114_s15 = sshll.u32 %s6711_s12, 4  ;;  %s5115_s15 = int_to_ptr.vmem [resolvable:$true] %s5114_s15 }
 0x593   :  { %5720 = vmatprep.subr.bf16.mxu0 %v6406_v29  ;;  %s6652_s13 = scalar_lea.vmem %s5115_s15, 32  ;;  %p6657_p9 = scmp.lt.s32.totalorder %s5115_s15, %s5115_s15 }
 0x594   :  { %p6653_p8 = scmp.ne.s32.totalorder %s5115_s15, %s6652_s13  ;;  %p6658_p10 = scmp.lt.s32.totalorder %s6652_s13, %s6652_s13 }
 0x596   :  { %5721 = vmatpush3.bf16.msra.mxu0 %v6407_v3  ;;  %p6659_p11 = por %p6658_p10, %p6657_p9 }
 0x597   :  { %5722 = vmatprep.subr.bf16.mxu0 %v6408_v8 }
 0x598   :  { %p6660_p12 = pnand %p6659_p11, %p6653_p8 }
 0x59a   :  { %5723 = vmatpush3.bf16.msra.mxu0 %v6409_v20 }
 0x59b   :  { %5724 = vmatprep.subr.bf16.mxu0 %v6410_v4 }
 0x59e   :  { %5725 = vmatpush3.bf16.msra.mxu0 %v6411_v5 }
 0x59f   :  { %5726 = vmatprep.subr.bf16.mxu0 %v6412_v12 }
 0x5a2   :  { %5727 = vmatpush3.bf16.msra.mxu0 %v6413_v15 }
 0x5a3   :  { %5728 = vmatprep.subr.bf16.mxu0 %v6414_v35 }
 0x5a6   :  { %5729 = vmatpush3.bf16.msra.mxu0 %v6415_v16 }
 0x5a7   :  { %v4275_v9 = vpop.f32.mrf.mxu0  ;;  %5730 = vmatprep.subr.bf16.mxu0 %v6416_v22 }
 0x5a8   :  { %v4276_v33 = vadd.f32 %v4275_v9, %v4235_v6  ;;  %v4510_v9 = vrot.slane %v4501_v54, %v6884_v23 }
 0x5a9   :  { %v4277_v34 = vpop.f32.mrf.mxu0 }
 0x5aa   :  { %v4278_v45 = vadd.f32 %v4277_v34, %v4237_v44  ;;  %5731 = vmatpush3.bf16.msra.mxu0 %v6417_v30 }
 0x5ab   :  { %v4279_v36 = vpop.f32.mrf.mxu0  ;;  %5732 = vmatprep.subr.bf16.mxu0 %v6418_v40 }
 0x5ad   :  { %v4280_v25 = vpop.f32.mrf.mxu0 }
 0x5ae   :  { %5733 = vmatpush3.bf16.msra.mxu0 %v6419_v31 }
 0x5c9   :  { %v4316_v49 = vpop.f32.mrf.mxu1 }
 0x5ca   :  { %v4317_v19 = vadd.f32 %v4316_v49, %v4276_v33 }
 0x5cb   :  { %v4318_v42 = vpop.f32.mrf.mxu1 }
 0x5cc   :  { %v4319_v18 = vadd.f32 %v4318_v42, %v4278_v45 }
 0x5cd   :  { %v4320_v17 = vpop.f32.mrf.mxu1 }
 0x5cf   :  { %v4321_v10 = vpop.f32.mrf.mxu1 }
 0x5e7   :  { %v4357_v7 = vpop.f32.mrf.mxu0 }
 0x5e8   :  { %v4358_v59 = vadd.f32 %v4357_v7, %v4317_v19 }
 0x5e9   :  { %v4359_v46 = vpop.f32.mrf.mxu0  ;;  %v4398_v47 = vpop.f32.mrf.mxu1 }
 0x5ea   :  { %v4360_v48 = vadd.f32 %v4359_v46, %v4319_v18  ;;  %v4399_v52 = vadd.f32 %v4398_v47, %v4358_v59 }
 0x5eb   :  { %v4361_v50 = vpop.f32.mrf.mxu0  ;;  %v4400_v32 = vpop.f32.mrf.mxu1 }
 0x5ec   :  { %v5508_v14 = vmul.f32 -1.442695, %v4399_v52  ;;  %v4401_v28 = vadd.f32 %v4400_v32, %v4360_v48 }
 0x5ed   :  { %v4362_v27 = vpop.f32.mrf.mxu0  ;;  %v4402_v21 = vpop.f32.mrf.mxu1 }
 0x5ee   :  { %6428 = vpow2.f32 %v5508_v14  ;;  %v5509_v26 = vmul.f32 -1.442695, %v4401_v28 }
 0x5ef   :  { %v4403_v60 = vpop.f32.mrf.mxu1 }
 0x5f0   :  { %6430 = vpow2.f32 %v5509_v26 }
 0x5fb   :  { %v6429_v13 = vpop.eup %6428 }
 0x5fc   :  { %v4419_v41 = vadd.f32 1.0, %v6429_v13 }
 0x5fd   :  { %v6431_v56 = vpop.eup %6430 }
 0x5fe   :  { %6432 = vrcp.f32 %v4419_v41  ;;  %v4420_v37 = vadd.f32 1.0, %v6431_v56 }
 0x600   :  { %6434 = vrcp.f32 %v4420_v37 }
 0x60b   :  { %v6433_v51 = vpop.eup %6432 }
 0x60c   :  { %v4431_v58 = vmul.f32 %v6433_v51, %v4399_v52  ;;  %v5576_v52 = vld [vmem:[#allocation22] ss:$0 sm:$0xff] }
 0x60d   :  { %v6435_v53 = vpop.eup %6434 }
 0x60e   :  { %v4432_v55 = vmul.f32 %v6435_v53, %v4401_v28  ;;  %v4435_v11 = vpack.c.bf16 %v4431_v58, %v4431_v58 }
 0x610   :  { %v4436_v39 = vpack.c.bf16 %v4432_v55, %v4432_v55 }
 0x612   :  { %4906 = vmatprep.mubr.bf16.mxu1 %v4436_v39 }
 0x613   :  { %4907 = vmatmul.mubr.bf16.vlgmr.msra.gmra.mxu1 %v4435_v11 }
 0x651   :  { %v4867_v61 = vpop.f32.mrf.mxu0 }
 0x652   :  { %v4868_v34 = vadd.f32 %v4867_v61, %v4506_v2 }
 0x653   :  { %v4869_v63 = vpop.f32.mrf.mxu0 }
 0x654   :  { %v4870_v25 = vadd.f32 %v4869_v63, %v4510_v9 }
 0x655   :  { %v4871_v57 = vpop.f32.mrf.mxu0 }
 0x657   :  { %v4872_v0 = vpop.f32.mrf.mxu0 }
 0x6d3   :  { %v4908_v36 = vpop.f32.mrf.mxu1 }
 0x6d4   :  { %v4909_v49 = vadd.f32 %v4908_v36, %v4868_v34 }
 0x6d5   :  { %v4910_v42 = vpop.f32.mrf.mxu1 }
 0x6d6   :  { %v5574_v17 = vmul.f32 -1.442695, %v4909_v49  ;;  %v4911_v10 = vadd.f32 %v4910_v42, %v4870_v25 }
 0x6d7   :  { %v4912_v43 = vpop.f32.mrf.mxu1 }
 0x6d8   :  { %6436 = vpow2.f32 %v5574_v17  ;;  %v5575_v38 = vmul.f32 -1.442695, %v4911_v10 }
 0x6d9   :  { %v4913_v6 = vpop.f32.mrf.mxu1 }
 0x6da   :  { %6438 = vpow2.f32 %v5575_v38 }
 0x6e5   :  { %v6437_v44 = vpop.eup %6436 }
 0x6e6   :  { %v4921_v33 = vadd.f32 1.0, %v6437_v44 }
 0x6e7   :  { %v6439_v45 = vpop.eup %6438 }
 0x6e8   :  { %6440 = vrcp.f32 %v4921_v33  ;;  %v4922_v19 = vadd.f32 1.0, %v6439_v45 }
 0x6ea   :  { %6442 = vrcp.f32 %v4922_v19 }
 0x6f5   :  { %v6441_v24 = vpop.eup %6440 }
 0x6f6   :  { %v4927_v7 = vmul.f32 %v6441_v24, %v4909_v49 }
 0x6f7   :  { %v6443_v23 = vpop.eup %6442 }
 0x6f8   :  { %v4928_v18 = vmul.f32 %v6443_v23, %v4911_v10  ;;  %v4929_v46 = vpack.c.bf16 %v4927_v7, %v4927_v7 }
 0x6fa   :  { %v4930_v59 = vpack.c.bf16 %v4928_v18, %v4928_v18 }
 0x6fc   :  { %5098 = vmatprep.mubr.bf16.mxu0 %v4930_v59 }
 0x6fd   :  { %5099 = vmatmul.mubr.bf16.vlgmr.msra.gmra.mxu0 %v4929_v46 }
 0x7bd   :  { %v5734_v47 = vpop.f32.mrf.mxu0 }
 0x7bf   :  { %v5735_v48 = vpop.f32.mrf.mxu0 }
 0x7c0   :  { %v5736_v50 = vadd.f32 %v5735_v48, %v5734_v47 }
 0x7c1   :  { %v5737_v32 = vpop.f32.mrf.mxu0 }
 0x7c2   :  { %v5101_v14 = vadd.f32 %v5736_v50, %v5576_v52 }
 0x7c3   :  { %v5738_v28 = vpop.f32.mrf.mxu0 }
 0x7c4   :  { %5107 = vst.msk [vmem:[#allocation24] sm:$0x3] %vm5106_vm6, %v5101_v14 }
 0x7c5   :  { %6663 = shalt.err (!%p6660_p12)
}
 0x7c6   :  { %5117 = dma.vmem_to_hbm [thread:$0]  %s5115_s15, 32, %s7699_s14, [#allocation7]  }
 0x7c7   :  { %6686 = dma.done.wait [#allocation7], 32  }
 0x7c8   :  { %6687 = vsyncadd [#allocation7], 4294967264 }
 0x7c9   :  { %5121 = vsyncpa [#allocation6], 1 }
 0x7ca   :  { %5122 = vsyncpa [#allocation11], 1 }
 0x7cb   :  { %5123 = vsyncpa [#allocation14], 1 }
 0x7cc   :  { %5124 = vsyncpa [#allocation17], 1 }
 0x7cd   :  { %5125 = vsyncpa [#allocation20], 1 }
 0x7ce   :  { %5126 = vsyncpa [#allocation23], 1 }
 0x7cf   :  { %5127 = vsyncpa [#allocation7], 1 }
 0x7d0   :  { %5128 = vsyncpa [#allocation8], 1 }

</bundles_post_ra>
